<compile_context>
chip_gen: v7x
topology: tpu7x:2x2x1
jax: 0.10.0
libtpu: 0.0.40
codegen_flags: <defaults>
</compile_context>

<pallas_src>
import functools

import jax
import jax.numpy as jnp
from jax.experimental import pallas as pl
from jax.experimental.pallas import tpu as pltpu


def _round_up(x, m):
    return (x + m - 1) // m * m


def _vmem_capacity_bytes():
    try:
        return int(pltpu.get_tpu_info().vmem_capacity_bytes)
    except Exception:
        return 64 << 20  # conservative fallback (v7x per-TensorCore)


def _vmem_limit(needed_bytes, cap):
    # 1.5x margin + 2 MiB for compiler-internal scratch, floored at the 32 MiB default,
    # capped at the physical capacity.
    return int(min(cap, max(needed_bytes * 3 // 2 + (2 << 20), 32 << 20)))


def _pad_gate_cols(w, hid, hid_pad):
    """w: (rows, 4*hid) in PyTorch gate order [i,f,g,o] -> (rows, 4*hid_pad).
    Each gate block zero-padded independently so gate k occupies columns
    [k*hid_pad, (k+1)*hid_pad) (lane-aligned when hid_pad % 128 == 0)."""
    rows = w.shape[0]
    w4 = w.reshape(rows, 4, hid)
    w4 = jnp.pad(w4, ((0, 0), (0, 0), (0, hid_pad - hid)))
    return w4.reshape(rows, 4 * hid_pad)


# ----------------------------------------------------------------------------
# Kernel 1: hoisted input projection  px = x @ W_ih^T + (b_ih + b_hh)
# ----------------------------------------------------------------------------
def _input_proj_kernel(x_ref, w_ref, b_ref, px_ref):
    acc = jnp.dot(x_ref[...], w_ref[...], preferred_element_type=jnp.float32)
    px_ref[...] = (acc + b_ref[...]).astype(px_ref.dtype)


def input_projection_pallas(x, w_ih_t, bias, *, row_blk=512):
    """x: (S_pad, B_pad, D_pad) bf16; w_ih_t: (D_pad, 4*H_pad) bf16; bias: (1, 4*H_pad) f32.
    Returns px: (S_pad, B_pad, 4*H_pad) in x.dtype."""
    s_pad, b_pad, d_pad = x.shape
    g = w_ih_t.shape[1]
    m = s_pad * b_pad

    # Standalone row tile (multiple of 8), decoupled from the recurrence tiling.
    row_blk = min(row_blk, _round_up(m, 8))
    m_pad = _round_up(m, row_blk)
    x2 = x.reshape(m, d_pad)
    if m_pad != m:
        x2 = jnp.pad(x2, ((0, m_pad - m), (0, 0)))

    cap = _vmem_capacity_bytes()
    budget = cap * 3 // 4
    itb = x.dtype.itemsize

    def vmem_needed(gb):
        return (2 * row_blk * d_pad * itb          # x tiles (double-buffered)
                + 2 * d_pad * gb * w_ih_t.dtype.itemsize   # weight tiles
                + 2 * gb * 4                        # bias tiles (f32)
                + 2 * row_blk * gb * itb)           # output tiles

    # Shrink the gate (N) block until the working set fits; stays a multiple of 128.
    g_blk = g
    while vmem_needed(g_blk) > budget and g_blk % 256 == 0:
        g_blk //= 2

    n_rows = m_pad // row_blk
    n_gates = g // g_blk

    px2 = pl.pallas_call(
        _input_proj_kernel,
        out_shape=jax.ShapeDtypeStruct((m_pad, g), x.dtype),
        grid_spec=pltpu.PrefetchScalarGridSpec(
            num_scalar_prefetch=0,
            # Gate axis outer: the (d_pad, g_blk) weight block stays resident while
            # the row blocks stream.
            grid=(n_gates, n_rows),
            in_specs=[
                pl.BlockSpec((row_blk, d_pad), lambda j, i: (i, 0)),
                pl.BlockSpec((d_pad, g_blk), lambda j, i: (0, j)),
                pl.BlockSpec((1, g_blk), lambda j, i: (0, j)),
            ],
            out_specs=pl.BlockSpec((row_blk, g_blk), lambda j, i: (i, j)),
        ),
        compiler_params=pltpu.CompilerParams(
            dimension_semantics=("parallel", "parallel"),
            vmem_limit_bytes=_vmem_limit(vmem_needed(g_blk), cap)),
        cost_estimate=pl.CostEstimate(
            flops=2 * m_pad * d_pad * g,
            transcendentals=0,
            bytes_accessed=(m_pad * d_pad * itb + d_pad * g * w_ih_t.dtype.itemsize
                            + g * 4 + m_pad * g * itb)),
    )(x2, w_ih_t, bias)
    if m_pad != m:
        px2 = px2[:m]
    return px2.reshape(s_pad, b_pad, g)


# ----------------------------------------------------------------------------
# Kernel 2: LSTM recurrence over T_BLK timesteps per grid step
# ----------------------------------------------------------------------------
def _lstm_recurrent_kernel(px_ref, whh_ref, out_ref, h_out_ref, c_out_ref,
                           h_scr, c_scr, *, seq_len, t_blk, unroll, needs_mask):
    t_idx = pl.program_id(1)
    n_t = pl.num_programs(1)
    is_last = t_idx == n_t - 1

    @pl.when(t_idx == 0)
    def _():
        h_scr[...] = jnp.zeros_like(h_scr)
        c_scr[...] = jnp.zeros_like(c_scr)

    # W_hh^T is a pipelined input with a constant index_map: prefetched once, never
    # re-fetched, no blocking manual DMA on the critical path.
    w_hh = whh_ref[...]                            # (H_pad, 4*H_pad) bf16
    hid_pad = h_scr.shape[-1]

    def make_step(masked):
        def step(i, carry):
            h, c = carry                           # f32 (B_blk, H_pad)
            # Per-step critical path: one small matmul + elementwise gates
            # (the x-projection was hoisted into kernel 1).
            gates = px_ref[i].astype(jnp.float32) + jnp.dot(
                h.astype(w_hh.dtype), w_hh, preferred_element_type=jnp.float32)
            i_g = jax.nn.sigmoid(gates[:, 0 * hid_pad:1 * hid_pad])
            f_g = jax.nn.sigmoid(gates[:, 1 * hid_pad:2 * hid_pad])
            g_g = jnp.tanh(gates[:, 2 * hid_pad:3 * hid_pad])
            o_g = jax.nn.sigmoid(gates[:, 3 * hid_pad:4 * hid_pad])
            c_new = f_g * c + i_g * g_g
            h_new = o_g * jnp.tanh(c_new)
            out_ref[i] = h_new.astype(out_ref.dtype)
            if masked:
                # Only emitted for the last time block (padded t >= seq_len).
                valid = (t_idx * t_blk + i) < seq_len
                h_new = jnp.where(valid, h_new, h)
                c_new = jnp.where(valid, c_new, c)
            return h_new, c_new
        return step

    def run(step_fn):
        carry = (h_scr[...], c_scr[...])
        n_chunks = t_blk // unroll
        if n_chunks == 1:
            return jax.lax.fori_loop(0, unroll, step_fn, carry, unroll=True)

        def chunk(ci, cr):
            base = pl.multiple_of(ci * unroll, unroll)
            return jax.lax.fori_loop(
                0, unroll, lambda j, cr2: step_fn(base + j, cr2), cr, unroll=True)

        return jax.lax.fori_loop(0, n_chunks, chunk, carry)

    if needs_mask:
        # Hot path (no per-step masking) for all blocks but the last.
        @pl.when(jnp.logical_not(is_last))
        def _():
            h, c = run(make_step(False))
            h_scr[...] = h
            c_scr[...] = c

        @pl.when(is_last)
        def _():
            h, c = run(make_step(True))
            h_scr[...] = h
            c_scr[...] = c
            h_out_ref[...] = h
            c_out_ref[...] = c
    else:
        h, c = run(make_step(False))
        h_scr[...] = h
        c_scr[...] = c

        @pl.when(is_last)
        def _():
            # h_out/c_out index_map is independent of t, so the block is resident across
            # the time axis and only written back to HBM after the last time block.
            h_out_ref[...] = h
            c_out_ref[...] = c


def lstm_recurrence_pallas(px, w_hh_t, *, seq_len, t_blk, unroll, b_blk):
    """px: (S_pad, B_pad, 4*H_pad) bf16; w_hh_t: (H_pad, 4*H_pad) bf16.
    Returns (outputs (S_pad,B_pad,H_pad) bf16, h_last (B_pad,H_pad) f32, c_last f32)."""
    s_pad, b_pad, g = px.shape
    hid_pad = g // 4
    nt = s_pad // t_blk
    nb = b_pad // b_blk
    needs_mask = (s_pad != seq_len)
    itb = px.dtype.itemsize

    cap = _vmem_capacity_bytes()
    needed = (2 * t_blk * b_blk * g * itb            # px tiles (double-buffered)
              + 2 * t_blk * b_blk * hid_pad * itb    # output tiles
              + 2 * hid_pad * g * w_hh_t.dtype.itemsize   # W_hh (2 pipeline buffers)
              + 2 * b_blk * hid_pad * 4              # h/c scratch (f32)
              + 4 * b_blk * hid_pad * 4)             # h_out/c_out tiles

    kernel = functools.partial(_lstm_recurrent_kernel, seq_len=seq_len,
                               t_blk=t_blk, unroll=unroll, needs_mask=needs_mask)
    return pl.pallas_call(
        kernel,
        out_shape=(
            jax.ShapeDtypeStruct((s_pad, b_pad, hid_pad), px.dtype),   # per-step h
            jax.ShapeDtypeStruct((b_pad, hid_pad), jnp.float32),        # final h
            jax.ShapeDtypeStruct((b_pad, hid_pad), jnp.float32),        # final c
        ),
        grid_spec=pltpu.PrefetchScalarGridSpec(
            num_scalar_prefetch=0,
            grid=(nb, nt),
            in_specs=[
                pl.BlockSpec((t_blk, b_blk, g), lambda b, t: (t, b, 0)),
                # Constant index_map: fetched once by the pipeliner, overlapped with
                # the first px DMA; no re-fetch per batch block on single-TC chips.
                pl.BlockSpec((hid_pad, g), lambda b, t: (0, 0)),
            ],
            out_specs=[
                pl.BlockSpec((t_blk, b_blk, hid_pad), lambda b, t: (t, b, 0)),
                pl.BlockSpec((b_blk, hid_pad), lambda b, t: (b, 0)),
                pl.BlockSpec((b_blk, hid_pad), lambda b, t: (b, 0)),
            ],
            scratch_shapes=[
                pltpu.VMEM((b_blk, hid_pad), jnp.float32),    # h carry
                pltpu.VMEM((b_blk, hid_pad), jnp.float32),    # c carry
            ]),
        compiler_params=pltpu.CompilerParams(
            dimension_semantics=("parallel", "arbitrary"),
            vmem_limit_bytes=_vmem_limit(needed, cap)),
        cost_estimate=pl.CostEstimate(
            flops=2 * s_pad * b_pad * hid_pad * g,
            transcendentals=5 * s_pad * b_pad * hid_pad,
            bytes_accessed=(s_pad * b_pad * g * itb
                            + hid_pad * g * w_hh_t.dtype.itemsize
                            + s_pad * b_pad * hid_pad * itb
                            + 2 * b_pad * hid_pad * 4)),
    )(px, w_hh_t)


# ----------------------------------------------------------------------------
# Encoder wrapper (multi-layer LSTM).  Padding / weight prep glue in JAX.
# ----------------------------------------------------------------------------
def encoder_forward(src, params, *, t_blk=None, unroll=8, b_blk=None,
                    compute_dtype=jnp.bfloat16):
    """src: (seq_len, batch, input_dim) f32.
    params: per layer (w_ih (4H,D), w_hh (4H,H), b_ih (4H,), b_hh (4H,)).
    Returns (hidden, cell), each (n_layers, batch, hid_dim) f32."""
    seq_len, batch, _ = src.shape
    hid = params[0][1].shape[1]

    hid_pad = _round_up(hid, 128)      # lane-dense stores + lane-aligned gate slices
    g = 4 * hid_pad
    b_pad = _round_up(batch, 8)
    if b_blk is None:
        # NOTE (v7x): only pass b_blk = b_pad // 2 (to use both TensorCores) when each
        # half still has >= ~256 rows; b_blk is the recurrent matmul's M dim and smaller
        # blocks starve the MXU while the grid stays serial per core.
        b_blk = b_pad
    else:
        b_blk = _round_up(b_blk, 8)
        b_pad = _round_up(b_pad, b_blk)

    # Larger time block amortizes the per-grid-step overhead; register-level unroll capped.
    if t_blk is None:
        t_blk = max(unroll, min(4 * unroll, _round_up(seq_len, unroll)))
    t_blk = _round_up(t_blk, unroll)

    # Shrink t_blk if the recurrence working set would not fit VMEM
    # (64 MiB physical on v7x vs 128 MiB on v5e/v6e).
    cap = _vmem_capacity_bytes()
    budget = cap * 3 // 4

    def recur_vmem(tb):
        return (2 * tb * b_blk * g * 2 + 2 * tb * b_blk * hid_pad * 2
                + 2 * hid_pad * g * 2 + 2 * b_blk * hid_pad * 4
                + 4 * b_blk * hid_pad * 4)

    while recur_vmem(t_blk) > budget and t_blk > unroll:
        t_blk = max(unroll, (t_blk // 2) // unroll * unroll)

    s_pad = _round_up(seq_len, t_blk)

    x = jnp.pad(src, ((0, s_pad - seq_len), (0, b_pad - batch), (0, 0)))
    x = x.astype(compute_dtype)

    hs, cs = [], []
    for (w_ih, w_hh, b_ih, b_hh) in params:
        d = w_ih.shape[1]
        d_pad = _round_up(d, 128)
        if x.shape[-1] < d_pad:
            x = jnp.pad(x, ((0, 0), (0, 0), (0, d_pad - x.shape[-1])))

        w_ih_t = jnp.pad(_pad_gate_cols(w_ih.T, hid, hid_pad),
                         ((0, d_pad - d), (0, 0))).astype(compute_dtype)
        w_hh_t = jnp.pad(_pad_gate_cols(w_hh.T, hid, hid_pad),
                         ((0, hid_pad - hid), (0, 0))).astype(compute_dtype)
        bias = _pad_gate_cols((b_ih + b_hh)[None, :], hid, hid_pad)
        bias = bias.astype(jnp.float32)

        # 1) hoisted input projection: one big MXU matmul over all timesteps
        px = input_projection_pallas(x, w_ih_t, bias)
        # 2) sequential recurrence, T_BLK timesteps per grid step
        outputs, h_last, c_last = lstm_recurrence_pallas(
            px, w_hh_t, seq_len=seq_len, t_blk=t_blk, unroll=unroll, b_blk=b_blk)

        hs.append(h_last[:batch, :hid])
        cs.append(c_last[:batch, :hid])
        # TODO(synk): nn.LSTM applies dropout to `outputs` between layers in training
        # mode only; this implements eval/inference semantics (no dropout).
        x = outputs                    # bf16 inter-layer activations

    return jnp.stack(hs, axis=0), jnp.stack(cs, axis=0)


def init_encoder_params(key, input_dim, hid_dim, n_layers):
    """PyTorch-style init: uniform(-1/sqrt(H), 1/sqrt(H)); gate order i,f,g,o."""
    params = []
    k = 1.0 / float(jnp.sqrt(jnp.float32(hid_dim)))
    for layer in range(n_layers):
        d_in = input_dim if layer == 0 else hid_dim
        key, k1, k2, k3, k4 = jax.random.split(key, 5)
        w_ih = jax.random.uniform(k1, (4 * hid_dim, d_in), jnp.float32, -k, k)
        w_hh = jax.random.uniform(k2, (4 * hid_dim, hid_dim), jnp.float32, -k, k)
        b_ih = jax.random.uniform(k3, (4 * hid_dim,), jnp.float32, -k, k)
        b_hh = jax.random.uniform(k4, (4 * hid_dim,), jnp.float32, -k, k)
        params.append((w_ih, w_hh, b_ih, b_hh))
    return params


# ----------------------------------------------------------------------------
# Pure-JAX f32 reference (lax.scan) — silent sanity check only.
# ----------------------------------------------------------------------------
def _reference_encoder(src, params):
    x = src
    hs, cs = [], []
    for (w_ih, w_hh, b_ih, b_hh) in params:
        H = w_hh.shape[1]
        b = b_ih + b_hh

        def step(carry, x_t):
            h, c = carry
            gates = x_t @ w_ih.T + h @ w_hh.T + b
            i = jax.nn.sigmoid(gates[:, 0 * H:1 * H])
            f = jax.nn.sigmoid(gates[:, 1 * H:2 * H])
            g = jnp.tanh(gates[:, 2 * H:3 * H])
            o = jax.nn.sigmoid(gates[:, 3 * H:4 * H])
            c_new = f * c + i * g
            h_new = o * jnp.tanh(c_new)
            return (h_new, c_new), h_new

        B = x.shape[1]
        init = (jnp.zeros((B, H), jnp.float32), jnp.zeros((B, H), jnp.float32))
        (h_last, c_last), outputs = jax.lax.scan(step, init, x)
        hs.append(h_last)
        cs.append(c_last)
        x = outputs
    return jnp.stack(hs, 0), jnp.stack(cs, 0)


if __name__ == "__main__":
    # src: (seq_len, batch, input_dim); hidden/cell: (n_layers, batch, hid_dim)
    seq_len, batch, input_dim, hid_dim, n_layers = 8, 2, 16, 32, 2

    key = jax.random.PRNGKey(0)
    key, k_src, k_par = jax.random.split(key, 3)
    src = jax.random.normal(k_src, (seq_len, batch, input_dim), jnp.float32)
    params = init_encoder_params(k_par, input_dim, hid_dim, n_layers)

    hidden, cell = jax.jit(encoder_forward)(src, params)
    hidden = jax.block_until_ready(hidden)
    cell = jax.block_until_ready(cell)

    assert hidden.shape == (n_layers, batch, hid_dim)
    assert cell.shape == (n_layers, batch, hid_dim)

    # bf16 MXU path -> compare against the f32 reference with a bf16-appropriate tolerance.
    h_ref, c_ref = _reference_encoder(src, params)
    assert jnp.allclose(hidden, h_ref, atol=5e-2, rtol=5e-2), \
        float(jnp.max(jnp.abs(hidden - h_ref)))
    assert jnp.allclose(cell, c_ref, atol=5e-2, rtol=5e-2), \
        float(jnp.max(jnp.abs(cell - c_ref)))

    print("KERNEL_OK")
</pallas_src>

<mosaic_0001>
module attributes {stable_mosaic.version = 11 : i64} {
  func.func @_input_proj_kernel(%arg0: i32, %arg1: i32, %arg2: memref<64x128xbf16, #tpu.memory_space<vmem>>, %arg3: memref<128x512xbf16, #tpu.memory_space<vmem>>, %arg4: memref<1x512xf32, #tpu.memory_space<vmem>>, %arg5: memref<64x512xbf16, #tpu.memory_space<vmem>>) attributes {dimension_semantics = [#tpu.dimension_semantics<parallel>, #tpu.dimension_semantics<parallel>], iteration_bounds = array<i64: 1, 1>, scalar_prefetch = 0 : i64, scratch_operands = 0 : i64, tpu.core_type = #tpu.core_type<tc>, window_params = [{transform_indices = @transform_0, window_bounds = array<i64: 64, 128>}, {transform_indices = @transform_1, window_bounds = array<i64: 128, 512>}, {transform_indices = @transform_2, window_bounds = array<i64: 1, 512>}, {transform_indices = @transform_3, window_bounds = array<i64: 64, 512>}]} {
    %c0 = arith.constant 0 : index
    %c0_0 = arith.constant 0 : index
    %0 = vector.load %arg2[%c0, %c0_0] : memref<64x128xbf16, #tpu.memory_space<vmem>>, vector<64x128xbf16>
    %c0_1 = arith.constant 0 : index
    %c0_2 = arith.constant 0 : index
    %1 = vector.load %arg3[%c0_1, %c0_2] : memref<128x512xbf16, #tpu.memory_space<vmem>>, vector<128x512xbf16>
    %cst = arith.constant dense<0.000000e+00> : vector<64x512xf32>
    %2 = tpu.matmul %0, %1, %cst {dimension_numbers = #tpu.dot_dimension_numbers<[1], [0], [0], [1], [0, 0, 1, 1], [], []>} : vector<64x128xbf16>, vector<128x512xbf16>, vector<64x512xf32> -> vector<64x512xf32>
    %c0_3 = arith.constant 0 : index
    %c0_4 = arith.constant 0 : index
    %3 = vector.load %arg4[%c0_3, %c0_4] : memref<1x512xf32, #tpu.memory_space<vmem>>, vector<1x512xf32>
    %4 = vector.broadcast %3 : vector<1x512xf32> to vector<64x512xf32>
    %5 = arith.addf %2, %4 : vector<64x512xf32>
    %6 = arith.truncf %5 : vector<64x512xf32> to vector<64x512xbf16>
    %c0_5 = arith.constant 0 : index
    %c0_6 = arith.constant 0 : index
    %7 = vector.load %arg5[%c0_5, %c0_6] : memref<64x512xbf16, #tpu.memory_space<vmem>>, vector<64x512xbf16>
    tpu.vector_store %arg5[%c0_5, %c0_6], %6 {strides = array<i32>} : memref<64x512xbf16, #tpu.memory_space<vmem>>, vector<64x512xbf16>,
    return
  }
  func.func @transform_0(%arg0: i32, %arg1: i32) -> (i32, i32) {
    %c0_i32 = arith.constant 0 : i32
    %c0_i32_0 = arith.constant 0 : i32
    return %arg1, %c0_i32 : i32, i32
  }
  func.func @transform_1(%arg0: i32, %arg1: i32) -> (i32, i32) {
    %c0_i32 = arith.constant 0 : i32
    %c0_i32_0 = arith.constant 0 : i32
    return %c0_i32, %arg0 : i32, i32
  }
  func.func @transform_2(%arg0: i32, %arg1: i32) -> (i32, i32) {
    %c0_i32 = arith.constant 0 : i32
    %c0_i32_0 = arith.constant 0 : i32
    return %c0_i32, %arg0 : i32, i32
  }
  func.func @transform_3(%arg0: i32, %arg1: i32) -> (i32, i32) {
    %c0_i32 = arith.constant 0 : i32
    return %arg1, %arg0 : i32, i32
  }
}

module attributes {stable_mosaic.version = 11 : i64} {
  func.func @_lstm_recurrent_kernel(%arg0: i32, %arg1: i32, %arg2: memref<8x8x512xbf16, #tpu.memory_space<vmem>>, %arg3: memref<128x512xbf16, #tpu.memory_space<vmem>>, %arg4: memref<8x8x128xbf16, #tpu.memory_space<vmem>>, %arg5: memref<8x128xf32, #tpu.memory_space<vmem>>, %arg6: memref<8x128xf32, #tpu.memory_space<vmem>>, %arg7: memref<8x128xf32, #tpu.memory_space<vmem>>, %arg8: memref<8x128xf32, #tpu.memory_space<vmem>>) attributes {dimension_semantics = [#tpu.dimension_semantics<parallel>, #tpu.dimension_semantics<arbitrary>], iteration_bounds = array<i64: 1, 1>, scalar_prefetch = 0 : i64, scratch_operands = 2 : i64, tpu.core_type = #tpu.core_type<tc>, window_params = [{transform_indices = @transform_0, window_bounds = array<i64: 8, 8, 512>}, {pipeline_mode = #tpu.pipeline_mode<synchronous>, transform_indices = @transform_1, window_bounds = array<i64: 128, 512>}, {transform_indices = @transform_2, window_bounds = array<i64: 8, 8, 128>}, {transform_indices = @transform_3, window_bounds = array<i64: 8, 128>}, {transform_indices = @transform_4, window_bounds = array<i64: 8, 128>}]} {
    %c0_i32 = arith.constant 0 : i32
    %0 = arith.cmpi eq, %arg1, %c0_i32 : i32
    %c0_i32_0 = arith.constant 0 : i32
    %1 = arith.cmpi eq, %arg1, %c0_i32_0 : i32
    %2 = arith.extui %1 : i1 to i32
    %c0_i32_1 = arith.constant 0 : i32
    %3 = arith.cmpi ne, %2, %c0_i32_1 : i32
    scf.if %3 {
      %cst_76 = arith.constant 0.000000e+00 : f32
      %307 = vector.broadcast %cst_76 : f32 to vector<8x128xf32>
      %c0_77 = arith.constant 0 : index
      %c0_78 = arith.constant 0 : index
      %308 = vector.load %arg7[%c0_77, %c0_78] : memref<8x128xf32, #tpu.memory_space<vmem>>, vector<8x128xf32>
      tpu.vector_store %arg7[%c0_77, %c0_78], %307 {strides = array<i32>} : memref<8x128xf32, #tpu.memory_space<vmem>>, vector<8x128xf32>,
      %cst_79 = arith.constant 0.000000e+00 : f32
      %309 = vector.broadcast %cst_79 : f32 to vector<8x128xf32>
      %c0_80 = arith.constant 0 : index
      %c0_81 = arith.constant 0 : index
      %310 = vector.load %arg8[%c0_80, %c0_81] : memref<8x128xf32, #tpu.memory_space<vmem>>, vector<8x128xf32>
      tpu.vector_store %arg8[%c0_80, %c0_81], %309 {strides = array<i32>} : memref<8x128xf32, #tpu.memory_space<vmem>>, vector<8x128xf32>,
    } else {
    }
    %c0 = arith.constant 0 : index
    %c0_2 = arith.constant 0 : index
    %4 = vector.load %arg3[%c0, %c0_2] : memref<128x512xbf16, #tpu.memory_space<vmem>>, vector<128x512xbf16>
    %c0_3 = arith.constant 0 : index
    %c0_4 = arith.constant 0 : index
    %5 = vector.load %arg7[%c0_3, %c0_4] : memref<8x128xf32, #tpu.memory_space<vmem>>, vector<8x128xf32>
    %c0_5 = arith.constant 0 : index
    %c0_6 = arith.constant 0 : index
    %6 = vector.load %arg8[%c0_5, %c0_6] : memref<8x128xf32, #tpu.memory_space<vmem>>, vector<8x128xf32>
    %c0_i32_7 = arith.constant 0 : i32
    %7 = arith.index_cast %c0_i32_7 : i32 to index
    %c0_8 = arith.constant 0 : index
    %c0_9 = arith.constant 0 : index
    %8 = vector.load %arg2[%7, %c0_8, %c0_9] : memref<8x8x512xbf16, #tpu.memory_space<vmem>>, vector<1x8x512xbf16>
    %9 = vector.shape_cast %8 : vector<1x8x512xbf16> to vector<8x512xbf16>
    %10 = arith.extf %9 : vector<8x512xbf16> to vector<8x512xf32>
    %11 = arith.truncf %5 : vector<8x128xf32> to vector<8x128xbf16>
    %cst = arith.constant dense<0.000000e+00> : vector<8x512xf32>
    %12 = tpu.matmul %11, %4, %cst {dimension_numbers = #tpu.dot_dimension_numbers<[1], [0], [0], [1], [0, 0, 1, 1], [], []>} : vector<8x128xbf16>, vector<128x512xbf16>, vector<8x512xf32> -> vector<8x512xf32>
    %13 = arith.addf %10, %12 : vector<8x512xf32>
    %14 = vector.extract_strided_slice %13 {offsets = [0, 0], sizes = [8, 128], strides = [1, 1]} : vector<8x512xf32> to vector<8x128xf32>
    %15 = arith.negf %14 : vector<8x128xf32>
    %16 = math.exp %15 : vector<8x128xf32>
    %cst_10 = arith.constant 1.000000e+00 : f32
    %17 = vector.broadcast %cst_10 : f32 to vector<8x128xf32>
    %18 = arith.addf %17, %16 : vector<8x128xf32>
    %19 = arith.divf %17, %18 : vector<8x128xf32>
    %20 = vector.extract_strided_slice %13 {offsets = [0, 128], sizes = [8, 128], strides = [1, 1]} : vector<8x512xf32> to vector<8x128xf32>
    %21 = arith.negf %20 : vector<8x128xf32>
    %22 = math.exp %21 : vector<8x128xf32>
    %cst_11 = arith.constant 1.000000e+00 : f32
    %23 = vector.broadcast %cst_11 : f32 to vector<8x128xf32>
    %24 = arith.addf %23, %22 : vector<8x128xf32>
    %25 = arith.divf %23, %24 : vector<8x128xf32>
    %26 = vector.extract_strided_slice %13 {offsets = [0, 256], sizes = [8, 128], strides = [1, 1]} : vector<8x512xf32> to vector<8x128xf32>
    %27 = math.tanh %26 : vector<8x128xf32>
    %28 = vector.extract_strided_slice %13 {offsets = [0, 384], sizes = [8, 128], strides = [1, 1]} : vector<8x512xf32> to vector<8x128xf32>
    %29 = arith.negf %28 : vector<8x128xf32>
    %30 = math.exp %29 : vector<8x128xf32>
    %cst_12 = arith.constant 1.000000e+00 : f32
    %31 = vector.broadcast %cst_12 : f32 to vector<8x128xf32>
    %32 = arith.addf %31, %30 : vector<8x128xf32>
    %33 = arith.divf %31, %32 : vector<8x128xf32>
    %34 = arith.mulf %25, %6 : vector<8x128xf32>
    %35 = arith.mulf %19, %27 : vector<8x128xf32>
    %36 = arith.addf %34, %35 : vector<8x128xf32>
    %37 = math.tanh %36 : vector<8x128xf32>
    %38 = arith.mulf %33, %37 : vector<8x128xf32>
    %39 = arith.truncf %38 : vector<8x128xf32> to vector<8x128xbf16>
    %40 = arith.index_cast %c0_i32_7 : i32 to index
    %c0_13 = arith.constant 0 : index
    %c0_14 = arith.constant 0 : index
    %41 = vector.load %arg4[%40, %c0_13, %c0_14] : memref<8x8x128xbf16, #tpu.memory_space<vmem>>, vector<1x8x128xbf16>
    %42 = vector.shape_cast %41 : vector<1x8x128xbf16> to vector<8x128xbf16>
    %43 = vector.shape_cast %39 : vector<8x128xbf16> to vector<1x8x128xbf16>
    tpu.vector_store %arg4[%40, %c0_13, %c0_14], %43 {strides = array<i32>} : memref<8x8x128xbf16, #tpu.memory_space<vmem>>, vector<1x8x128xbf16>,
    %c1_i32 = arith.constant 1 : i32
    %44 = arith.index_cast %c1_i32 : i32 to index
    %c0_15 = arith.constant 0 : index
    %c0_16 = arith.constant 0 : index
    %45 = vector.load %arg2[%44, %c0_15, %c0_16] : memref<8x8x512xbf16, #tpu.memory_space<vmem>>, vector<1x8x512xbf16>
    %46 = vector.shape_cast %45 : vector<1x8x512xbf16> to vector<8x512xbf16>
    %47 = arith.extf %46 : vector<8x512xbf16> to vector<8x512xf32>
    %48 = arith.truncf %38 : vector<8x128xf32> to vector<8x128xbf16>
    %cst_17 = arith.constant dense<0.000000e+00> : vector<8x512xf32>
    %49 = tpu.matmul %48, %4, %cst_17 {dimension_numbers = #tpu.dot_dimension_numbers<[1], [0], [0], [1], [0, 0, 1, 1], [], []>} : vector<8x128xbf16>, vector<128x512xbf16>, vector<8x512xf32> -> vector<8x512xf32>
    %50 = arith.addf %47, %49 : vector<8x512xf32>
    %51 = vector.extract_strided_slice %50 {offsets = [0, 0], sizes = [8, 128], strides = [1, 1]} : vector<8x512xf32> to vector<8x128xf32>
    %52 = arith.negf %51 : vector<8x128xf32>
    %53 = math.exp %52 : vector<8x128xf32>
    %cst_18 = arith.constant 1.000000e+00 : f32
    %54 = vector.broadcast %cst_18 : f32 to vector<8x128xf32>
    %55 = arith.addf %54, %53 : vector<8x128xf32>
    %56 = arith.divf %54, %55 : vector<8x128xf32>
    %57 = vector.extract_strided_slice %50 {offsets = [0, 128], sizes = [8, 128], strides = [1, 1]} : vector<8x512xf32> to vector<8x128xf32>
    %58 = arith.negf %57 : vector<8x128xf32>
    %59 = math.exp %58 : vector<8x128xf32>
    %cst_19 = arith.constant 1.000000e+00 : f32
    %60 = vector.broadcast %cst_19 : f32 to vector<8x128xf32>
    %61 = arith.addf %60, %59 : vector<8x128xf32>
    %62 = arith.divf %60, %61 : vector<8x128xf32>
    %63 = vector.extract_strided_slice %50 {offsets = [0, 256], sizes = [8, 128], strides = [1, 1]} : vector<8x512xf32> to vector<8x128xf32>
    %64 = math.tanh %63 : vector<8x128xf32>
    %65 = vector.extract_strided_slice %50 {offsets = [0, 384], sizes = [8, 128], strides = [1, 1]} : vector<8x512xf32> to vector<8x128xf32>
    %66 = arith.negf %65 : vector<8x128xf32>
    %67 = math.exp %66 : vector<8x128xf32>
    %cst_20 = arith.constant 1.000000e+00 : f32
    %68 = vector.broadcast %cst_20 : f32 to vector<8x128xf32>
    %69 = arith.addf %68, %67 : vector<8x128xf32>
    %70 = arith.divf %68, %69 : vector<8x128xf32>
    %71 = arith.mulf %62, %36 : vector<8x128xf32>
    %72 = arith.mulf %56, %64 : vector<8x128xf32>
    %73 = arith.addf %71, %72 : vector<8x128xf32>
    %74 = math.tanh %73 : vector<8x128xf32>
    %75 = arith.mulf %70, %74 : vector<8x128xf32>
    %76 = arith.truncf %75 : vector<8x128xf32> to vector<8x128xbf16>
    %77 = arith.index_cast %c1_i32 : i32 to index
    %c0_21 = arith.constant 0 : index
    %c0_22 = arith.constant 0 : index
    %78 = vector.load %arg4[%77, %c0_21, %c0_22] : memref<8x8x128xbf16, #tpu.memory_space<vmem>>, vector<1x8x128xbf16>
    %79 = vector.shape_cast %78 : vector<1x8x128xbf16> to vector<8x128xbf16>
    %80 = vector.shape_cast %76 : vector<8x128xbf16> to vector<1x8x128xbf16>
    tpu.vector_store %arg4[%77, %c0_21, %c0_22], %80 {strides = array<i32>} : memref<8x8x128xbf16, #tpu.memory_space<vmem>>, vector<1x8x128xbf16>,
    %c2_i32 = arith.constant 2 : i32
    %81 = arith.index_cast %c2_i32 : i32 to index
    %c0_23 = arith.constant 0 : index
    %c0_24 = arith.constant 0 : index
    %82 = vector.load %arg2[%81, %c0_23, %c0_24] : memref<8x8x512xbf16, #tpu.memory_space<vmem>>, vector<1x8x512xbf16>
    %83 = vector.shape_cast %82 : vector<1x8x512xbf16> to vector<8x512xbf16>
    %84 = arith.extf %83 : vector<8x512xbf16> to vector<8x512xf32>
    %85 = arith.truncf %75 : vector<8x128xf32> to vector<8x128xbf16>
    %cst_25 = arith.constant dense<0.000000e+00> : vector<8x512xf32>
    %86 = tpu.matmul %85, %4, %cst_25 {dimension_numbers = #tpu.dot_dimension_numbers<[1], [0], [0], [1], [0, 0, 1, 1], [], []>} : vector<8x128xbf16>, vector<128x512xbf16>, vector<8x512xf32> -> vector<8x512xf32>
    %87 = arith.addf %84, %86 : vector<8x512xf32>
    %88 = vector.extract_strided_slice %87 {offsets = [0, 0], sizes = [8, 128], strides = [1, 1]} : vector<8x512xf32> to vector<8x128xf32>
    %89 = arith.negf %88 : vector<8x128xf32>
    %90 = math.exp %89 : vector<8x128xf32>
    %cst_26 = arith.constant 1.000000e+00 : f32
    %91 = vector.broadcast %cst_26 : f32 to vector<8x128xf32>
    %92 = arith.addf %91, %90 : vector<8x128xf32>
    %93 = arith.divf %91, %92 : vector<8x128xf32>
    %94 = vector.extract_strided_slice %87 {offsets = [0, 128], sizes = [8, 128], strides = [1, 1]} : vector<8x512xf32> to vector<8x128xf32>
    %95 = arith.negf %94 : vector<8x128xf32>
    %96 = math.exp %95 : vector<8x128xf32>
    %cst_27 = arith.constant 1.000000e+00 : f32
    %97 = vector.broadcast %cst_27 : f32 to vector<8x128xf32>
    %98 = arith.addf %97, %96 : vector<8x128xf32>
    %99 = arith.divf %97, %98 : vector<8x128xf32>
    %100 = vector.extract_strided_slice %87 {offsets = [0, 256], sizes = [8, 128], strides = [1, 1]} : vector<8x512xf32> to vector<8x128xf32>
    %101 = math.tanh %100 : vector<8x128xf32>
    %102 = vector.extract_strided_slice %87 {offsets = [0, 384], sizes = [8, 128], strides = [1, 1]} : vector<8x512xf32> to vector<8x128xf32>
    %103 = arith.negf %102 : vector<8x128xf32>
    %104 = math.exp %103 : vector<8x128xf32>
    %cst_28 = arith.constant 1.000000e+00 : f32
    %105 = vector.broadcast %cst_28 : f32 to vector<8x128xf32>
    %106 = arith.addf %105, %104 : vector<8x128xf32>
    %107 = arith.divf %105, %106 : vector<8x128xf32>
    %108 = arith.mulf %99, %73 : vector<8x128xf32>
    %109 = arith.mulf %93, %101 : vector<8x128xf32>
    %110 = arith.addf %108, %109 : vector<8x128xf32>
    %111 = math.tanh %110 : vector<8x128xf32>
    %112 = arith.mulf %107, %111 : vector<8x128xf32>
    %113 = arith.truncf %112 : vector<8x128xf32> to vector<8x128xbf16>
    %114 = arith.index_cast %c2_i32 : i32 to index
    %c0_29 = arith.constant 0 : index
    %c0_30 = arith.constant 0 : index
    %115 = vector.load %arg4[%114, %c0_29, %c0_30] : memref<8x8x128xbf16, #tpu.memory_space<vmem>>, vector<1x8x128xbf16>
    %116 = vector.shape_cast %115 : vector<1x8x128xbf16> to vector<8x128xbf16>
    %117 = vector.shape_cast %113 : vector<8x128xbf16> to vector<1x8x128xbf16>
    tpu.vector_store %arg4[%114, %c0_29, %c0_30], %117 {strides = array<i32>} : memref<8x8x128xbf16, #tpu.memory_space<vmem>>, vector<1x8x128xbf16>,
    %c3_i32 = arith.constant 3 : i32
    %118 = arith.index_cast %c3_i32 : i32 to index
    %c0_31 = arith.constant 0 : index
    %c0_32 = arith.constant 0 : index
    %119 = vector.load %arg2[%118, %c0_31, %c0_32] : memref<8x8x512xbf16, #tpu.memory_space<vmem>>, vector<1x8x512xbf16>
    %120 = vector.shape_cast %119 : vector<1x8x512xbf16> to vector<8x512xbf16>
    %121 = arith.extf %120 : vector<8x512xbf16> to vector<8x512xf32>
    %122 = arith.truncf %112 : vector<8x128xf32> to vector<8x128xbf16>
    %cst_33 = arith.constant dense<0.000000e+00> : vector<8x512xf32>
    %123 = tpu.matmul %122, %4, %cst_33 {dimension_numbers = #tpu.dot_dimension_numbers<[1], [0], [0], [1], [0, 0, 1, 1], [], []>} : vector<8x128xbf16>, vector<128x512xbf16>, vector<8x512xf32> -> vector<8x512xf32>
    %124 = arith.addf %121, %123 : vector<8x512xf32>
    %125 = vector.extract_strided_slice %124 {offsets = [0, 0], sizes = [8, 128], strides = [1, 1]} : vector<8x512xf32> to vector<8x128xf32>
    %126 = arith.negf %125 : vector<8x128xf32>
    %127 = math.exp %126 : vector<8x128xf32>
    %cst_34 = arith.constant 1.000000e+00 : f32
    %128 = vector.broadcast %cst_34 : f32 to vector<8x128xf32>
    %129 = arith.addf %128, %127 : vector<8x128xf32>
    %130 = arith.divf %128, %129 : vector<8x128xf32>
    %131 = vector.extract_strided_slice %124 {offsets = [0, 128], sizes = [8, 128], strides = [1, 1]} : vector<8x512xf32> to vector<8x128xf32>
    %132 = arith.negf %131 : vector<8x128xf32>
    %133 = math.exp %132 : vector<8x128xf32>
    %cst_35 = arith.constant 1.000000e+00 : f32
    %134 = vector.broadcast %cst_35 : f32 to vector<8x128xf32>
    %135 = arith.addf %134, %133 : vector<8x128xf32>
    %136 = arith.divf %134, %135 : vector<8x128xf32>
    %137 = vector.extract_strided_slice %124 {offsets = [0, 256], sizes = [8, 128], strides = [1, 1]} : vector<8x512xf32> to vector<8x128xf32>
    %138 = math.tanh %137 : vector<8x128xf32>
    %139 = vector.extract_strided_slice %124 {offsets = [0, 384], sizes = [8, 128], strides = [1, 1]} : vector<8x512xf32> to vector<8x128xf32>
    %140 = arith.negf %139 : vector<8x128xf32>
    %141 = math.exp %140 : vector<8x128xf32>
    %cst_36 = arith.constant 1.000000e+00 : f32
    %142 = vector.broadcast %cst_36 : f32 to vector<8x128xf32>
    %143 = arith.addf %142, %141 : vector<8x128xf32>
    %144 = arith.divf %142, %143 : vector<8x128xf32>
    %145 = arith.mulf %136, %110 : vector<8x128xf32>
    %146 = arith.mulf %130, %138 : vector<8x128xf32>
    %147 = arith.addf %145, %146 : vector<8x128xf32>
    %148 = math.tanh %147 : vector<8x128xf32>
    %149 = arith.mulf %144, %148 : vector<8x128xf32>
    %150 = arith.truncf %149 : vector<8x128xf32> to vector<8x128xbf16>
    %151 = arith.index_cast %c3_i32 : i32 to index
    %c0_37 = arith.constant 0 : index
    %c0_38 = arith.constant 0 : index
    %152 = vector.load %arg4[%151, %c0_37, %c0_38] : memref<8x8x128xbf16, #tpu.memory_space<vmem>>, vector<1x8x128xbf16>
    %153 = vector.shape_cast %152 : vector<1x8x128xbf16> to vector<8x128xbf16>
    %154 = vector.shape_cast %150 : vector<8x128xbf16> to vector<1x8x128xbf16>
    tpu.vector_store %arg4[%151, %c0_37, %c0_38], %154 {strides = array<i32>} : memref<8x8x128xbf16, #tpu.memory_space<vmem>>, vector<1x8x128xbf16>,
    %c4_i32 = arith.constant 4 : i32
    %155 = arith.index_cast %c4_i32 : i32 to index
    %c0_39 = arith.constant 0 : index
    %c0_40 = arith.constant 0 : index
    %156 = vector.load %arg2[%155, %c0_39, %c0_40] : memref<8x8x512xbf16, #tpu.memory_space<vmem>>, vector<1x8x512xbf16>
    %157 = vector.shape_cast %156 : vector<1x8x512xbf16> to vector<8x512xbf16>
    %158 = arith.extf %157 : vector<8x512xbf16> to vector<8x512xf32>
    %159 = arith.truncf %149 : vector<8x128xf32> to vector<8x128xbf16>
    %cst_41 = arith.constant dense<0.000000e+00> : vector<8x512xf32>
    %160 = tpu.matmul %159, %4, %cst_41 {dimension_numbers = #tpu.dot_dimension_numbers<[1], [0], [0], [1], [0, 0, 1, 1], [], []>} : vector<8x128xbf16>, vector<128x512xbf16>, vector<8x512xf32> -> vector<8x512xf32>
    %161 = arith.addf %158, %160 : vector<8x512xf32>
    %162 = vector.extract_strided_slice %161 {offsets = [0, 0], sizes = [8, 128], strides = [1, 1]} : vector<8x512xf32> to vector<8x128xf32>
    %163 = arith.negf %162 : vector<8x128xf32>
    %164 = math.exp %163 : vector<8x128xf32>
    %cst_42 = arith.constant 1.000000e+00 : f32
    %165 = vector.broadcast %cst_42 : f32 to vector<8x128xf32>
    %166 = arith.addf %165, %164 : vector<8x128xf32>
    %167 = arith.divf %165, %166 : vector<8x128xf32>
    %168 = vector.extract_strided_slice %161 {offsets = [0, 128], sizes = [8, 128], strides = [1, 1]} : vector<8x512xf32> to vector<8x128xf32>
    %169 = arith.negf %168 : vector<8x128xf32>
    %170 = math.exp %169 : vector<8x128xf32>
    %cst_43 = arith.constant 1.000000e+00 : f32
    %171 = vector.broadcast %cst_43 : f32 to vector<8x128xf32>
    %172 = arith.addf %171, %170 : vector<8x128xf32>
    %173 = arith.divf %171, %172 : vector<8x128xf32>
    %174 = vector.extract_strided_slice %161 {offsets = [0, 256], sizes = [8, 128], strides = [1, 1]} : vector<8x512xf32> to vector<8x128xf32>
    %175 = math.tanh %174 : vector<8x128xf32>
    %176 = vector.extract_strided_slice %161 {offsets = [0, 384], sizes = [8, 128], strides = [1, 1]} : vector<8x512xf32> to vector<8x128xf32>
    %177 = arith.negf %176 : vector<8x128xf32>
    %178 = math.exp %177 : vector<8x128xf32>
    %cst_44 = arith.constant 1.000000e+00 : f32
    %179 = vector.broadcast %cst_44 : f32 to vector<8x128xf32>
    %180 = arith.addf %179, %178 : vector<8x128xf32>
    %181 = arith.divf %179, %180 : vector<8x128xf32>
    %182 = arith.mulf %173, %147 : vector<8x128xf32>
    %183 = arith.mulf %167, %175 : vector<8x128xf32>
    %184 = arith.addf %182, %183 : vector<8x128xf32>
    %185 = math.tanh %184 : vector<8x128xf32>
    %186 = arith.mulf %181, %185 : vector<8x128xf32>
    %187 = arith.truncf %186 : vector<8x128xf32> to vector<8x128xbf16>
    %188 = arith.index_cast %c4_i32 : i32 to index
    %c0_45 = arith.constant 0 : index
    %c0_46 = arith.constant 0 : index
    %189 = vector.load %arg4[%188, %c0_45, %c0_46] : memref<8x8x128xbf16, #tpu.memory_space<vmem>>, vector<1x8x128xbf16>
    %190 = vector.shape_cast %189 : vector<1x8x128xbf16> to vector<8x128xbf16>
    %191 = vector.shape_cast %187 : vector<8x128xbf16> to vector<1x8x128xbf16>
    tpu.vector_store %arg4[%188, %c0_45, %c0_46], %191 {strides = array<i32>} : memref<8x8x128xbf16, #tpu.memory_space<vmem>>, vector<1x8x128xbf16>,
    %c5_i32 = arith.constant 5 : i32
    %192 = arith.index_cast %c5_i32 : i32 to index
    %c0_47 = arith.constant 0 : index
    %c0_48 = arith.constant 0 : index
    %193 = vector.load %arg2[%192, %c0_47, %c0_48] : memref<8x8x512xbf16, #tpu.memory_space<vmem>>, vector<1x8x512xbf16>
    %194 = vector.shape_cast %193 : vector<1x8x512xbf16> to vector<8x512xbf16>
    %195 = arith.extf %194 : vector<8x512xbf16> to vector<8x512xf32>
    %196 = arith.truncf %186 : vector<8x128xf32> to vector<8x128xbf16>
    %cst_49 = arith.constant dense<0.000000e+00> : vector<8x512xf32>
    %197 = tpu.matmul %196, %4, %cst_49 {dimension_numbers = #tpu.dot_dimension_numbers<[1], [0], [0], [1], [0, 0, 1, 1], [], []>} : vector<8x128xbf16>, vector<128x512xbf16>, vector<8x512xf32> -> vector<8x512xf32>
    %198 = arith.addf %195, %197 : vector<8x512xf32>
    %199 = vector.extract_strided_slice %198 {offsets = [0, 0], sizes = [8, 128], strides = [1, 1]} : vector<8x512xf32> to vector<8x128xf32>
    %200 = arith.negf %199 : vector<8x128xf32>
    %201 = math.exp %200 : vector<8x128xf32>
    %cst_50 = arith.constant 1.000000e+00 : f32
    %202 = vector.broadcast %cst_50 : f32 to vector<8x128xf32>
    %203 = arith.addf %202, %201 : vector<8x128xf32>
    %204 = arith.divf %202, %203 : vector<8x128xf32>
    %205 = vector.extract_strided_slice %198 {offsets = [0, 128], sizes = [8, 128], strides = [1, 1]} : vector<8x512xf32> to vector<8x128xf32>
    %206 = arith.negf %205 : vector<8x128xf32>
    %207 = math.exp %206 : vector<8x128xf32>
    %cst_51 = arith.constant 1.000000e+00 : f32
    %208 = vector.broadcast %cst_51 : f32 to vector<8x128xf32>
    %209 = arith.addf %208, %207 : vector<8x128xf32>
    %210 = arith.divf %208, %209 : vector<8x128xf32>
    %211 = vector.extract_strided_slice %198 {offsets = [0, 256], sizes = [8, 128], strides = [1, 1]} : vector<8x512xf32> to vector<8x128xf32>
    %212 = math.tanh %211 : vector<8x128xf32>
    %213 = vector.extract_strided_slice %198 {offsets = [0, 384], sizes = [8, 128], strides = [1, 1]} : vector<8x512xf32> to vector<8x128xf32>
    %214 = arith.negf %213 : vector<8x128xf32>
    %215 = math.exp %214 : vector<8x128xf32>
    %cst_52 = arith.constant 1.000000e+00 : f32
    %216 = vector.broadcast %cst_52 : f32 to vector<8x128xf32>
    %217 = arith.addf %216, %215 : vector<8x128xf32>
    %218 = arith.divf %216, %217 : vector<8x128xf32>
    %219 = arith.mulf %210, %184 : vector<8x128xf32>
    %220 = arith.mulf %204, %212 : vector<8x128xf32>
    %221 = arith.addf %219, %220 : vector<8x128xf32>
    %222 = math.tanh %221 : vector<8x128xf32>
    %223 = arith.mulf %218, %222 : vector<8x128xf32>
    %224 = arith.truncf %223 : vector<8x128xf32> to vector<8x128xbf16>
    %225 = arith.index_cast %c5_i32 : i32 to index
    %c0_53 = arith.constant 0 : index
    %c0_54 = arith.constant 0 : index
    %226 = vector.load %arg4[%225, %c0_53, %c0_54] : memref<8x8x128xbf16, #tpu.memory_space<vmem>>, vector<1x8x128xbf16>
    %227 = vector.shape_cast %226 : vector<1x8x128xbf16> to vector<8x128xbf16>
    %228 = vector.shape_cast %224 : vector<8x128xbf16> to vector<1x8x128xbf16>
    tpu.vector_store %arg4[%225, %c0_53, %c0_54], %228 {strides = array<i32>} : memref<8x8x128xbf16, #tpu.memory_space<vmem>>, vector<1x8x128xbf16>,
    %c6_i32 = arith.constant 6 : i32
    %229 = arith.index_cast %c6_i32 : i32 to index
    %c0_55 = arith.constant 0 : index
    %c0_56 = arith.constant 0 : index
    %230 = vector.load %arg2[%229, %c0_55, %c0_56] : memref<8x8x512xbf16, #tpu.memory_space<vmem>>, vector<1x8x512xbf16>
    %231 = vector.shape_cast %230 : vector<1x8x512xbf16> to vector<8x512xbf16>
    %232 = arith.extf %231 : vector<8x512xbf16> to vector<8x512xf32>
    %233 = arith.truncf %223 : vector<8x128xf32> to vector<8x128xbf16>
    %cst_57 = arith.constant dense<0.000000e+00> : vector<8x512xf32>
    %234 = tpu.matmul %233, %4, %cst_57 {dimension_numbers = #tpu.dot_dimension_numbers<[1], [0], [0], [1], [0, 0, 1, 1], [], []>} : vector<8x128xbf16>, vector<128x512xbf16>, vector<8x512xf32> -> vector<8x512xf32>
    %235 = arith.addf %232, %234 : vector<8x512xf32>
    %236 = vector.extract_strided_slice %235 {offsets = [0, 0], sizes = [8, 128], strides = [1, 1]} : vector<8x512xf32> to vector<8x128xf32>
    %237 = arith.negf %236 : vector<8x128xf32>
    %238 = math.exp %237 : vector<8x128xf32>
    %cst_58 = arith.constant 1.000000e+00 : f32
    %239 = vector.broadcast %cst_58 : f32 to vector<8x128xf32>
    %240 = arith.addf %239, %238 : vector<8x128xf32>
    %241 = arith.divf %239, %240 : vector<8x128xf32>
    %242 = vector.extract_strided_slice %235 {offsets = [0, 128], sizes = [8, 128], strides = [1, 1]} : vector<8x512xf32> to vector<8x128xf32>
    %243 = arith.negf %242 : vector<8x128xf32>
    %244 = math.exp %243 : vector<8x128xf32>
    %cst_59 = arith.constant 1.000000e+00 : f32
    %245 = vector.broadcast %cst_59 : f32 to vector<8x128xf32>
    %246 = arith.addf %245, %244 : vector<8x128xf32>
    %247 = arith.divf %245, %246 : vector<8x128xf32>
    %248 = vector.extract_strided_slice %235 {offsets = [0, 256], sizes = [8, 128], strides = [1, 1]} : vector<8x512xf32> to vector<8x128xf32>
    %249 = math.tanh %248 : vector<8x128xf32>
    %250 = vector.extract_strided_slice %235 {offsets = [0, 384], sizes = [8, 128], strides = [1, 1]} : vector<8x512xf32> to vector<8x128xf32>
    %251 = arith.negf %250 : vector<8x128xf32>
    %252 = math.exp %251 : vector<8x128xf32>
    %cst_60 = arith.constant 1.000000e+00 : f32
    %253 = vector.broadcast %cst_60 : f32 to vector<8x128xf32>
    %254 = arith.addf %253, %252 : vector<8x128xf32>
    %255 = arith.divf %253, %254 : vector<8x128xf32>
    %256 = arith.mulf %247, %221 : vector<8x128xf32>
    %257 = arith.mulf %241, %249 : vector<8x128xf32>
    %258 = arith.addf %256, %257 : vector<8x128xf32>
    %259 = math.tanh %258 : vector<8x128xf32>
    %260 = arith.mulf %255, %259 : vector<8x128xf32>
    %261 = arith.truncf %260 : vector<8x128xf32> to vector<8x128xbf16>
    %262 = arith.index_cast %c6_i32 : i32 to index
    %c0_61 = arith.constant 0 : index
    %c0_62 = arith.constant 0 : index
    %263 = vector.load %arg4[%262, %c0_61, %c0_62] : memref<8x8x128xbf16, #tpu.memory_space<vmem>>, vector<1x8x128xbf16>
    %264 = vector.shape_cast %263 : vector<1x8x128xbf16> to vector<8x128xbf16>
    %265 = vector.shape_cast %261 : vector<8x128xbf16> to vector<1x8x128xbf16>
    tpu.vector_store %arg4[%262, %c0_61, %c0_62], %265 {strides = array<i32>} : memref<8x8x128xbf16, #tpu.memory_space<vmem>>, vector<1x8x128xbf16>,
    %c7_i32 = arith.constant 7 : i32
    %266 = arith.index_cast %c7_i32 : i32 to index
    %c0_63 = arith.constant 0 : index
    %c0_64 = arith.constant 0 : index
    %267 = vector.load %arg2[%266, %c0_63, %c0_64] : memref<8x8x512xbf16, #tpu.memory_space<vmem>>, vector<1x8x512xbf16>
    %268 = vector.shape_cast %267 : vector<1x8x512xbf16> to vector<8x512xbf16>
    %269 = arith.extf %268 : vector<8x512xbf16> to vector<8x512xf32>
    %270 = arith.truncf %260 : vector<8x128xf32> to vector<8x128xbf16>
    %cst_65 = arith.constant dense<0.000000e+00> : vector<8x512xf32>
    %271 = tpu.matmul %270, %4, %cst_65 {dimension_numbers = #tpu.dot_dimension_numbers<[1], [0], [0], [1], [0, 0, 1, 1], [], []>} : vector<8x128xbf16>, vector<128x512xbf16>, vector<8x512xf32> -> vector<8x512xf32>
    %272 = arith.addf %269, %271 : vector<8x512xf32>
    %273 = vector.extract_strided_slice %272 {offsets = [0, 0], sizes = [8, 128], strides = [1, 1]} : vector<8x512xf32> to vector<8x128xf32>
    %274 = arith.negf %273 : vector<8x128xf32>
    %275 = math.exp %274 : vector<8x128xf32>
    %cst_66 = arith.constant 1.000000e+00 : f32
    %276 = vector.broadcast %cst_66 : f32 to vector<8x128xf32>
    %277 = arith.addf %276, %275 : vector<8x128xf32>
    %278 = arith.divf %276, %277 : vector<8x128xf32>
    %279 = vector.extract_strided_slice %272 {offsets = [0, 128], sizes = [8, 128], strides = [1, 1]} : vector<8x512xf32> to vector<8x128xf32>
    %280 = arith.negf %279 : vector<8x128xf32>
    %281 = math.exp %280 : vector<8x128xf32>
    %cst_67 = arith.constant 1.000000e+00 : f32
    %282 = vector.broadcast %cst_67 : f32 to vector<8x128xf32>
    %283 = arith.addf %282, %281 : vector<8x128xf32>
    %284 = arith.divf %282, %283 : vector<8x128xf32>
    %285 = vector.extract_strided_slice %272 {offsets = [0, 256], sizes = [8, 128], strides = [1, 1]} : vector<8x512xf32> to vector<8x128xf32>
    %286 = math.tanh %285 : vector<8x128xf32>
    %287 = vector.extract_strided_slice %272 {offsets = [0, 384], sizes = [8, 128], strides = [1, 1]} : vector<8x512xf32> to vector<8x128xf32>
    %288 = arith.negf %287 : vector<8x128xf32>
    %289 = math.exp %288 : vector<8x128xf32>
    %cst_68 = arith.constant 1.000000e+00 : f32
    %290 = vector.broadcast %cst_68 : f32 to vector<8x128xf32>
    %291 = arith.addf %290, %289 : vector<8x128xf32>
    %292 = arith.divf %290, %291 : vector<8x128xf32>
    %293 = arith.mulf %284, %258 : vector<8x128xf32>
    %294 = arith.mulf %278, %286 : vector<8x128xf32>
    %295 = arith.addf %293, %294 : vector<8x128xf32>
    %296 = math.tanh %295 : vector<8x128xf32>
    %297 = arith.mulf %292, %296 : vector<8x128xf32>
    %298 = arith.truncf %297 : vector<8x128xf32> to vector<8x128xbf16>
    %299 = arith.index_cast %c7_i32 : i32 to index
    %c0_69 = arith.constant 0 : index
    %c0_70 = arith.constant 0 : index
    %300 = vector.load %arg4[%299, %c0_69, %c0_70] : memref<8x8x128xbf16, #tpu.memory_space<vmem>>, vector<1x8x128xbf16>
    %301 = vector.shape_cast %300 : vector<1x8x128xbf16> to vector<8x128xbf16>
    %302 = vector.shape_cast %298 : vector<8x128xbf16> to vector<1x8x128xbf16>
    tpu.vector_store %arg4[%299, %c0_69, %c0_70], %302 {strides = array<i32>} : memref<8x8x128xbf16, #tpu.memory_space<vmem>>, vector<1x8x128xbf16>,
    %c8_i32 = arith.constant 8 : i32
    %c0_71 = arith.constant 0 : index
    %c0_72 = arith.constant 0 : index
    %303 = vector.load %arg7[%c0_71, %c0_72] : memref<8x128xf32, #tpu.memory_space<vmem>>, vector<8x128xf32>
    tpu.vector_store %arg7[%c0_71, %c0_72], %297 {strides = array<i32>} : memref<8x128xf32, #tpu.memory_space<vmem>>, vector<8x128xf32>,
    %c0_73 = arith.constant 0 : index
    %c0_74 = arith.constant 0 : index
    %304 = vector.load %arg8[%c0_73, %c0_74] : memref<8x128xf32, #tpu.memory_space<vmem>>, vector<8x128xf32>
    tpu.vector_store %arg8[%c0_73, %c0_74], %295 {strides = array<i32>} : memref<8x128xf32, #tpu.memory_space<vmem>>, vector<8x128xf32>,
    %305 = arith.extui %0 : i1 to i32
    %c0_i32_75 = arith.constant 0 : i32
    %306 = arith.cmpi ne, %305, %c0_i32_75 : i32
    scf.if %306 {
      %c0_76 = arith.constant 0 : index
      %c0_77 = arith.constant 0 : index
      %307 = vector.load %arg5[%c0_76, %c0_77] : memref<8x128xf32, #tpu.memory_space<vmem>>, vector<8x128xf32>
      tpu.vector_store %arg5[%c0_76, %c0_77], %297 {strides = array<i32>} : memref<8x128xf32, #tpu.memory_space<vmem>>, vector<8x128xf32>,
      %c0_78 = arith.constant 0 : index
      %c0_79 = arith.constant 0 : index
      %308 = vector.load %arg6[%c0_78, %c0_79] : memref<8x128xf32, #tpu.memory_space<vmem>>, vector<8x128xf32>
      tpu.vector_store %arg6[%c0_78, %c0_79], %295 {strides = array<i32>} : memref<8x128xf32, #tpu.memory_space<vmem>>, vector<8x128xf32>,
    } else {
    }
    return
  }
  func.func @transform_0(%arg0: i32, %arg1: i32) -> (i32, i32, i32) {
    %c0_i32 = arith.constant 0 : i32
    %c0_i32_0 = arith.constant 0 : i32
    return %arg1, %arg0, %c0_i32 : i32, i32, i32
  }
  func.func @transform_1(%arg0: i32, %arg1: i32) -> (i32, i32) {
    %c0_i32 = arith.constant 0 : i32
    %c0_i32_0 = arith.constant 0 : i32
    %c0_i32_1 = arith.constant 0 : i32
    return %c0_i32, %c0_i32_0 : i32, i32
  }
  func.func @transform_2(%arg0: i32, %arg1: i32) -> (i32, i32, i32) {
    %c0_i32 = arith.constant 0 : i32
    %c0_i32_0 = arith.constant 0 : i32
    return %arg1, %arg0, %c0_i32 : i32, i32, i32
  }
  func.func @transform_3(%arg0: i32, %arg1: i32) -> (i32, i32) {
    %c0_i32 = arith.constant 0 : i32
    %c0_i32_0 = arith.constant 0 : i32
    return %arg0, %c0_i32 : i32, i32
  }
  func.func @transform_4(%arg0: i32, %arg1: i32) -> (i32, i32) {
    %c0_i32 = arith.constant 0 : i32
    %c0_i32_0 = arith.constant 0 : i32
    return %arg0, %c0_i32 : i32, i32
  }
}

module attributes {stable_mosaic.version = 11 : i64} {
  func.func @_lstm_recurrent_kernel(%arg0: i32, %arg1: i32, %arg2: memref<8x8x512xbf16, #tpu.memory_space<vmem>>, %arg3: memref<128x512xbf16, #tpu.memory_space<vmem>>, %arg4: memref<8x8x128xbf16, #tpu.memory_space<vmem>>, %arg5: memref<8x128xf32, #tpu.memory_space<vmem>>, %arg6: memref<8x128xf32, #tpu.memory_space<vmem>>, %arg7: memref<8x128xf32, #tpu.memory_space<vmem>>, %arg8: memref<8x128xf32, #tpu.memory_space<vmem>>) attributes {dimension_semantics = [#tpu.dimension_semantics<parallel>, #tpu.dimension_semantics<arbitrary>], iteration_bounds = array<i64: 1, 1>, scalar_prefetch = 0 : i64, scratch_operands = 2 : i64, tpu.core_type = #tpu.core_type<tc>, window_params = [{transform_indices = @transform_0, window_bounds = array<i64: 8, 8, 512>}, {pipeline_mode = #tpu.pipeline_mode<synchronous>, transform_indices = @transform_1, window_bounds = array<i64: 128, 512>}, {transform_indices = @transform_2, window_bounds = array<i64: 8, 8, 128>}, {transform_indices = @transform_3, window_bounds = array<i64: 8, 128>}, {transform_indices = @transform_4, window_bounds = array<i64: 8, 128>}]} {
    %c0_i32 = arith.constant 0 : i32
    %0 = arith.cmpi eq, %arg1, %c0_i32 : i32
    %c0_i32_0 = arith.constant 0 : i32
    %1 = arith.cmpi eq, %arg1, %c0_i32_0 : i32
    %2 = arith.extui %1 : i1 to i32
    %c0_i32_1 = arith.constant 0 : i32
    %3 = arith.cmpi ne, %2, %c0_i32_1 : i32
    scf.if %3 {
      %cst_76 = arith.constant 0.000000e+00 : f32
      %307 = vector.broadcast %cst_76 : f32 to vector<8x128xf32>
      %c0_77 = arith.constant 0 : index
      %c0_78 = arith.constant 0 : index
      %308 = vector.load %arg7[%c0_77, %c0_78] : memref<8x128xf32, #tpu.memory_space<vmem>>, vector<8x128xf32>
      tpu.vector_store %arg7[%c0_77, %c0_78], %307 {strides = array<i32>} : memref<8x128xf32, #tpu.memory_space<vmem>>, vector<8x128xf32>,
      %cst_79 = arith.constant 0.000000e+00 : f32
      %309 = vector.broadcast %cst_79 : f32 to vector<8x128xf32>
      %c0_80 = arith.constant 0 : index
      %c0_81 = arith.constant 0 : index
      %310 = vector.load %arg8[%c0_80, %c0_81] : memref<8x128xf32, #tpu.memory_space<vmem>>, vector<8x128xf32>
      tpu.vector_store %arg8[%c0_80, %c0_81], %309 {strides = array<i32>} : memref<8x128xf32, #tpu.memory_space<vmem>>, vector<8x128xf32>,
    } else {
    }
    %c0 = arith.constant 0 : index
    %c0_2 = arith.constant 0 : index
    %4 = vector.load %arg3[%c0, %c0_2] : memref<128x512xbf16, #tpu.memory_space<vmem>>, vector<128x512xbf16>
    %c0_3 = arith.constant 0 : index
    %c0_4 = arith.constant 0 : index
    %5 = vector.load %arg7[%c0_3, %c0_4] : memref<8x128xf32, #tpu.memory_space<vmem>>, vector<8x128xf32>
    %c0_5 = arith.constant 0 : index
    %c0_6 = arith.constant 0 : index
    %6 = vector.load %arg8[%c0_5, %c0_6] : memref<8x128xf32, #tpu.memory_space<vmem>>, vector<8x128xf32>
    %c0_i32_7 = arith.constant 0 : i32
    %7 = arith.index_cast %c0_i32_7 : i32 to index
    %c0_8 = arith.constant 0 : index
    %c0_9 = arith.constant 0 : index
    %8 = vector.load %arg2[%7, %c0_8, %c0_9] : memref<8x8x512xbf16, #tpu.memory_space<vmem>>, vector<1x8x512xbf16>
    %9 = vector.shape_cast %8 : vector<1x8x512xbf16> to vector<8x512xbf16>
    %10 = arith.extf %9 : vector<8x512xbf16> to vector<8x512xf32>
    %11 = arith.truncf %5 : vector<8x128xf32> to vector<8x128xbf16>
    %cst = arith.constant dense<0.000000e+00> : vector<8x512xf32>
    %12 = tpu.matmul %11, %4, %cst {dimension_numbers = #tpu.dot_dimension_numbers<[1], [0], [0], [1], [0, 0, 1, 1], [], []>} : vector<8x128xbf16>, vector<128x512xbf16>, vector<8x512xf32> -> vector<8x512xf32>
    %13 = arith.addf %10, %12 : vector<8x512xf32>
    %14 = vector.extract_strided_slice %13 {offsets = [0, 0], sizes = [8, 128], strides = [1, 1]} : vector<8x512xf32> to vector<8x128xf32>
    %15 = arith.negf %14 : vector<8x128xf32>
    %16 = math.exp %15 : vector<8x128xf32>
    %cst_10 = arith.constant 1.000000e+00 : f32
    %17 = vector.broadcast %cst_10 : f32 to vector<8x128xf32>
    %18 = arith.addf %17, %16 : vector<8x128xf32>
    %19 = arith.divf %17, %18 : vector<8x128xf32>
    %20 = vector.extract_strided_slice %13 {offsets = [0, 128], sizes = [8, 128], strides = [1, 1]} : vector<8x512xf32> to vector<8x128xf32>
    %21 = arith.negf %20 : vector<8x128xf32>
    %22 = math.exp %21 : vector<8x128xf32>
    %cst_11 = arith.constant 1.000000e+00 : f32
    %23 = vector.broadcast %cst_11 : f32 to vector<8x128xf32>
    %24 = arith.addf %23, %22 : vector<8x128xf32>
    %25 = arith.divf %23, %24 : vector<8x128xf32>
    %26 = vector.extract_strided_slice %13 {offsets = [0, 256], sizes = [8, 128], strides = [1, 1]} : vector<8x512xf32> to vector<8x128xf32>
    %27 = math.tanh %26 : vector<8x128xf32>
    %28 = vector.extract_strided_slice %13 {offsets = [0, 384], sizes = [8, 128], strides = [1, 1]} : vector<8x512xf32> to vector<8x128xf32>
    %29 = arith.negf %28 : vector<8x128xf32>
    %30 = math.exp %29 : vector<8x128xf32>
    %cst_12 = arith.constant 1.000000e+00 : f32
    %31 = vector.broadcast %cst_12 : f32 to vector<8x128xf32>
    %32 = arith.addf %31, %30 : vector<8x128xf32>
    %33 = arith.divf %31, %32 : vector<8x128xf32>
    %34 = arith.mulf %25, %6 : vector<8x128xf32>
    %35 = arith.mulf %19, %27 : vector<8x128xf32>
    %36 = arith.addf %34, %35 : vector<8x128xf32>
    %37 = math.tanh %36 : vector<8x128xf32>
    %38 = arith.mulf %33, %37 : vector<8x128xf32>
    %39 = arith.truncf %38 : vector<8x128xf32> to vector<8x128xbf16>
    %40 = arith.index_cast %c0_i32_7 : i32 to index
    %c0_13 = arith.constant 0 : index
    %c0_14 = arith.constant 0 : index
    %41 = vector.load %arg4[%40, %c0_13, %c0_14] : memref<8x8x128xbf16, #tpu.memory_space<vmem>>, vector<1x8x128xbf16>
    %42 = vector.shape_cast %41 : vector<1x8x128xbf16> to vector<8x128xbf16>
    %43 = vector.shape_cast %39 : vector<8x128xbf16> to vector<1x8x128xbf16>
    tpu.vector_store %arg4[%40, %c0_13, %c0_14], %43 {strides = array<i32>} : memref<8x8x128xbf16, #tpu.memory_space<vmem>>, vector<1x8x128xbf16>,
    %c1_i32 = arith.constant 1 : i32
    %44 = arith.index_cast %c1_i32 : i32 to index
    %c0_15 = arith.constant 0 : index
    %c0_16 = arith.constant 0 : index
    %45 = vector.load %arg2[%44, %c0_15, %c0_16] : memref<8x8x512xbf16, #tpu.memory_space<vmem>>, vector<1x8x512xbf16>
    %46 = vector.shape_cast %45 : vector<1x8x512xbf16> to vector<8x512xbf16>
    %47 = arith.extf %46 : vector<8x512xbf16> to vector<8x512xf32>
    %48 = arith.truncf %38 : vector<8x128xf32> to vector<8x128xbf16>
    %cst_17 = arith.constant dense<0.000000e+00> : vector<8x512xf32>
    %49 = tpu.matmul %48, %4, %cst_17 {dimension_numbers = #tpu.dot_dimension_numbers<[1], [0], [0], [1], [0, 0, 1, 1], [], []>} : vector<8x128xbf16>, vector<128x512xbf16>, vector<8x512xf32> -> vector<8x512xf32>
    %50 = arith.addf %47, %49 : vector<8x512xf32>
    %51 = vector.extract_strided_slice %50 {offsets = [0, 0], sizes = [8, 128], strides = [1, 1]} : vector<8x512xf32> to vector<8x128xf32>
    %52 = arith.negf %51 : vector<8x128xf32>
    %53 = math.exp %52 : vector<8x128xf32>
    %cst_18 = arith.constant 1.000000e+00 : f32
    %54 = vector.broadcast %cst_18 : f32 to vector<8x128xf32>
    %55 = arith.addf %54, %53 : vector<8x128xf32>
    %56 = arith.divf %54, %55 : vector<8x128xf32>
    %57 = vector.extract_strided_slice %50 {offsets = [0, 128], sizes = [8, 128], strides = [1, 1]} : vector<8x512xf32> to vector<8x128xf32>
    %58 = arith.negf %57 : vector<8x128xf32>
    %59 = math.exp %58 : vector<8x128xf32>
    %cst_19 = arith.constant 1.000000e+00 : f32
    %60 = vector.broadcast %cst_19 : f32 to vector<8x128xf32>
    %61 = arith.addf %60, %59 : vector<8x128xf32>
    %62 = arith.divf %60, %61 : vector<8x128xf32>
    %63 = vector.extract_strided_slice %50 {offsets = [0, 256], sizes = [8, 128], strides = [1, 1]} : vector<8x512xf32> to vector<8x128xf32>
    %64 = math.tanh %63 : vector<8x128xf32>
    %65 = vector.extract_strided_slice %50 {offsets = [0, 384], sizes = [8, 128], strides = [1, 1]} : vector<8x512xf32> to vector<8x128xf32>
    %66 = arith.negf %65 : vector<8x128xf32>
    %67 = math.exp %66 : vector<8x128xf32>
    %cst_20 = arith.constant 1.000000e+00 : f32
    %68 = vector.broadcast %cst_20 : f32 to vector<8x128xf32>
    %69 = arith.addf %68, %67 : vector<8x128xf32>
    %70 = arith.divf %68, %69 : vector<8x128xf32>
    %71 = arith.mulf %62, %36 : vector<8x128xf32>
    %72 = arith.mulf %56, %64 : vector<8x128xf32>
    %73 = arith.addf %71, %72 : vector<8x128xf32>
    %74 = math.tanh %73 : vector<8x128xf32>
    %75 = arith.mulf %70, %74 : vector<8x128xf32>
    %76 = arith.truncf %75 : vector<8x128xf32> to vector<8x128xbf16>
    %77 = arith.index_cast %c1_i32 : i32 to index
    %c0_21 = arith.constant 0 : index
    %c0_22 = arith.constant 0 : index
    %78 = vector.load %arg4[%77, %c0_21, %c0_22] : memref<8x8x128xbf16, #tpu.memory_space<vmem>>, vector<1x8x128xbf16>
    %79 = vector.shape_cast %78 : vector<1x8x128xbf16> to vector<8x128xbf16>
    %80 = vector.shape_cast %76 : vector<8x128xbf16> to vector<1x8x128xbf16>
    tpu.vector_store %arg4[%77, %c0_21, %c0_22], %80 {strides = array<i32>} : memref<8x8x128xbf16, #tpu.memory_space<vmem>>, vector<1x8x128xbf16>,
    %c2_i32 = arith.constant 2 : i32
    %81 = arith.index_cast %c2_i32 : i32 to index
    %c0_23 = arith.constant 0 : index
    %c0_24 = arith.constant 0 : index
    %82 = vector.load %arg2[%81, %c0_23, %c0_24] : memref<8x8x512xbf16, #tpu.memory_space<vmem>>, vector<1x8x512xbf16>
    %83 = vector.shape_cast %82 : vector<1x8x512xbf16> to vector<8x512xbf16>
    %84 = arith.extf %83 : vector<8x512xbf16> to vector<8x512xf32>
    %85 = arith.truncf %75 : vector<8x128xf32> to vector<8x128xbf16>
    %cst_25 = arith.constant dense<0.000000e+00> : vector<8x512xf32>
    %86 = tpu.matmul %85, %4, %cst_25 {dimension_numbers = #tpu.dot_dimension_numbers<[1], [0], [0], [1], [0, 0, 1, 1], [], []>} : vector<8x128xbf16>, vector<128x512xbf16>, vector<8x512xf32> -> vector<8x512xf32>
    %87 = arith.addf %84, %86 : vector<8x512xf32>
    %88 = vector.extract_strided_slice %87 {offsets = [0, 0], sizes = [8, 128], strides = [1, 1]} : vector<8x512xf32> to vector<8x128xf32>
    %89 = arith.negf %88 : vector<8x128xf32>
    %90 = math.exp %89 : vector<8x128xf32>
    %cst_26 = arith.constant 1.000000e+00 : f32
    %91 = vector.broadcast %cst_26 : f32 to vector<8x128xf32>
    %92 = arith.addf %91, %90 : vector<8x128xf32>
    %93 = arith.divf %91, %92 : vector<8x128xf32>
    %94 = vector.extract_strided_slice %87 {offsets = [0, 128], sizes = [8, 128], strides = [1, 1]} : vector<8x512xf32> to vector<8x128xf32>
    %95 = arith.negf %94 : vector<8x128xf32>
    %96 = math.exp %95 : vector<8x128xf32>
    %cst_27 = arith.constant 1.000000e+00 : f32
    %97 = vector.broadcast %cst_27 : f32 to vector<8x128xf32>
    %98 = arith.addf %97, %96 : vector<8x128xf32>
    %99 = arith.divf %97, %98 : vector<8x128xf32>
    %100 = vector.extract_strided_slice %87 {offsets = [0, 256], sizes = [8, 128], strides = [1, 1]} : vector<8x512xf32> to vector<8x128xf32>
    %101 = math.tanh %100 : vector<8x128xf32>
    %102 = vector.extract_strided_slice %87 {offsets = [0, 384], sizes = [8, 128], strides = [1, 1]} : vector<8x512xf32> to vector<8x128xf32>
    %103 = arith.negf %102 : vector<8x128xf32>
    %104 = math.exp %103 : vector<8x128xf32>
    %cst_28 = arith.constant 1.000000e+00 : f32
    %105 = vector.broadcast %cst_28 : f32 to vector<8x128xf32>
    %106 = arith.addf %105, %104 : vector<8x128xf32>
    %107 = arith.divf %105, %106 : vector<8x128xf32>
    %108 = arith.mulf %99, %73 : vector<8x128xf32>
    %109 = arith.mulf %93, %101 : vector<8x128xf32>
    %110 = arith.addf %108, %109 : vector<8x128xf32>
    %111 = math.tanh %110 : vector<8x128xf32>
    %112 = arith.mulf %107, %111 : vector<8x128xf32>
    %113 = arith.truncf %112 : vector<8x128xf32> to vector<8x128xbf16>
    %114 = arith.index_cast %c2_i32 : i32 to index
    %c0_29 = arith.constant 0 : index
    %c0_30 = arith.constant 0 : index
    %115 = vector.load %arg4[%114, %c0_29, %c0_30] : memref<8x8x128xbf16, #tpu.memory_space<vmem>>, vector<1x8x128xbf16>
    %116 = vector.shape_cast %115 : vector<1x8x128xbf16> to vector<8x128xbf16>
    %117 = vector.shape_cast %113 : vector<8x128xbf16> to vector<1x8x128xbf16>
    tpu.vector_store %arg4[%114, %c0_29, %c0_30], %117 {strides = array<i32>} : memref<8x8x128xbf16, #tpu.memory_space<vmem>>, vector<1x8x128xbf16>,
    %c3_i32 = arith.constant 3 : i32
    %118 = arith.index_cast %c3_i32 : i32 to index
    %c0_31 = arith.constant 0 : index
    %c0_32 = arith.constant 0 : index
    %119 = vector.load %arg2[%118, %c0_31, %c0_32] : memref<8x8x512xbf16, #tpu.memory_space<vmem>>, vector<1x8x512xbf16>
    %120 = vector.shape_cast %119 : vector<1x8x512xbf16> to vector<8x512xbf16>
    %121 = arith.extf %120 : vector<8x512xbf16> to vector<8x512xf32>
    %122 = arith.truncf %112 : vector<8x128xf32> to vector<8x128xbf16>
    %cst_33 = arith.constant dense<0.000000e+00> : vector<8x512xf32>
    %123 = tpu.matmul %122, %4, %cst_33 {dimension_numbers = #tpu.dot_dimension_numbers<[1], [0], [0], [1], [0, 0, 1, 1], [], []>} : vector<8x128xbf16>, vector<128x512xbf16>, vector<8x512xf32> -> vector<8x512xf32>
    %124 = arith.addf %121, %123 : vector<8x512xf32>
    %125 = vector.extract_strided_slice %124 {offsets = [0, 0], sizes = [8, 128], strides = [1, 1]} : vector<8x512xf32> to vector<8x128xf32>
    %126 = arith.negf %125 : vector<8x128xf32>
    %127 = math.exp %126 : vector<8x128xf32>
    %cst_34 = arith.constant 1.000000e+00 : f32
    %128 = vector.broadcast %cst_34 : f32 to vector<8x128xf32>
    %129 = arith.addf %128, %127 : vector<8x128xf32>
    %130 = arith.divf %128, %129 : vector<8x128xf32>
    %131 = vector.extract_strided_slice %124 {offsets = [0, 128], sizes = [8, 128], strides = [1, 1]} : vector<8x512xf32> to vector<8x128xf32>
    %132 = arith.negf %131 : vector<8x128xf32>
    %133 = math.exp %132 : vector<8x128xf32>
    %cst_35 = arith.constant 1.000000e+00 : f32
    %134 = vector.broadcast %cst_35 : f32 to vector<8x128xf32>
    %135 = arith.addf %134, %133 : vector<8x128xf32>
    %136 = arith.divf %134, %135 : vector<8x128xf32>
    %137 = vector.extract_strided_slice %124 {offsets = [0, 256], sizes = [8, 128], strides = [1, 1]} : vector<8x512xf32> to vector<8x128xf32>
    %138 = math.tanh %137 : vector<8x128xf32>
    %139 = vector.extract_strided_slice %124 {offsets = [0, 384], sizes = [8, 128], strides = [1, 1]} : vector<8x512xf32> to vector<8x128xf32>
    %140 = arith.negf %139 : vector<8x128xf32>
    %141 = math.exp %140 : vector<8x128xf32>
    %cst_36 = arith.constant 1.000000e+00 : f32
    %142 = vector.broadcast %cst_36 : f32 to vector<8x128xf32>
    %143 = arith.addf %142, %141 : vector<8x128xf32>
    %144 = arith.divf %142, %143 : vector<8x128xf32>
    %145 = arith.mulf %136, %110 : vector<8x128xf32>
    %146 = arith.mulf %130, %138 : vector<8x128xf32>
    %147 = arith.addf %145, %146 : vector<8x128xf32>
    %148 = math.tanh %147 : vector<8x128xf32>
    %149 = arith.mulf %144, %148 : vector<8x128xf32>
    %150 = arith.truncf %149 : vector<8x128xf32> to vector<8x128xbf16>
    %151 = arith.index_cast %c3_i32 : i32 to index
    %c0_37 = arith.constant 0 : index
    %c0_38 = arith.constant 0 : index
    %152 = vector.load %arg4[%151, %c0_37, %c0_38] : memref<8x8x128xbf16, #tpu.memory_space<vmem>>, vector<1x8x128xbf16>
    %153 = vector.shape_cast %152 : vector<1x8x128xbf16> to vector<8x128xbf16>
    %154 = vector.shape_cast %150 : vector<8x128xbf16> to vector<1x8x128xbf16>
    tpu.vector_store %arg4[%151, %c0_37, %c0_38], %154 {strides = array<i32>} : memref<8x8x128xbf16, #tpu.memory_space<vmem>>, vector<1x8x128xbf16>,
    %c4_i32 = arith.constant 4 : i32
    %155 = arith.index_cast %c4_i32 : i32 to index
    %c0_39 = arith.constant 0 : index
    %c0_40 = arith.constant 0 : index
    %156 = vector.load %arg2[%155, %c0_39, %c0_40] : memref<8x8x512xbf16, #tpu.memory_space<vmem>>, vector<1x8x512xbf16>
    %157 = vector.shape_cast %156 : vector<1x8x512xbf16> to vector<8x512xbf16>
    %158 = arith.extf %157 : vector<8x512xbf16> to vector<8x512xf32>
    %159 = arith.truncf %149 : vector<8x128xf32> to vector<8x128xbf16>
    %cst_41 = arith.constant dense<0.000000e+00> : vector<8x512xf32>
    %160 = tpu.matmul %159, %4, %cst_41 {dimension_numbers = #tpu.dot_dimension_numbers<[1], [0], [0], [1], [0, 0, 1, 1], [], []>} : vector<8x128xbf16>, vector<128x512xbf16>, vector<8x512xf32> -> vector<8x512xf32>
    %161 = arith.addf %158, %160 : vector<8x512xf32>
    %162 = vector.extract_strided_slice %161 {offsets = [0, 0], sizes = [8, 128], strides = [1, 1]} : vector<8x512xf32> to vector<8x128xf32>
    %163 = arith.negf %162 : vector<8x128xf32>
    %164 = math.exp %163 : vector<8x128xf32>
    %cst_42 = arith.constant 1.000000e+00 : f32
    %165 = vector.broadcast %cst_42 : f32 to vector<8x128xf32>
    %166 = arith.addf %165, %164 : vector<8x128xf32>
    %167 = arith.divf %165, %166 : vector<8x128xf32>
    %168 = vector.extract_strided_slice %161 {offsets = [0, 128], sizes = [8, 128], strides = [1, 1]} : vector<8x512xf32> to vector<8x128xf32>
    %169 = arith.negf %168 : vector<8x128xf32>
    %170 = math.exp %169 : vector<8x128xf32>
    %cst_43 = arith.constant 1.000000e+00 : f32
    %171 = vector.broadcast %cst_43 : f32 to vector<8x128xf32>
    %172 = arith.addf %171, %170 : vector<8x128xf32>
    %173 = arith.divf %171, %172 : vector<8x128xf32>
    %174 = vector.extract_strided_slice %161 {offsets = [0, 256], sizes = [8, 128], strides = [1, 1]} : vector<8x512xf32> to vector<8x128xf32>
    %175 = math.tanh %174 : vector<8x128xf32>
    %176 = vector.extract_strided_slice %161 {offsets = [0, 384], sizes = [8, 128], strides = [1, 1]} : vector<8x512xf32> to vector<8x128xf32>
    %177 = arith.negf %176 : vector<8x128xf32>
    %178 = math.exp %177 : vector<8x128xf32>
    %cst_44 = arith.constant 1.000000e+00 : f32
    %179 = vector.broadcast %cst_44 : f32 to vector<8x128xf32>
    %180 = arith.addf %179, %178 : vector<8x128xf32>
    %181 = arith.divf %179, %180 : vector<8x128xf32>
    %182 = arith.mulf %173, %147 : vector<8x128xf32>
    %183 = arith.mulf %167, %175 : vector<8x128xf32>
    %184 = arith.addf %182, %183 : vector<8x128xf32>
    %185 = math.tanh %184 : vector<8x128xf32>
    %186 = arith.mulf %181, %185 : vector<8x128xf32>
    %187 = arith.truncf %186 : vector<8x128xf32> to vector<8x128xbf16>
    %188 = arith.index_cast %c4_i32 : i32 to index
    %c0_45 = arith.constant 0 : index
    %c0_46 = arith.constant 0 : index
    %189 = vector.load %arg4[%188, %c0_45, %c0_46] : memref<8x8x128xbf16, #tpu.memory_space<vmem>>, vector<1x8x128xbf16>
    %190 = vector.shape_cast %189 : vector<1x8x128xbf16> to vector<8x128xbf16>
    %191 = vector.shape_cast %187 : vector<8x128xbf16> to vector<1x8x128xbf16>
    tpu.vector_store %arg4[%188, %c0_45, %c0_46], %191 {strides = array<i32>} : memref<8x8x128xbf16, #tpu.memory_space<vmem>>, vector<1x8x128xbf16>,
    %c5_i32 = arith.constant 5 : i32
    %192 = arith.index_cast %c5_i32 : i32 to index
    %c0_47 = arith.constant 0 : index
    %c0_48 = arith.constant 0 : index
    %193 = vector.load %arg2[%192, %c0_47, %c0_48] : memref<8x8x512xbf16, #tpu.memory_space<vmem>>, vector<1x8x512xbf16>
    %194 = vector.shape_cast %193 : vector<1x8x512xbf16> to vector<8x512xbf16>
    %195 = arith.extf %194 : vector<8x512xbf16> to vector<8x512xf32>
    %196 = arith.truncf %186 : vector<8x128xf32> to vector<8x128xbf16>
    %cst_49 = arith.constant dense<0.000000e+00> : vector<8x512xf32>
    %197 = tpu.matmul %196, %4, %cst_49 {dimension_numbers = #tpu.dot_dimension_numbers<[1], [0], [0], [1], [0, 0, 1, 1], [], []>} : vector<8x128xbf16>, vector<128x512xbf16>, vector<8x512xf32> -> vector<8x512xf32>
    %198 = arith.addf %195, %197 : vector<8x512xf32>
    %199 = vector.extract_strided_slice %198 {offsets = [0, 0], sizes = [8, 128], strides = [1, 1]} : vector<8x512xf32> to vector<8x128xf32>
    %200 = arith.negf %199 : vector<8x128xf32>
    %201 = math.exp %200 : vector<8x128xf32>
    %cst_50 = arith.constant 1.000000e+00 : f32
    %202 = vector.broadcast %cst_50 : f32 to vector<8x128xf32>
    %203 = arith.addf %202, %201 : vector<8x128xf32>
    %204 = arith.divf %202, %203 : vector<8x128xf32>
    %205 = vector.extract_strided_slice %198 {offsets = [0, 128], sizes = [8, 128], strides = [1, 1]} : vector<8x512xf32> to vector<8x128xf32>
    %206 = arith.negf %205 : vector<8x128xf32>
    %207 = math.exp %206 : vector<8x128xf32>
    %cst_51 = arith.constant 1.000000e+00 : f32
    %208 = vector.broadcast %cst_51 : f32 to vector<8x128xf32>
    %209 = arith.addf %208, %207 : vector<8x128xf32>
    %210 = arith.divf %208, %209 : vector<8x128xf32>
    %211 = vector.extract_strided_slice %198 {offsets = [0, 256], sizes = [8, 128], strides = [1, 1]} : vector<8x512xf32> to vector<8x128xf32>
    %212 = math.tanh %211 : vector<8x128xf32>
    %213 = vector.extract_strided_slice %198 {offsets = [0, 384], sizes = [8, 128], strides = [1, 1]} : vector<8x512xf32> to vector<8x128xf32>
    %214 = arith.negf %213 : vector<8x128xf32>
    %215 = math.exp %214 : vector<8x128xf32>
    %cst_52 = arith.constant 1.000000e+00 : f32
    %216 = vector.broadcast %cst_52 : f32 to vector<8x128xf32>
    %217 = arith.addf %216, %215 : vector<8x128xf32>
    %218 = arith.divf %216, %217 : vector<8x128xf32>
    %219 = arith.mulf %210, %184 : vector<8x128xf32>
    %220 = arith.mulf %204, %212 : vector<8x128xf32>
    %221 = arith.addf %219, %220 : vector<8x128xf32>
    %222 = math.tanh %221 : vector<8x128xf32>
    %223 = arith.mulf %218, %222 : vector<8x128xf32>
    %224 = arith.truncf %223 : vector<8x128xf32> to vector<8x128xbf16>
    %225 = arith.index_cast %c5_i32 : i32 to index
    %c0_53 = arith.constant 0 : index
    %c0_54 = arith.constant 0 : index
    %226 = vector.load %arg4[%225, %c0_53, %c0_54] : memref<8x8x128xbf16, #tpu.memory_space<vmem>>, vector<1x8x128xbf16>
    %227 = vector.shape_cast %226 : vector<1x8x128xbf16> to vector<8x128xbf16>
    %228 = vector.shape_cast %224 : vector<8x128xbf16> to vector<1x8x128xbf16>
    tpu.vector_store %arg4[%225, %c0_53, %c0_54], %228 {strides = array<i32>} : memref<8x8x128xbf16, #tpu.memory_space<vmem>>, vector<1x8x128xbf16>,
    %c6_i32 = arith.constant 6 : i32
    %229 = arith.index_cast %c6_i32 : i32 to index
    %c0_55 = arith.constant 0 : index
    %c0_56 = arith.constant 0 : index
    %230 = vector.load %arg2[%229, %c0_55, %c0_56] : memref<8x8x512xbf16, #tpu.memory_space<vmem>>, vector<1x8x512xbf16>
    %231 = vector.shape_cast %230 : vector<1x8x512xbf16> to vector<8x512xbf16>
    %232 = arith.extf %231 : vector<8x512xbf16> to vector<8x512xf32>
    %233 = arith.truncf %223 : vector<8x128xf32> to vector<8x128xbf16>
    %cst_57 = arith.constant dense<0.000000e+00> : vector<8x512xf32>
    %234 = tpu.matmul %233, %4, %cst_57 {dimension_numbers = #tpu.dot_dimension_numbers<[1], [0], [0], [1], [0, 0, 1, 1], [], []>} : vector<8x128xbf16>, vector<128x512xbf16>, vector<8x512xf32> -> vector<8x512xf32>
    %235 = arith.addf %232, %234 : vector<8x512xf32>
    %236 = vector.extract_strided_slice %235 {offsets = [0, 0], sizes = [8, 128], strides = [1, 1]} : vector<8x512xf32> to vector<8x128xf32>
    %237 = arith.negf %236 : vector<8x128xf32>
    %238 = math.exp %237 : vector<8x128xf32>
    %cst_58 = arith.constant 1.000000e+00 : f32
    %239 = vector.broadcast %cst_58 : f32 to vector<8x128xf32>
    %240 = arith.addf %239, %238 : vector<8x128xf32>
    %241 = arith.divf %239, %240 : vector<8x128xf32>
    %242 = vector.extract_strided_slice %235 {offsets = [0, 128], sizes = [8, 128], strides = [1, 1]} : vector<8x512xf32> to vector<8x128xf32>
    %243 = arith.negf %242 : vector<8x128xf32>
    %244 = math.exp %243 : vector<8x128xf32>
    %cst_59 = arith.constant 1.000000e+00 : f32
    %245 = vector.broadcast %cst_59 : f32 to vector<8x128xf32>
    %246 = arith.addf %245, %244 : vector<8x128xf32>
    %247 = arith.divf %245, %246 : vector<8x128xf32>
    %248 = vector.extract_strided_slice %235 {offsets = [0, 256], sizes = [8, 128], strides = [1, 1]} : vector<8x512xf32> to vector<8x128xf32>
    %249 = math.tanh %248 : vector<8x128xf32>
    %250 = vector.extract_strided_slice %235 {offsets = [0, 384], sizes = [8, 128], strides = [1, 1]} : vector<8x512xf32> to vector<8x128xf32>
    %251 = arith.negf %250 : vector<8x128xf32>
    %252 = math.exp %251 : vector<8x128xf32>
    %cst_60 = arith.constant 1.000000e+00 : f32
    %253 = vector.broadcast %cst_60 : f32 to vector<8x128xf32>
    %254 = arith.addf %253, %252 : vector<8x128xf32>
    %255 = arith.divf %253, %254 : vector<8x128xf32>
    %256 = arith.mulf %247, %221 : vector<8x128xf32>
    %257 = arith.mulf %241, %249 : vector<8x128xf32>
    %258 = arith.addf %256, %257 : vector<8x128xf32>
    %259 = math.tanh %258 : vector<8x128xf32>
    %260 = arith.mulf %255, %259 : vector<8x128xf32>
    %261 = arith.truncf %260 : vector<8x128xf32> to vector<8x128xbf16>
    %262 = arith.index_cast %c6_i32 : i32 to index
    %c0_61 = arith.constant 0 : index
    %c0_62 = arith.constant 0 : index
    %263 = vector.load %arg4[%262, %c0_61, %c0_62] : memref<8x8x128xbf16, #tpu.memory_space<vmem>>, vector<1x8x128xbf16>
    %264 = vector.shape_cast %263 : vector<1x8x128xbf16> to vector<8x128xbf16>
    %265 = vector.shape_cast %261 : vector<8x128xbf16> to vector<1x8x128xbf16>
    tpu.vector_store %arg4[%262, %c0_61, %c0_62], %265 {strides = array<i32>} : memref<8x8x128xbf16, #tpu.memory_space<vmem>>, vector<1x8x128xbf16>,
    %c7_i32 = arith.constant 7 : i32
    %266 = arith.index_cast %c7_i32 : i32 to index
    %c0_63 = arith.constant 0 : index
    %c0_64 = arith.constant 0 : index
    %267 = vector.load %arg2[%266, %c0_63, %c0_64] : memref<8x8x512xbf16, #tpu.memory_space<vmem>>, vector<1x8x512xbf16>
    %268 = vector.shape_cast %267 : vector<1x8x512xbf16> to vector<8x512xbf16>
    %269 = arith.extf %268 : vector<8x512xbf16> to vector<8x512xf32>
    %270 = arith.truncf %260 : vector<8x128xf32> to vector<8x128xbf16>
    %cst_65 = arith.constant dense<0.000000e+00> : vector<8x512xf32>
    %271 = tpu.matmul %270, %4, %cst_65 {dimension_numbers = #tpu.dot_dimension_numbers<[1], [0], [0], [1], [0, 0, 1, 1], [], []>} : vector<8x128xbf16>, vector<128x512xbf16>, vector<8x512xf32> -> vector<8x512xf32>
    %272 = arith.addf %269, %271 : vector<8x512xf32>
    %273 = vector.extract_strided_slice %272 {offsets = [0, 0], sizes = [8, 128], strides = [1, 1]} : vector<8x512xf32> to vector<8x128xf32>
    %274 = arith.negf %273 : vector<8x128xf32>
    %275 = math.exp %274 : vector<8x128xf32>
    %cst_66 = arith.constant 1.000000e+00 : f32
    %276 = vector.broadcast %cst_66 : f32 to vector<8x128xf32>
    %277 = arith.addf %276, %275 : vector<8x128xf32>
    %278 = arith.divf %276, %277 : vector<8x128xf32>
    %279 = vector.extract_strided_slice %272 {offsets = [0, 128], sizes = [8, 128], strides = [1, 1]} : vector<8x512xf32> to vector<8x128xf32>
    %280 = arith.negf %279 : vector<8x128xf32>
    %281 = math.exp %280 : vector<8x128xf32>
    %cst_67 = arith.constant 1.000000e+00 : f32
    %282 = vector.broadcast %cst_67 : f32 to vector<8x128xf32>
    %283 = arith.addf %282, %281 : vector<8x128xf32>
    %284 = arith.divf %282, %283 : vector<8x128xf32>
    %285 = vector.extract_strided_slice %272 {offsets = [0, 256], sizes = [8, 128], strides = [1, 1]} : vector<8x512xf32> to vector<8x128xf32>
    %286 = math.tanh %285 : vector<8x128xf32>
    %287 = vector.extract_strided_slice %272 {offsets = [0, 384], sizes = [8, 128], strides = [1, 1]} : vector<8x512xf32> to vector<8x128xf32>
    %288 = arith.negf %287 : vector<8x128xf32>
    %289 = math.exp %288 : vector<8x128xf32>
    %cst_68 = arith.constant 1.000000e+00 : f32
    %290 = vector.broadcast %cst_68 : f32 to vector<8x128xf32>
    %291 = arith.addf %290, %289 : vector<8x128xf32>
    %292 = arith.divf %290, %291 : vector<8x128xf32>
    %293 = arith.mulf %284, %258 : vector<8x128xf32>
    %294 = arith.mulf %278, %286 : vector<8x128xf32>
    %295 = arith.addf %293, %294 : vector<8x128xf32>
    %296 = math.tanh %295 : vector<8x128xf32>
    %297 = arith.mulf %292, %296 : vector<8x128xf32>
    %298 = arith.truncf %297 : vector<8x128xf32> to vector<8x128xbf16>
    %299 = arith.index_cast %c7_i32 : i32 to index
    %c0_69 = arith.constant 0 : index
    %c0_70 = arith.constant 0 : index
    %300 = vector.load %arg4[%299, %c0_69, %c0_70] : memref<8x8x128xbf16, #tpu.memory_space<vmem>>, vector<1x8x128xbf16>
    %301 = vector.shape_cast %300 : vector<1x8x128xbf16> to vector<8x128xbf16>
    %302 = vector.shape_cast %298 : vector<8x128xbf16> to vector<1x8x128xbf16>
    tpu.vector_store %arg4[%299, %c0_69, %c0_70], %302 {strides = array<i32>} : memref<8x8x128xbf16, #tpu.memory_space<vmem>>, vector<1x8x128xbf16>,
    %c8_i32 = arith.constant 8 : i32
    %c0_71 = arith.constant 0 : index
    %c0_72 = arith.constant 0 : index
    %303 = vector.load %arg7[%c0_71, %c0_72] : memref<8x128xf32, #tpu.memory_space<vmem>>, vector<8x128xf32>
    tpu.vector_store %arg7[%c0_71, %c0_72], %297 {strides = array<i32>} : memref<8x128xf32, #tpu.memory_space<vmem>>, vector<8x128xf32>,
    %c0_73 = arith.constant 0 : index
    %c0_74 = arith.constant 0 : index
    %304 = vector.load %arg8[%c0_73, %c0_74] : memref<8x128xf32, #tpu.memory_space<vmem>>, vector<8x128xf32>
    tpu.vector_store %arg8[%c0_73, %c0_74], %295 {strides = array<i32>} : memref<8x128xf32, #tpu.memory_space<vmem>>, vector<8x128xf32>,
    %305 = arith.extui %0 : i1 to i32
    %c0_i32_75 = arith.constant 0 : i32
    %306 = arith.cmpi ne, %305, %c0_i32_75 : i32
    scf.if %306 {
      %c0_76 = arith.constant 0 : index
      %c0_77 = arith.constant 0 : index
      %307 = vector.load %arg5[%c0_76, %c0_77] : memref<8x128xf32, #tpu.memory_space<vmem>>, vector<8x128xf32>
      tpu.vector_store %arg5[%c0_76, %c0_77], %297 {strides = array<i32>} : memref<8x128xf32, #tpu.memory_space<vmem>>, vector<8x128xf32>,
      %c0_78 = arith.constant 0 : index
      %c0_79 = arith.constant 0 : index
      %308 = vector.load %arg6[%c0_78, %c0_79] : memref<8x128xf32, #tpu.memory_space<vmem>>, vector<8x128xf32>
      tpu.vector_store %arg6[%c0_78, %c0_79], %295 {strides = array<i32>} : memref<8x128xf32, #tpu.memory_space<vmem>>, vector<8x128xf32>,
    } else {
    }
    return
  }
  func.func @transform_0(%arg0: i32, %arg1: i32) -> (i32, i32, i32) {
    %c0_i32 = arith.constant 0 : i32
    %c0_i32_0 = arith.constant 0 : i32
    return %arg1, %arg0, %c0_i32 : i32, i32, i32
  }
  func.func @transform_1(%arg0: i32, %arg1: i32) -> (i32, i32) {
    %c0_i32 = arith.constant 0 : i32
    %c0_i32_0 = arith.constant 0 : i32
    %c0_i32_1 = arith.constant 0 : i32
    return %c0_i32, %c0_i32_0 : i32, i32
  }
  func.func @transform_2(%arg0: i32, %arg1: i32) -> (i32, i32, i32) {
    %c0_i32 = arith.constant 0 : i32
    %c0_i32_0 = arith.constant 0 : i32
    return %arg1, %arg0, %c0_i32 : i32, i32, i32
  }
  func.func @transform_3(%arg0: i32, %arg1: i32) -> (i32, i32) {
    %c0_i32 = arith.constant 0 : i32
    %c0_i32_0 = arith.constant 0 : i32
    return %arg0, %c0_i32 : i32, i32
  }
  func.func @transform_4(%arg0: i32, %arg1: i32) -> (i32, i32) {
    %c0_i32 = arith.constant 0 : i32
    %c0_i32_0 = arith.constant 0 : i32
    return %arg0, %c0_i32 : i32, i32
  }
}

</mosaic_0001>

<bundles_post_ra>
// kernel: encoder_forward.4
= control target key start
LH: loop header
LB: loop body
LE: loop exit
PB: predicated region body
PF: predicated region fallthrough
CT: control target
= control target key end

     0   :  { %v644_v1 = vmov 0   ;;  %v57_v37 = vlaneseq  ;;  %s872_s1 = inlined_call_operand.vmem [shape: bf16[128,512], index: 1, kind: input, shape index: {}]   ;;  %s873_s0 = inlined_call_operand.vmem [shape: bf16[64,128], index: 0, kind: input, shape index: {}]   ;;  %s874_s2 = inlined_call_operand.vmem [shape: f32[1,512], index: 2, kind: input, shape index: {}]   ;;  %s875_s3 = inlined_call_operand.vmem [shape: bf16[64,512], index: 3, kind: output, shape index: {}]  }
   0x1   :  { %v592_v0 = vld [vmem:[%s872_s1 + $0x4] ss:$16 sps:$4 sm:$0xff]   ;;  %293 = vmatprep.mubr.bf16.mxu0 %v644_v1  ;;  %366 = vmatprep.mubr.bf16.mxu1 %v644_v1  ;;  %v594_v2 = vld [vmem:[%s872_s1 + $0xc] ss:$16 sps:$4 sm:$0xff]   ;;  %v596_v3 = vld [vmem:[%s872_s1] ss:$16 sps:$4 sm:$0xff]  }
   0x2   :  { %261 = vmatprep.subr.bf16.mxu0 %v592_v0  ;;  %v597_v4 = vld [vmem:[%s872_s1 + $0x8] ss:$16 sps:$4 sm:$0xff]   ;;  %334 = vmatprep.subr.bf16.mxu1 %v594_v2  ;;  %v598_v5 = vld [vmem:[%s872_s1 + $0x24] ss:$16 sps:$4 sm:$0xff]   ;;  %v600_v6 = vld [vmem:[%s872_s1 + $0x2c] ss:$16 sps:$4 sm:$0xff]  }
   0x3   :  { %262 = vmatpush1.bf16.msra.mxu0 %v596_v3  ;;  %335 = vmatpush1.bf16.msra.mxu1 %v597_v4  ;;  %v602_v7 = vld [vmem:[%s872_s1 + $0x20] ss:$16 sps:$4 sm:$0xff]   ;;  %v603_v8 = vld [vmem:[%s872_s1 + $0x28] ss:$16 sps:$4 sm:$0xff]   ;;  %v604_v9 = vld [vmem:[%s872_s1 + $0x44] ss:$16 sps:$4 sm:$0xff]  }
   0x4   :  { %263 = vmatprep.subr.bf16.mxu0 %v598_v5  ;;  %336 = vmatprep.subr.bf16.mxu1 %v600_v6  ;;  %v606_v10 = vld [vmem:[%s872_s1 + $0x4c] ss:$16 sps:$4 sm:$0xff]   ;;  %v608_v11 = vld [vmem:[%s872_s1 + $0x40] ss:$16 sps:$4 sm:$0xff]   ;;  %v609_v12 = vld [vmem:[%s872_s1 + $0x48] ss:$16 sps:$4 sm:$0xff]  }
   0x5   :  { %v610_v13 = vld [vmem:[%s872_s1 + $0x64] ss:$16 sps:$4 sm:$0xff]   ;;  %v612_v14 = vld [vmem:[%s872_s1 + $0x6c] ss:$16 sps:$4 sm:$0xff]   ;;  %v614_v15 = vld [vmem:[%s872_s1 + $0x60] ss:$16 sps:$4 sm:$0xff]  }
   0x6   :  { %v615_v16 = vld [vmem:[%s872_s1 + $0x68] ss:$16 sps:$4 sm:$0xff]   ;;  %v616_v17 = vld [vmem:[%s872_s1 + $0x84] ss:$16 sps:$4 sm:$0xff]   ;;  %v618_v18 = vld [vmem:[%s872_s1 + $0x8c] ss:$16 sps:$4 sm:$0xff]  }
   0x7   :  { %264 = vmatpush1.bf16.msra.mxu0 %v602_v7  ;;  %337 = vmatpush1.bf16.msra.mxu1 %v603_v8  ;;  %v620_v19 = vld [vmem:[%s872_s1 + $0x80] ss:$16 sps:$4 sm:$0xff]   ;;  %v621_v20 = vld [vmem:[%s872_s1 + $0x88] ss:$16 sps:$4 sm:$0xff]   ;;  %v622_v21 = vld [vmem:[%s872_s1 + $0xa4] ss:$16 sps:$4 sm:$0xff]  }
   0x8   :  { %265 = vmatprep.subr.bf16.mxu0 %v604_v9  ;;  %338 = vmatprep.subr.bf16.mxu1 %v606_v10  ;;  %v624_v22 = vld [vmem:[%s872_s1 + $0xac] ss:$16 sps:$4 sm:$0xff]   ;;  %v626_v23 = vld [vmem:[%s872_s1 + $0xa0] ss:$16 sps:$4 sm:$0xff]   ;;  %v627_v24 = vld [vmem:[%s872_s1 + $0xa8] ss:$16 sps:$4 sm:$0xff]  }
   0x9   :  { %v628_v25 = vld [vmem:[%s872_s1 + $0xc4] ss:$16 sps:$4 sm:$0xff]   ;;  %v630_v26 = vld [vmem:[%s872_s1 + $0xcc] ss:$16 sps:$4 sm:$0xff]   ;;  %v632_v27 = vld [vmem:[%s872_s1 + $0xc0] ss:$16 sps:$4 sm:$0xff]  }
   0xa   :  { %v633_v28 = vld [vmem:[%s872_s1 + $0xc8] ss:$16 sps:$4 sm:$0xff]   ;;  %v634_v29 = vld [vmem:[%s872_s1 + $0xe4] ss:$16 sps:$4 sm:$0xff]   ;;  %v636_v30 = vld [vmem:[%s872_s1 + $0xec] ss:$16 sps:$4 sm:$0xff]  }
   0xb   :  { %266 = vmatpush1.bf16.msra.mxu0 %v608_v11  ;;  %339 = vmatpush1.bf16.msra.mxu1 %v609_v12  ;;  %v638_v31 = vld [vmem:[%s872_s1 + $0xe0] ss:$16 sps:$4 sm:$0xff]   ;;  %v639_v32 = vld [vmem:[%s872_s1 + $0xe8] ss:$16 sps:$4 sm:$0xff]   ;;  %v58_v38 = vshrl.u32 %v57_v37, 7 }
   0xc   :  { %267 = vmatprep.subr.bf16.mxu0 %v610_v13  ;;  %340 = vmatprep.subr.bf16.mxu1 %v612_v14  ;;  %v640_v33 = vld [vmem:[%s873_s0] sm:$0xff]   ;;  %v641_v34 = vld [vmem:[%s873_s0 + $0x8] sm:$0xff]   ;;  %v642_v35 = vld [vmem:[%s873_s0 + $0x10] sm:$0xff]  }
   0xd   :  { %v643_v36 = vld [vmem:[%s873_s0 + $0x18] sm:$0xff]   ;;  %v59_v39 = vsub.s32 0, %v58_v38  ;;  %v67_v40 = vsub.s32 2, %v58_v38  ;;  %v55_v41 = vld [vmem:[%s874_s2] sm:$0xf]  ;;  %v63_v42 = vsub.s32 1, %v58_v38 }
   0xe   :  { %v71_v43 = vsub.s32 3, %v58_v38 }
   0xf   :  { %268 = vmatpush1.bf16.msra.mxu0 %v614_v15  ;;  %341 = vmatpush1.bf16.msra.mxu1 %v615_v16  ;;  %v784_v44 = vrot.slane %v55_v41, %v59_v39  ;;  %v786_v45 = vrot.slane %v55_v41, %v67_v40  ;;  %v788_v46 = vrot.slane %v55_v41, %v63_v42 }
  0x10   :  { %269 = vmatprep.subr.bf16.mxu0 %v616_v17  ;;  %342 = vmatprep.subr.bf16.mxu1 %v618_v18  ;;  %v790_v47 = vrot.slane %v55_v41, %v71_v43 }
  0x13   :  { %270 = vmatpush1.bf16.msra.mxu0 %v620_v19  ;;  %343 = vmatpush1.bf16.msra.mxu1 %v621_v20 }
  0x14   :  { %271 = vmatprep.subr.bf16.mxu0 %v622_v21  ;;  %344 = vmatprep.subr.bf16.mxu1 %v624_v22 }
  0x17   :  { %272 = vmatpush1.bf16.msra.mxu0 %v626_v23  ;;  %345 = vmatpush1.bf16.msra.mxu1 %v627_v24 }
  0x18   :  { %273 = vmatprep.subr.bf16.mxu0 %v628_v25  ;;  %346 = vmatprep.subr.bf16.mxu1 %v630_v26 }
  0x1b   :  { %274 = vmatpush1.bf16.msra.mxu0 %v632_v27  ;;  %347 = vmatpush1.bf16.msra.mxu1 %v633_v28 }
  0x1c   :  { %275 = vmatprep.subr.bf16.mxu0 %v634_v29  ;;  %348 = vmatprep.subr.bf16.mxu1 %v636_v30 }
  0x1f   :  { %276 = vmatpush1.bf16.msra.mxu0 %v638_v31  ;;  %349 = vmatpush1.bf16.msra.mxu1 %v639_v32 }
  0x22   :  { %294 = vmatmul.mubr.bf16.vlgmr.msra.gmra.mrb[0].mxu0 %v640_v33  ;;  %367 = vmatmul.mubr.bf16.vlgmr.msra.gmra.mrb[0].mxu1 %v640_v33 }
  0x23   :  { %303 = vmatprep.mubr.bf16.mxu0 %v644_v1  ;;  %376 = vmatprep.mubr.bf16.mxu1 %v644_v1 }
  0x2a   :  { %304 = vmatmul.mubr.bf16.gmra.mrb[4].mxu0 %v641_v34  ;;  %377 = vmatmul.mubr.bf16.gmra.mrb[4].mxu1 %v641_v34 }
  0x2b   :  { %313 = vmatprep.mubr.bf16.mxu0 %v644_v1  ;;  %386 = vmatprep.mubr.bf16.mxu1 %v644_v1 }
  0x32   :  { %314 = vmatmul.mubr.bf16.gmra.mrb[8].mxu0 %v642_v35  ;;  %387 = vmatmul.mubr.bf16.gmra.mrb[8].mxu1 %v642_v35 }
  0x33   :  { %323 = vmatprep.mubr.bf16.mxu0 %v644_v1  ;;  %396 = vmatprep.mubr.bf16.mxu1 %v644_v1 }
  0x3a   :  { %324 = vmatmul.mubr.bf16.gmra.mrb[12].mxu0 %v643_v36  ;;  %397 = vmatmul.mubr.bf16.gmra.mrb[12].mxu1 %v643_v36 }
  0xf5   :  { %v295_v48 = vpop.f32.mrb[0].mxu0  ;;  %v368_v49 = vpop.f32.mrb[0].mxu1 }
  0xf6   :  { %v296_v50 = vadd.f32 %v295_v48, %v784_v44  ;;  %v369_v51 = vadd.f32 %v368_v49, %v786_v45  ;;  %v297_v52 = vpop.f32.mrb[1].mxu0  ;;  %v370_v53 = vpop.f32.mrb[1].mxu1 }
  0xf7   :  { %v298_v54 = vadd.f32 %v297_v52, %v788_v46  ;;  %v371_v55 = vadd.f32 %v370_v53, %v790_v47  ;;  %v299_v56 = vpop.f32.mrb[2].mxu0  ;;  %v372_v57 = vpop.f32.mrb[2].mxu1 }
  0xf8   :  { %v300_v58 = vadd.f32 %v299_v56, %v784_v44  ;;  %v373_v59 = vadd.f32 %v372_v57, %v786_v45  ;;  %v301_v60 = vpop.f32.mrb[3].mxu0  ;;  %v374_v61 = vpop.f32.mrb[3].mxu1 }
  0xf9   :  { %v575_v62 = vpack.c.bf16 %v298_v54, %v296_v50  ;;  %v576_v63 = vpack.c.bf16 %v371_v55, %v369_v51  ;;  %v302_v0 = vadd.f32 %v301_v60, %v788_v46  ;;  %v375_v1 = vadd.f32 %v374_v61, %v790_v47 }
  0xfb   :  { %503 = vst [vmem:[%s875_s3] sm:$0xff] %v575_v62  ;;  %504 = vst [vmem:[%s875_s3 + $0x8] sm:$0xff] %v576_v63  ;;  %v577_v2 = vpack.c.bf16 %v302_v0, %v300_v58  ;;  %v578_v3 = vpack.c.bf16 %v375_v1, %v373_v59 }
  0xfd   :  { %505 = vst [vmem:[%s875_s3 + $0x10] sm:$0xff] %v577_v2  ;;  %506 = vst [vmem:[%s875_s3 + $0x18] sm:$0xff] %v578_v3  ;;  %v305_v4 = vpop.f32.mrb[4].mxu0  ;;  %v378_v5 = vpop.f32.mrb[4].mxu1 }
  0xfe   :  { %v306_v6 = vadd.f32 %v305_v4, %v784_v44  ;;  %v379_v7 = vadd.f32 %v378_v5, %v786_v45  ;;  %v307_v8 = vpop.f32.mrb[5].mxu0  ;;  %v380_v9 = vpop.f32.mrb[5].mxu1 }
  0xff   :  { %v308_v10 = vadd.f32 %v307_v8, %v788_v46  ;;  %v381_v11 = vadd.f32 %v380_v9, %v790_v47  ;;  %v309_v12 = vpop.f32.mrb[6].mxu0  ;;  %v382_v13 = vpop.f32.mrb[6].mxu1 }
 0x100   :  { %v310_v14 = vadd.f32 %v309_v12, %v784_v44  ;;  %v383_v15 = vadd.f32 %v382_v13, %v786_v45  ;;  %v311_v16 = vpop.f32.mrb[7].mxu0  ;;  %v384_v17 = vpop.f32.mrb[7].mxu1 }
 0x101   :  { %v579_v18 = vpack.c.bf16 %v308_v10, %v306_v6  ;;  %v580_v19 = vpack.c.bf16 %v381_v11, %v379_v7  ;;  %v312_v20 = vadd.f32 %v311_v16, %v788_v46  ;;  %v385_v21 = vadd.f32 %v384_v17, %v790_v47 }
 0x103   :  { %507 = vst [vmem:[%s875_s3 + $0x20] sm:$0xff] %v579_v18  ;;  %508 = vst [vmem:[%s875_s3 + $0x28] sm:$0xff] %v580_v19  ;;  %v581_v22 = vpack.c.bf16 %v312_v20, %v310_v14  ;;  %v582_v23 = vpack.c.bf16 %v385_v21, %v383_v15 }
 0x105   :  { %509 = vst [vmem:[%s875_s3 + $0x30] sm:$0xff] %v581_v22  ;;  %510 = vst [vmem:[%s875_s3 + $0x38] sm:$0xff] %v582_v23  ;;  %v315_v24 = vpop.f32.mrb[8].mxu0  ;;  %v388_v25 = vpop.f32.mrb[8].mxu1 }
 0x106   :  { %v316_v26 = vadd.f32 %v315_v24, %v784_v44  ;;  %v389_v27 = vadd.f32 %v388_v25, %v786_v45  ;;  %v317_v28 = vpop.f32.mrb[9].mxu0  ;;  %v390_v29 = vpop.f32.mrb[9].mxu1 }
 0x107   :  { %v318_v30 = vadd.f32 %v317_v28, %v788_v46  ;;  %v391_v31 = vadd.f32 %v390_v29, %v790_v47  ;;  %v319_v32 = vpop.f32.mrb[10].mxu0  ;;  %v392_v33 = vpop.f32.mrb[10].mxu1 }
 0x108   :  { %v320_v34 = vadd.f32 %v319_v32, %v784_v44  ;;  %v393_v35 = vadd.f32 %v392_v33, %v786_v45  ;;  %v321_v36 = vpop.f32.mrb[11].mxu0  ;;  %v394_v37 = vpop.f32.mrb[11].mxu1 }
 0x109   :  { %v583_v38 = vpack.c.bf16 %v318_v30, %v316_v26  ;;  %v584_v39 = vpack.c.bf16 %v391_v31, %v389_v27  ;;  %v322_v40 = vadd.f32 %v321_v36, %v788_v46  ;;  %v395_v41 = vadd.f32 %v394_v37, %v790_v47 }
 0x10b   :  { %511 = vst [vmem:[%s875_s3 + $0x40] sm:$0xff] %v583_v38  ;;  %512 = vst [vmem:[%s875_s3 + $0x48] sm:$0xff] %v584_v39  ;;  %v585_v42 = vpack.c.bf16 %v322_v40, %v320_v34  ;;  %v586_v43 = vpack.c.bf16 %v395_v41, %v393_v35 }
 0x10d   :  { %513 = vst [vmem:[%s875_s3 + $0x50] sm:$0xff] %v585_v42  ;;  %514 = vst [vmem:[%s875_s3 + $0x58] sm:$0xff] %v586_v43  ;;  %v325_v48 = vpop.f32.mrb[12].mxu0  ;;  %v398_v49 = vpop.f32.mrb[12].mxu1 }
 0x10e   :  { %v326_v50 = vadd.f32 %v325_v48, %v784_v44  ;;  %v399_v51 = vadd.f32 %v398_v49, %v786_v45  ;;  %v327_v52 = vpop.f32.mrb[13].mxu0  ;;  %v400_v53 = vpop.f32.mrb[13].mxu1 }
 0x10f   :  { %v328_v54 = vadd.f32 %v327_v52, %v788_v46  ;;  %v401_v55 = vadd.f32 %v400_v53, %v790_v47  ;;  %v329_v56 = vpop.f32.mrb[14].mxu0  ;;  %v402_v57 = vpop.f32.mrb[14].mxu1 }
 0x110   :  { %v330_v58 = vadd.f32 %v329_v56, %v784_v44  ;;  %v403_v59 = vadd.f32 %v402_v57, %v786_v45  ;;  %v331_v60 = vpop.f32.mrb[15].mxu0  ;;  %v404_v61 = vpop.f32.mrb[15].mxu1 }
 0x111   :  { %v587_v62 = vpack.c.bf16 %v328_v54, %v326_v50  ;;  %v588_v63 = vpack.c.bf16 %v401_v55, %v399_v51  ;;  %v332_v0 = vadd.f32 %v331_v60, %v788_v46  ;;  %v405_v1 = vadd.f32 %v404_v61, %v790_v47 }
 0x113   :  { %515 = vst [vmem:[%s875_s3 + $0x60] sm:$0xff] %v587_v62  ;;  %516 = vst [vmem:[%s875_s3 + $0x68] sm:$0xff] %v588_v63  ;;  %v589_v2 = vpack.c.bf16 %v332_v0, %v330_v58  ;;  %v590_v44 = vpack.c.bf16 %v405_v1, %v403_v59 }
 0x115   :  { %517 = vst [vmem:[%s875_s3 + $0x70] sm:$0xff] %v589_v2  ;;  %518 = vst [vmem:[%s875_s3 + $0x78] sm:$0xff] %v590_v44 }

// kernel: encoder_forward.5
= control target key start
LH: loop header
LB: loop body
LE: loop exit
PB: predicated region body
PF: predicated region fallthrough
CT: control target
= control target key end

     0   :  { %v1480_v1 = vmov 0   ;;  %v1481_v33 = vmov 0.0|0.0   ;;  %s2105_s1 = inlined_call_operand.vmem [shape: bf16[128,512], index: 1, kind: input, shape index: {}]   ;;  %s2106_s0 = inlined_call_operand.vmem [shape: bf16[8,8,512], index: 0, kind: input, shape index: {}]   ;;  %s2107_s2 = inlined_call_operand.vmem [shape: bf16[8,8,128], index: 2, kind: output, shape index: {0}]   ;;  %s2108_s4 = inlined_call_operand.vmem [shape: f32[8,128], index: 4, kind: output, shape index: {2}]   ;;  %s2109_s3 = inlined_call_operand.vmem [shape: f32[8,128], index: 3, kind: output, shape index: {1}]  }
   0x1   :  { %v1510_v0 = vld [vmem:[%s2105_s1 + $0x4] ss:$16 sps:$4 sm:$0xff]   ;;  %254 = vmatprep.mubr.bf16.mxu0 %v1480_v1  ;;  %295 = vmatprep.mubr.bf16.mxu1 %v1480_v1  ;;  %v1517_v2 = vld [vmem:[%s2105_s1] ss:$16 sps:$4 sm:$0xff]   ;;  %v1540_v6 = vld [vmem:[%s2105_s1 + $0xc] ss:$16 sps:$4 sm:$0xff]  }
   0x2   :  { %222 = vmatprep.subr.bf16.mxu0 %v1510_v0  ;;  %v1523_v3 = vld [vmem:[%s2105_s1 + $0x24] ss:$16 sps:$4 sm:$0xff]   ;;  %v1529_v4 = vld [vmem:[%s2105_s1 + $0x20] ss:$16 sps:$4 sm:$0xff]   ;;  %v1545_v7 = vld [vmem:[%s2105_s1 + $0x8] ss:$16 sps:$4 sm:$0xff]   ;;  %263 = vmatprep.subr.bf16.mxu1 %v1540_v6 }
   0x3   :  { %223 = vmatpush1.bf16.msra.mxu0 %v1517_v2  ;;  %v1535_v5 = vld [vmem:[%s2105_s1 + $0x44] ss:$16 sps:$4 sm:$0xff]   ;;  %v1551_v8 = vld [vmem:[%s2105_s1 + $0x40] ss:$16 sps:$4 sm:$0xff]   ;;  %264 = vmatpush1.bf16.msra.mxu1 %v1545_v7  ;;  %v1564_v10 = vld [vmem:[%s2105_s1 + $0x2c] ss:$16 sps:$4 sm:$0xff]  }
   0x4   :  { %224 = vmatprep.subr.bf16.mxu0 %v1523_v3  ;;  %v1558_v9 = vld [vmem:[%s2105_s1 + $0x64] ss:$16 sps:$4 sm:$0xff]   ;;  %v1569_v11 = vld [vmem:[%s2105_s1 + $0x28] ss:$16 sps:$4 sm:$0xff]   ;;  %265 = vmatprep.subr.bf16.mxu1 %v1564_v10  ;;  %v1576_v12 = vld [vmem:[%s2105_s1 + $0x60] ss:$16 sps:$4 sm:$0xff]  }
   0x5   :  { %v1581_v13 = vld [vmem:[%s2105_s1 + $0x84] ss:$16 sps:$4 sm:$0xff]   ;;  %v1586_v14 = vld [vmem:[%s2105_s1 + $0x4c] ss:$16 sps:$4 sm:$0xff]   ;;  %v1593_v15 = vld [vmem:[%s2105_s1 + $0x48] ss:$16 sps:$4 sm:$0xff]  }
   0x6   :  { %v1599_v16 = vld [vmem:[%s2105_s1 + $0x6c] ss:$16 sps:$4 sm:$0xff]   ;;  %v1605_v17 = vld [vmem:[%s2105_s1 + $0x80] ss:$16 sps:$4 sm:$0xff]   ;;  %v1611_v18 = vld [vmem:[%s2105_s1 + $0xa4] ss:$16 sps:$4 sm:$0xff]  }
   0x7   :  { %225 = vmatpush1.bf16.msra.mxu0 %v1529_v4  ;;  %266 = vmatpush1.bf16.msra.mxu1 %v1569_v11  ;;  %v1617_v19 = vld [vmem:[%s2105_s1 + $0x68] ss:$16 sps:$4 sm:$0xff]   ;;  %v1623_v20 = vld [vmem:[%s2105_s1 + $0x8c] ss:$16 sps:$4 sm:$0xff]   ;;  %v1629_v21 = vld [vmem:[%s2105_s1 + $0xa0] ss:$16 sps:$4 sm:$0xff]  }
   0x8   :  { %226 = vmatprep.subr.bf16.mxu0 %v1535_v5  ;;  %267 = vmatprep.subr.bf16.mxu1 %v1586_v14  ;;  %v1634_v22 = vld [vmem:[%s2105_s1 + $0xc4] ss:$16 sps:$4 sm:$0xff]   ;;  %v1641_v23 = vld [vmem:[%s2105_s1 + $0x88] ss:$16 sps:$4 sm:$0xff]   ;;  %v1647_v24 = vld [vmem:[%s2105_s1 + $0xac] ss:$16 sps:$4 sm:$0xff]  }
   0x9   :  { %v1653_v25 = vld [vmem:[%s2105_s1 + $0xc0] ss:$16 sps:$4 sm:$0xff]   ;;  %v1659_v26 = vld [vmem:[%s2105_s1 + $0xe4] ss:$16 sps:$4 sm:$0xff]   ;;  %v1665_v27 = vld [vmem:[%s2105_s1 + $0xa8] ss:$16 sps:$4 sm:$0xff]  }
   0xa   :  { %v1671_v28 = vld [vmem:[%s2105_s1 + $0xcc] ss:$16 sps:$4 sm:$0xff]   ;;  %v1677_v29 = vld [vmem:[%s2105_s1 + $0xe0] ss:$16 sps:$4 sm:$0xff]   ;;  %v1684_v30 = vld [vmem:[%s2105_s1 + $0xc8] ss:$16 sps:$4 sm:$0xff]  }
   0xb   :  { %227 = vmatpush1.bf16.msra.mxu0 %v1551_v8  ;;  %268 = vmatpush1.bf16.msra.mxu1 %v1593_v15  ;;  %v1690_v31 = vld [vmem:[%s2105_s1 + $0xec] ss:$16 sps:$4 sm:$0xff]   ;;  %v1697_v32 = vld [vmem:[%s2105_s1 + $0xe8] ss:$16 sps:$4 sm:$0xff]   ;;  %v55_v34 = vld [vmem:[%s2106_s0] sm:$0xff] }
   0xc   :  { %228 = vmatprep.subr.bf16.mxu0 %v1558_v9  ;;  %269 = vmatprep.subr.bf16.mxu1 %v1599_v16  ;;  %v57_v35 = vunpack.c.l.bf16 %v55_v34  ;;  %v58_v36 = vunpack.c.h.bf16 %v55_v34  ;;  %v56_v38 = vld [vmem:[%s2106_s0 + $0x8] sm:$0xff] }
   0xd   :  { %v60_v45 = vunpack.c.h.bf16 %v56_v38  ;;  %v59_v51 = vunpack.c.l.bf16 %v56_v38 }
   0xf   :  { %229 = vmatpush1.bf16.msra.mxu0 %v1576_v12  ;;  %270 = vmatpush1.bf16.msra.mxu1 %v1617_v19 }
  0x10   :  { %230 = vmatprep.subr.bf16.mxu0 %v1581_v13  ;;  %271 = vmatprep.subr.bf16.mxu1 %v1623_v20 }
  0x13   :  { %231 = vmatpush1.bf16.msra.mxu0 %v1605_v17  ;;  %272 = vmatpush1.bf16.msra.mxu1 %v1641_v23 }
  0x14   :  { %232 = vmatprep.subr.bf16.mxu0 %v1611_v18  ;;  %273 = vmatprep.subr.bf16.mxu1 %v1647_v24 }
  0x17   :  { %233 = vmatpush1.bf16.msra.mxu0 %v1629_v21  ;;  %274 = vmatpush1.bf16.msra.mxu1 %v1665_v27 }
  0x18   :  { %234 = vmatprep.subr.bf16.mxu0 %v1634_v22  ;;  %275 = vmatprep.subr.bf16.mxu1 %v1671_v28 }
  0x1b   :  { %235 = vmatpush1.bf16.msra.mxu0 %v1653_v25  ;;  %276 = vmatpush1.bf16.msra.mxu1 %v1684_v30 }
  0x1c   :  { %236 = vmatprep.subr.bf16.mxu0 %v1659_v26  ;;  %277 = vmatprep.subr.bf16.mxu1 %v1690_v31 }
  0x1f   :  { %237 = vmatpush1.bf16.msra.mxu0 %v1677_v29  ;;  %278 = vmatpush1.bf16.msra.mxu1 %v1697_v32 }
  0x20   :  { %341 = vmatprep.subr.bf16.mxu0 %v1510_v0  ;;  %382 = vmatprep.subr.bf16.mxu1 %v1540_v6 }
  0x22   :  { %255 = vmatmul.mubr.bf16.vlgmr.msra.gmra.mrb[0].mxu0 %v1481_v33  ;;  %296 = vmatmul.mubr.bf16.vlgmr.msra.gmra.mrb[0].mxu1 %v1481_v33 }
  0x23   :  { %342 = vmatpush1.bf16.msra.mxu0 %v1517_v2  ;;  %373 = vmatprep.mubr.bf16.mxu0 %v1480_v1 }
  0x24   :  { %343 = vmatprep.subr.bf16.mxu0 %v1523_v3  ;;  %383 = vmatpush1.bf16.msra.mxu1 %v1545_v7 }
  0x25   :  { %384 = vmatprep.subr.bf16.mxu1 %v1564_v10  ;;  %414 = vmatprep.mubr.bf16.mxu1 %v1480_v1 }
  0x27   :  { %344 = vmatpush1.bf16.msra.mxu0 %v1529_v4 }
  0x28   :  { %345 = vmatprep.subr.bf16.mxu0 %v1535_v5  ;;  %385 = vmatpush1.bf16.msra.mxu1 %v1569_v11 }
  0x29   :  { %386 = vmatprep.subr.bf16.mxu1 %v1586_v14 }
  0x2b   :  { %346 = vmatpush1.bf16.msra.mxu0 %v1551_v8 }
  0x2c   :  { %347 = vmatprep.subr.bf16.mxu0 %v1558_v9  ;;  %387 = vmatpush1.bf16.msra.mxu1 %v1593_v15 }
  0x2d   :  { %388 = vmatprep.subr.bf16.mxu1 %v1599_v16 }
  0x2f   :  { %348 = vmatpush1.bf16.msra.mxu0 %v1576_v12 }
  0x30   :  { %349 = vmatprep.subr.bf16.mxu0 %v1581_v13  ;;  %389 = vmatpush1.bf16.msra.mxu1 %v1617_v19 }
  0x31   :  { %390 = vmatprep.subr.bf16.mxu1 %v1623_v20 }
  0x33   :  { %350 = vmatpush1.bf16.msra.mxu0 %v1605_v17 }
  0x34   :  { %351 = vmatprep.subr.bf16.mxu0 %v1611_v18  ;;  %391 = vmatpush1.bf16.msra.mxu1 %v1641_v23 }
  0x35   :  { %392 = vmatprep.subr.bf16.mxu1 %v1647_v24 }
  0x37   :  { %352 = vmatpush1.bf16.msra.mxu0 %v1629_v21 }
  0x38   :  { %353 = vmatprep.subr.bf16.mxu0 %v1634_v22  ;;  %393 = vmatpush1.bf16.msra.mxu1 %v1665_v27 }
  0x39   :  { %394 = vmatprep.subr.bf16.mxu1 %v1671_v28 }
  0x3b   :  { %354 = vmatpush1.bf16.msra.mxu0 %v1653_v25 }
  0x3c   :  { %355 = vmatprep.subr.bf16.mxu0 %v1659_v26  ;;  %395 = vmatpush1.bf16.msra.mxu1 %v1684_v30 }
  0x3d   :  { %396 = vmatprep.subr.bf16.mxu1 %v1690_v31 }
  0x3f   :  { %356 = vmatpush1.bf16.msra.mxu0 %v1677_v29 }
  0x40   :  { %461 = vmatprep.subr.bf16.mxu0 %v1510_v0  ;;  %397 = vmatpush1.bf16.msra.mxu1 %v1697_v32 }
  0x41   :  { %502 = vmatprep.subr.bf16.mxu1 %v1540_v6 }
  0xf5   :  { %v256_v37 = vpop.f32.mrb[0].mxu0  ;;  %v297_v47 = vpop.f32.mrb[0].mxu1 }
  0xf6   :  { %v304_v39 = vadd.f32 %v256_v37, %v57_v35  ;;  %v258_v40 = vpop.f32.mrb[1].mxu0  ;;  %v299_v48 = vpop.f32.mrb[1].mxu1  ;;  %v306_v54 = vadd.f32 %v297_v47, %v59_v51 }
  0xf7   :  { %v305_v41 = vadd.f32 %v258_v40, %v58_v36  ;;  %v260_v42 = vpop.f32.mrb[2].mxu0  ;;  %v307_v49 = vadd.f32 %v299_v48, %v60_v45  ;;  %v301_v50 = vpop.f32.mrb[2].mxu1  ;;  %v1228_v40 = vld [vmem:[%s2106_s0 + $0x10] sm:$0xff] }
  0xf8   :  { %v1225_v43 = vmul.f32 -1.442695, %v304_v39  ;;  %v261_v44 = vpop.f32.mrb[3].mxu0  ;;  %v302_v52 = vpop.f32.mrb[3].mxu1  ;;  %v338_v42 = vunpack.c.h.bf16 %v1228_v40 }
  0xf9   :  { %v1226_v46 = vmul.f32 -1.442695, %v305_v41  ;;  %v1227_v53 = vmul.f32 -1.442695, %v307_v49  ;;  %v337_v41 = vunpack.c.l.bf16 %v1228_v40 }
  0xfa   :  { %1320 = vpow2.f32 %v1225_v43 }
  0xfb   :  { %1322 = vpow2.f32 %v1226_v46  ;;  %v1229_v46 = vld [vmem:[%s2106_s0 + $0x18] sm:$0xff] }
  0xfc   :  { %1324 = vpow2.f32 %v1227_v53 }
  0xfd   :  { %1326 = vtanh.f32 %v306_v54 }
 0x104   :  { %v1321_v55 = vpop.eup %1320 }
 0x105   :  { %v1323_v56 = vpop.eup %1322  ;;  %v311_v57 = vadd.f32 1.0, %v1321_v55 }
 0x106   :  { %v317_v58 = vadd.f32 1.0, %v1323_v56  ;;  %v1325_v59 = vpop.eup %1324  ;;  %v340_v56 = vunpack.c.h.bf16 %v1229_v46 }
 0x107   :  { %1328 = vrcp.f32 %v311_v57  ;;  %v1327_v60 = vpop.eup %1326  ;;  %v324_v62 = vadd.f32 1.0, %v1325_v59 }
 0x108   :  { %1330 = vrcp.f32 %v317_v58  ;;  %v339_v58 = vunpack.c.l.bf16 %v1229_v46 }
 0x109   :  { %1332 = vrcp.f32 %v324_v62 }
 0x111   :  { %v1329_v61 = vpop.eup %1328 }
 0x112   :  { %v1331_v63 = vpop.eup %1330  ;;  %v328_v33 = vmul.f32 %v1329_v61, %v1327_v60 }
 0x113   :  { %v327_v34 = vmul.f32 0.0, %v1331_v63  ;;  %v1333_v36 = vpop.eup %1332 }
 0x115   :  { %v1743_v35 = vadd.f32 %v328_v33, %v327_v34 }
 0x117   :  { %1334 = vtanh.f32 %v1743_v35 }
 0x121   :  { %v1335_v37 = vpop.eup %1334 }
 0x122   :  { %v331_v38 = vmul.f32 %v1335_v37, %v1333_v36 }
 0x124   :  { %v332_v39 = vpack.c.bf16 %v331_v38, %v331_v38 }
 0x126   :  { %333 = vst [vmem:[%s2107_s2] sm:$0xf] %v332_v39  ;;  %374 = vmatmul.mubr.bf16.vlgmr.msra.gmra.mrb[4].mxu0 %v332_v39  ;;  %415 = vmatmul.mubr.bf16.vlgmr.msra.gmra.mrb[4].mxu1 %v332_v39 }
 0x127   :  { %462 = vmatpush1.bf16.msra.mxu0 %v1517_v2  ;;  %503 = vmatpush1.bf16.msra.mxu1 %v1545_v7 }
 0x128   :  { %463 = vmatprep.subr.bf16.mxu0 %v1523_v3  ;;  %504 = vmatprep.subr.bf16.mxu1 %v1564_v10 }
 0x129   :  { %493 = vmatprep.mubr.bf16.mxu0 %v1480_v1  ;;  %534 = vmatprep.mubr.bf16.mxu1 %v1480_v1 }
 0x12b   :  { %464 = vmatpush1.bf16.msra.mxu0 %v1529_v4  ;;  %505 = vmatpush1.bf16.msra.mxu1 %v1569_v11 }
 0x12c   :  { %465 = vmatprep.subr.bf16.mxu0 %v1535_v5  ;;  %506 = vmatprep.subr.bf16.mxu1 %v1586_v14 }
 0x12f   :  { %466 = vmatpush1.bf16.msra.mxu0 %v1551_v8  ;;  %507 = vmatpush1.bf16.msra.mxu1 %v1593_v15 }
 0x130   :  { %467 = vmatprep.subr.bf16.mxu0 %v1558_v9  ;;  %508 = vmatprep.subr.bf16.mxu1 %v1599_v16 }
 0x133   :  { %468 = vmatpush1.bf16.msra.mxu0 %v1576_v12  ;;  %509 = vmatpush1.bf16.msra.mxu1 %v1617_v19 }
 0x134   :  { %469 = vmatprep.subr.bf16.mxu0 %v1581_v13  ;;  %510 = vmatprep.subr.bf16.mxu1 %v1623_v20 }
 0x137   :  { %470 = vmatpush1.bf16.msra.mxu0 %v1605_v17  ;;  %511 = vmatpush1.bf16.msra.mxu1 %v1641_v23 }
 0x138   :  { %471 = vmatprep.subr.bf16.mxu0 %v1611_v18  ;;  %512 = vmatprep.subr.bf16.mxu1 %v1647_v24 }
 0x13b   :  { %472 = vmatpush1.bf16.msra.mxu0 %v1629_v21  ;;  %513 = vmatpush1.bf16.msra.mxu1 %v1665_v27 }
 0x13c   :  { %473 = vmatprep.subr.bf16.mxu0 %v1634_v22  ;;  %514 = vmatprep.subr.bf16.mxu1 %v1671_v28 }
 0x13f   :  { %474 = vmatpush1.bf16.msra.mxu0 %v1653_v25  ;;  %515 = vmatpush1.bf16.msra.mxu1 %v1684_v30 }
 0x140   :  { %475 = vmatprep.subr.bf16.mxu0 %v1659_v26  ;;  %516 = vmatprep.subr.bf16.mxu1 %v1690_v31 }
 0x143   :  { %476 = vmatpush1.bf16.msra.mxu0 %v1677_v29  ;;  %517 = vmatpush1.bf16.msra.mxu1 %v1697_v32 }
 0x144   :  { %581 = vmatprep.subr.bf16.mxu0 %v1510_v0  ;;  %622 = vmatprep.subr.bf16.mxu1 %v1540_v6 }
 0x1f9   :  { %v375_v43 = vpop.f32.mrb[4].mxu0  ;;  %v416_v44 = vpop.f32.mrb[4].mxu1 }
 0x1fa   :  { %v423_v45 = vadd.f32 %v375_v43, %v337_v41  ;;  %v377_v47 = vpop.f32.mrb[5].mxu0  ;;  %v418_v48 = vpop.f32.mrb[5].mxu1  ;;  %v425_v60 = vadd.f32 %v416_v44, %v339_v58 }
 0x1fb   :  { %v424_v49 = vadd.f32 %v377_v47, %v338_v42  ;;  %v379_v50 = vpop.f32.mrb[6].mxu0  ;;  %v420_v51 = vpop.f32.mrb[6].mxu1  ;;  %v426_v57 = vadd.f32 %v418_v48, %v340_v56 }
 0x1fc   :  { %v1230_v52 = vmul.f32 -1.442695, %v423_v45  ;;  %v380_v53 = vpop.f32.mrb[7].mxu0  ;;  %v421_v54 = vpop.f32.mrb[7].mxu1 }
 0x1fd   :  { %v1231_v55 = vmul.f32 -1.442695, %v424_v49  ;;  %v1232_v59 = vmul.f32 -1.442695, %v426_v57 }
 0x1fe   :  { %1336 = vpow2.f32 %v1230_v52  ;;  %v1235_v52 = vld [vmem:[%s2106_s0 + $0x28] sm:$0xff] }
 0x1ff   :  { %1338 = vpow2.f32 %v1231_v55 }
 0x200   :  { %1340 = vpow2.f32 %v1232_v59 }
 0x201   :  { %1342 = vtanh.f32 %v425_v60 }
 0x208   :  { %v1337_v61 = vpop.eup %1336 }
 0x209   :  { %v1339_v62 = vpop.eup %1338  ;;  %v430_v63 = vadd.f32 1.0, %v1337_v61 }
 0x20a   :  { %v436_v33 = vadd.f32 1.0, %v1339_v62  ;;  %v1341_v34 = vpop.eup %1340  ;;  %v460_v62 = vunpack.c.h.bf16 %v1235_v52 }
 0x20b   :  { %1344 = vrcp.f32 %v430_v63  ;;  %v1343_v36 = vpop.eup %1342  ;;  %v443_v40 = vadd.f32 1.0, %v1341_v34 }
 0x20c   :  { %1346 = vrcp.f32 %v436_v33  ;;  %v459_v33 = vunpack.c.l.bf16 %v1235_v52 }
 0x20d   :  { %1348 = vrcp.f32 %v443_v40 }
 0x215   :  { %v1345_v37 = vpop.eup %1344 }
 0x216   :  { %v1347_v38 = vpop.eup %1346  ;;  %v447_v39 = vmul.f32 %v1345_v37, %v1343_v36 }
 0x217   :  { %v446_v41 = vmul.f32 %v1347_v38, %v1743_v35  ;;  %v1349_v43 = vpop.eup %1348  ;;  %v1234_v35 = vld [vmem:[%s2106_s0 + $0x20] sm:$0xff] }
 0x218   :  { %v457_v47 = vunpack.c.l.bf16 %v1234_v35  ;;  %v458_v48 = vunpack.c.h.bf16 %v1234_v35 }
 0x219   :  { %v1790_v42 = vadd.f32 %v447_v39, %v446_v41 }
 0x21b   :  { %1350 = vtanh.f32 %v1790_v42 }
 0x225   :  { %v1351_v44 = vpop.eup %1350 }
 0x226   :  { %v450_v45 = vmul.f32 %v1351_v44, %v1349_v43 }
 0x228   :  { %v451_v46 = vpack.c.bf16 %v450_v45, %v450_v45 }
 0x22a   :  { %1233 = vst [vmem:[%s2107_s2 + $0x4] sm:$0xf] %v451_v46  ;;  %494 = vmatmul.mubr.bf16.vlgmr.msra.gmra.mrb[8].mxu0 %v451_v46  ;;  %535 = vmatmul.mubr.bf16.vlgmr.msra.gmra.mrb[8].mxu1 %v451_v46 }
 0x22b   :  { %582 = vmatpush1.bf16.msra.mxu0 %v1517_v2  ;;  %623 = vmatpush1.bf16.msra.mxu1 %v1545_v7 }
 0x22c   :  { %583 = vmatprep.subr.bf16.mxu0 %v1523_v3  ;;  %624 = vmatprep.subr.bf16.mxu1 %v1564_v10 }
 0x22d   :  { %613 = vmatprep.mubr.bf16.mxu0 %v1480_v1  ;;  %654 = vmatprep.mubr.bf16.mxu1 %v1480_v1 }
 0x22f   :  { %584 = vmatpush1.bf16.msra.mxu0 %v1529_v4  ;;  %625 = vmatpush1.bf16.msra.mxu1 %v1569_v11 }
 0x230   :  { %585 = vmatprep.subr.bf16.mxu0 %v1535_v5  ;;  %626 = vmatprep.subr.bf16.mxu1 %v1586_v14 }
 0x233   :  { %586 = vmatpush1.bf16.msra.mxu0 %v1551_v8  ;;  %627 = vmatpush1.bf16.msra.mxu1 %v1593_v15 }
 0x234   :  { %587 = vmatprep.subr.bf16.mxu0 %v1558_v9  ;;  %628 = vmatprep.subr.bf16.mxu1 %v1599_v16 }
 0x237   :  { %588 = vmatpush1.bf16.msra.mxu0 %v1576_v12  ;;  %629 = vmatpush1.bf16.msra.mxu1 %v1617_v19 }
 0x238   :  { %589 = vmatprep.subr.bf16.mxu0 %v1581_v13  ;;  %630 = vmatprep.subr.bf16.mxu1 %v1623_v20 }
 0x23b   :  { %590 = vmatpush1.bf16.msra.mxu0 %v1605_v17  ;;  %631 = vmatpush1.bf16.msra.mxu1 %v1641_v23 }
 0x23c   :  { %591 = vmatprep.subr.bf16.mxu0 %v1611_v18  ;;  %632 = vmatprep.subr.bf16.mxu1 %v1647_v24 }
 0x23f   :  { %592 = vmatpush1.bf16.msra.mxu0 %v1629_v21  ;;  %633 = vmatpush1.bf16.msra.mxu1 %v1665_v27 }
 0x240   :  { %593 = vmatprep.subr.bf16.mxu0 %v1634_v22  ;;  %634 = vmatprep.subr.bf16.mxu1 %v1671_v28 }
 0x243   :  { %594 = vmatpush1.bf16.msra.mxu0 %v1653_v25  ;;  %635 = vmatpush1.bf16.msra.mxu1 %v1684_v30 }
 0x244   :  { %595 = vmatprep.subr.bf16.mxu0 %v1659_v26  ;;  %636 = vmatprep.subr.bf16.mxu1 %v1690_v31 }
 0x247   :  { %596 = vmatpush1.bf16.msra.mxu0 %v1677_v29  ;;  %637 = vmatpush1.bf16.msra.mxu1 %v1697_v32 }
 0x248   :  { %701 = vmatprep.subr.bf16.mxu0 %v1510_v0  ;;  %742 = vmatprep.subr.bf16.mxu1 %v1540_v6 }
 0x2fd   :  { %v495_v49 = vpop.f32.mrb[8].mxu0  ;;  %v536_v50 = vpop.f32.mrb[8].mxu1 }
 0x2fe   :  { %v543_v51 = vadd.f32 %v495_v49, %v457_v47  ;;  %v497_v53 = vpop.f32.mrb[9].mxu0  ;;  %v538_v54 = vpop.f32.mrb[9].mxu1  ;;  %v545_v36 = vadd.f32 %v536_v50, %v459_v33 }
 0x2ff   :  { %v544_v55 = vadd.f32 %v497_v53, %v458_v48  ;;  %v499_v56 = vpop.f32.mrb[10].mxu0  ;;  %v540_v57 = vpop.f32.mrb[10].mxu1  ;;  %v546_v63 = vadd.f32 %v538_v54, %v460_v62 }
 0x300   :  { %v1236_v58 = vmul.f32 -1.442695, %v543_v51  ;;  %v500_v59 = vpop.f32.mrb[11].mxu0  ;;  %v541_v60 = vpop.f32.mrb[11].mxu1 }
 0x301   :  { %v1237_v61 = vmul.f32 -1.442695, %v544_v55  ;;  %v1238_v34 = vmul.f32 -1.442695, %v546_v63 }
 0x302   :  { %1352 = vpow2.f32 %v1236_v58  ;;  %v1241_v58 = vld [vmem:[%s2106_s0 + $0x38] sm:$0xff] }
 0x303   :  { %1354 = vpow2.f32 %v1237_v61 }
 0x304   :  { %1356 = vpow2.f32 %v1238_v34 }
 0x305   :  { %1358 = vtanh.f32 %v545_v36 }
 0x30c   :  { %v1353_v37 = vpop.eup %1352 }
 0x30d   :  { %v1355_v38 = vpop.eup %1354  ;;  %v550_v39 = vadd.f32 1.0, %v1353_v37 }
 0x30e   :  { %v556_v40 = vadd.f32 1.0, %v1355_v38  ;;  %v1357_v41 = vpop.eup %1356  ;;  %v580_v38 = vunpack.c.h.bf16 %v1241_v58 }
 0x30f   :  { %1360 = vrcp.f32 %v550_v39  ;;  %v1359_v43 = vpop.eup %1358  ;;  %v563_v35 = vadd.f32 1.0, %v1357_v41 }
 0x310   :  { %1362 = vrcp.f32 %v556_v40  ;;  %v579_v40 = vunpack.c.l.bf16 %v1241_v58 }
 0x311   :  { %1364 = vrcp.f32 %v563_v35 }
 0x319   :  { %v1361_v44 = vpop.eup %1360 }
 0x31a   :  { %v1363_v45 = vpop.eup %1362  ;;  %v567_v46 = vmul.f32 %v1361_v44, %v1359_v43 }
 0x31b   :  { %v566_v47 = vmul.f32 %v1363_v45, %v1790_v42  ;;  %v1365_v49 = vpop.eup %1364  ;;  %v1240_v42 = vld [vmem:[%s2106_s0 + $0x30] sm:$0xff] }
 0x31c   :  { %v577_v53 = vunpack.c.l.bf16 %v1240_v42  ;;  %v578_v54 = vunpack.c.h.bf16 %v1240_v42 }
 0x31d   :  { %v1837_v48 = vadd.f32 %v567_v46, %v566_v47 }
 0x31f   :  { %1366 = vtanh.f32 %v1837_v48 }
 0x329   :  { %v1367_v50 = vpop.eup %1366 }
 0x32a   :  { %v570_v51 = vmul.f32 %v1367_v50, %v1365_v49 }
 0x32c   :  { %v571_v52 = vpack.c.bf16 %v570_v51, %v570_v51 }
 0x32e   :  { %1239 = vst [vmem:[%s2107_s2 + $0x8] sm:$0xf] %v571_v52  ;;  %614 = vmatmul.mubr.bf16.vlgmr.msra.gmra.mrb[12].mxu0 %v571_v52  ;;  %655 = vmatmul.mubr.bf16.vlgmr.msra.gmra.mrb[12].mxu1 %v571_v52 }
 0x32f   :  { %702 = vmatpush1.bf16.msra.mxu0 %v1517_v2  ;;  %743 = vmatpush1.bf16.msra.mxu1 %v1545_v7 }
 0x330   :  { %703 = vmatprep.subr.bf16.mxu0 %v1523_v3  ;;  %744 = vmatprep.subr.bf16.mxu1 %v1564_v10 }
 0x331   :  { %733 = vmatprep.mubr.bf16.mxu0 %v1480_v1  ;;  %774 = vmatprep.mubr.bf16.mxu1 %v1480_v1 }
 0x333   :  { %704 = vmatpush1.bf16.msra.mxu0 %v1529_v4  ;;  %745 = vmatpush1.bf16.msra.mxu1 %v1569_v11 }
 0x334   :  { %705 = vmatprep.subr.bf16.mxu0 %v1535_v5  ;;  %746 = vmatprep.subr.bf16.mxu1 %v1586_v14 }
 0x337   :  { %706 = vmatpush1.bf16.msra.mxu0 %v1551_v8  ;;  %747 = vmatpush1.bf16.msra.mxu1 %v1593_v15 }
 0x338   :  { %707 = vmatprep.subr.bf16.mxu0 %v1558_v9  ;;  %748 = vmatprep.subr.bf16.mxu1 %v1599_v16 }
 0x33b   :  { %708 = vmatpush1.bf16.msra.mxu0 %v1576_v12  ;;  %749 = vmatpush1.bf16.msra.mxu1 %v1617_v19 }
 0x33c   :  { %709 = vmatprep.subr.bf16.mxu0 %v1581_v13  ;;  %750 = vmatprep.subr.bf16.mxu1 %v1623_v20 }
 0x33f   :  { %710 = vmatpush1.bf16.msra.mxu0 %v1605_v17  ;;  %751 = vmatpush1.bf16.msra.mxu1 %v1641_v23 }
 0x340   :  { %711 = vmatprep.subr.bf16.mxu0 %v1611_v18  ;;  %752 = vmatprep.subr.bf16.mxu1 %v1647_v24 }
 0x343   :  { %712 = vmatpush1.bf16.msra.mxu0 %v1629_v21  ;;  %753 = vmatpush1.bf16.msra.mxu1 %v1665_v27 }
 0x344   :  { %713 = vmatprep.subr.bf16.mxu0 %v1634_v22  ;;  %754 = vmatprep.subr.bf16.mxu1 %v1671_v28 }
 0x347   :  { %714 = vmatpush1.bf16.msra.mxu0 %v1653_v25  ;;  %755 = vmatpush1.bf16.msra.mxu1 %v1684_v30 }
 0x348   :  { %715 = vmatprep.subr.bf16.mxu0 %v1659_v26  ;;  %756 = vmatprep.subr.bf16.mxu1 %v1690_v31 }
 0x34b   :  { %716 = vmatpush1.bf16.msra.mxu0 %v1677_v29  ;;  %757 = vmatpush1.bf16.msra.mxu1 %v1697_v32 }
 0x34c   :  { %821 = vmatprep.subr.bf16.mxu0 %v1510_v0  ;;  %862 = vmatprep.subr.bf16.mxu1 %v1540_v6 }
 0x401   :  { %v615_v55 = vpop.f32.mrb[12].mxu0  ;;  %v656_v56 = vpop.f32.mrb[12].mxu1 }
 0x402   :  { %v663_v57 = vadd.f32 %v615_v55, %v577_v53  ;;  %v617_v59 = vpop.f32.mrb[13].mxu0  ;;  %v658_v60 = vpop.f32.mrb[13].mxu1  ;;  %v665_v43 = vadd.f32 %v656_v56, %v579_v40 }
 0x403   :  { %v664_v61 = vadd.f32 %v617_v59, %v578_v54  ;;  %v619_v62 = vpop.f32.mrb[14].mxu0  ;;  %v660_v63 = vpop.f32.mrb[14].mxu1  ;;  %v666_v39 = vadd.f32 %v658_v60, %v580_v38 }
 0x404   :  { %v1242_v33 = vmul.f32 -1.442695, %v663_v57  ;;  %v620_v34 = vpop.f32.mrb[15].mxu0  ;;  %v661_v36 = vpop.f32.mrb[15].mxu1 }
 0x405   :  { %v1243_v37 = vmul.f32 -1.442695, %v664_v61  ;;  %v1244_v41 = vmul.f32 -1.442695, %v666_v39 }
 0x406   :  { %1368 = vpow2.f32 %v1242_v33  ;;  %v1247_v33 = vld [vmem:[%s2106_s0 + $0x48] sm:$0xff] }
 0x407   :  { %1370 = vpow2.f32 %v1243_v37 }
 0x408   :  { %1372 = vpow2.f32 %v1244_v41 }
 0x409   :  { %1374 = vtanh.f32 %v665_v43  ;;  %v700_v43 = vunpack.c.h.bf16 %v1247_v33 }
 0x410   :  { %v1369_v44 = vpop.eup %1368 }
 0x411   :  { %v1371_v45 = vpop.eup %1370  ;;  %v670_v46 = vadd.f32 1.0, %v1369_v44 }
 0x412   :  { %v676_v35 = vadd.f32 1.0, %v1371_v45  ;;  %v1373_v47 = vpop.eup %1372  ;;  %v699_v45 = vunpack.c.l.bf16 %v1247_v33 }
 0x413   :  { %1376 = vrcp.f32 %v670_v46  ;;  %v1375_v49 = vpop.eup %1374  ;;  %v683_v42 = vadd.f32 1.0, %v1373_v47 }
 0x414   :  { %1378 = vrcp.f32 %v676_v35 }
 0x415   :  { %1380 = vrcp.f32 %v683_v42 }
 0x41d   :  { %v1377_v50 = vpop.eup %1376 }
 0x41e   :  { %v1379_v51 = vpop.eup %1378  ;;  %v687_v52 = vmul.f32 %v1377_v50, %v1375_v49 }
 0x41f   :  { %v686_v53 = vmul.f32 %v1379_v51, %v1837_v48  ;;  %v1381_v55 = vpop.eup %1380  ;;  %v1246_v48 = vld [vmem:[%s2106_s0 + $0x40] sm:$0xff] }
 0x420   :  { %v697_v59 = vunpack.c.l.bf16 %v1246_v48  ;;  %v698_v60 = vunpack.c.h.bf16 %v1246_v48 }
 0x421   :  { %v1884_v54 = vadd.f32 %v687_v52, %v686_v53 }
 0x423   :  { %1382 = vtanh.f32 %v1884_v54 }
 0x42d   :  { %v1383_v56 = vpop.eup %1382 }
 0x42e   :  { %v690_v57 = vmul.f32 %v1383_v56, %v1381_v55 }
 0x430   :  { %v691_v58 = vpack.c.bf16 %v690_v57, %v690_v57 }
 0x432   :  { %1245 = vst [vmem:[%s2107_s2 + $0xc] sm:$0xf] %v691_v58  ;;  %734 = vmatmul.mubr.bf16.vlgmr.msra.gmra.mrb[16].mxu0 %v691_v58  ;;  %775 = vmatmul.mubr.bf16.vlgmr.msra.gmra.mrb[16].mxu1 %v691_v58 }
 0x433   :  { %822 = vmatpush1.bf16.msra.mxu0 %v1517_v2  ;;  %863 = vmatpush1.bf16.msra.mxu1 %v1545_v7 }
 0x434   :  { %823 = vmatprep.subr.bf16.mxu0 %v1523_v3  ;;  %864 = vmatprep.subr.bf16.mxu1 %v1564_v10 }
 0x435   :  { %853 = vmatprep.mubr.bf16.mxu0 %v1480_v1  ;;  %894 = vmatprep.mubr.bf16.mxu1 %v1480_v1 }
 0x437   :  { %824 = vmatpush1.bf16.msra.mxu0 %v1529_v4  ;;  %865 = vmatpush1.bf16.msra.mxu1 %v1569_v11 }
 0x438   :  { %825 = vmatprep.subr.bf16.mxu0 %v1535_v5  ;;  %866 = vmatprep.subr.bf16.mxu1 %v1586_v14 }
 0x43b   :  { %826 = vmatpush1.bf16.msra.mxu0 %v1551_v8  ;;  %867 = vmatpush1.bf16.msra.mxu1 %v1593_v15 }
 0x43c   :  { %827 = vmatprep.subr.bf16.mxu0 %v1558_v9  ;;  %868 = vmatprep.subr.bf16.mxu1 %v1599_v16 }
 0x43f   :  { %828 = vmatpush1.bf16.msra.mxu0 %v1576_v12  ;;  %869 = vmatpush1.bf16.msra.mxu1 %v1617_v19 }
 0x440   :  { %829 = vmatprep.subr.bf16.mxu0 %v1581_v13  ;;  %870 = vmatprep.subr.bf16.mxu1 %v1623_v20 }
 0x443   :  { %830 = vmatpush1.bf16.msra.mxu0 %v1605_v17  ;;  %871 = vmatpush1.bf16.msra.mxu1 %v1641_v23 }
 0x444   :  { %831 = vmatprep.subr.bf16.mxu0 %v1611_v18  ;;  %872 = vmatprep.subr.bf16.mxu1 %v1647_v24 }
 0x447   :  { %832 = vmatpush1.bf16.msra.mxu0 %v1629_v21  ;;  %873 = vmatpush1.bf16.msra.mxu1 %v1665_v27 }
 0x448   :  { %833 = vmatprep.subr.bf16.mxu0 %v1634_v22  ;;  %874 = vmatprep.subr.bf16.mxu1 %v1671_v28 }
 0x44b   :  { %834 = vmatpush1.bf16.msra.mxu0 %v1653_v25  ;;  %875 = vmatpush1.bf16.msra.mxu1 %v1684_v30 }
 0x44c   :  { %835 = vmatprep.subr.bf16.mxu0 %v1659_v26  ;;  %876 = vmatprep.subr.bf16.mxu1 %v1690_v31 }
 0x44f   :  { %836 = vmatpush1.bf16.msra.mxu0 %v1677_v29  ;;  %877 = vmatpush1.bf16.msra.mxu1 %v1697_v32 }
 0x450   :  { %941 = vmatprep.subr.bf16.mxu0 %v1510_v0  ;;  %982 = vmatprep.subr.bf16.mxu1 %v1540_v6 }
 0x505   :  { %v735_v61 = vpop.f32.mrb[16].mxu0  ;;  %v776_v62 = vpop.f32.mrb[16].mxu1 }
 0x506   :  { %v783_v63 = vadd.f32 %v735_v61, %v697_v59  ;;  %v737_v34 = vpop.f32.mrb[17].mxu0  ;;  %v778_v36 = vpop.f32.mrb[17].mxu1  ;;  %v785_v35 = vadd.f32 %v776_v62, %v699_v45  ;;  %v1455_v45 = vld [vmem:[%s2105_s1 + $0x28] ss:$16 sps:$4 sm:$0xff]  }
 0x507   :  { %v784_v37 = vadd.f32 %v737_v34, %v698_v60  ;;  %v739_v38 = vpop.f32.mrb[18].mxu0  ;;  %v780_v0 = vpop.f32.mrb[18].mxu1  ;;  %v786_v44 = vadd.f32 %v778_v36, %v700_v43  ;;  %v1453_v43 = vld [vmem:[%s2105_s1 + $0x2c] ss:$16 sps:$4 sm:$0xff]  }
 0x508   :  { %v1248_v39 = vmul.f32 -1.442695, %v783_v63  ;;  %v740_v6 = vpop.f32.mrb[19].mxu0  ;;  %v781_v40 = vpop.f32.mrb[19].mxu1 }
 0x509   :  { %v1249_v41 = vmul.f32 -1.442695, %v784_v37  ;;  %v1250_v46 = vmul.f32 -1.442695, %v786_v44  ;;  %v1450_v6 = vld [vmem:[%s2105_s1] ss:$16 sps:$4 sm:$0xff]  }
 0x50a   :  { %1384 = vpow2.f32 %v1248_v39  ;;  %v1451_v40 = vld [vmem:[%s2105_s1 + $0x8] ss:$16 sps:$4 sm:$0xff]   ;;  %v1454_v44 = vld [vmem:[%s2105_s1 + $0x20] ss:$16 sps:$4 sm:$0xff]  }
 0x50b   :  { %1386 = vpow2.f32 %v1249_v41  ;;  %v1452_v41 = vld [vmem:[%s2105_s1 + $0x24] ss:$16 sps:$4 sm:$0xff]  }
 0x50c   :  { %1388 = vpow2.f32 %v1250_v46  ;;  %v1456_v46 = vld [vmem:[%s2105_s1 + $0x44] ss:$16 sps:$4 sm:$0xff]  }
 0x50d   :  { %1390 = vtanh.f32 %v785_v35  ;;  %v1457_v35 = vld [vmem:[%s2105_s1 + $0x4c] ss:$16 sps:$4 sm:$0xff]  }
 0x514   :  { %v1385_v47 = vpop.eup %1384 }
 0x515   :  { %v1387_v49 = vpop.eup %1386  ;;  %v790_v50 = vadd.f32 1.0, %v1385_v47  ;;  %v1459_v47 = vld [vmem:[%s2105_s1 + $0x48] ss:$16 sps:$4 sm:$0xff]  }
 0x516   :  { %v796_v51 = vadd.f32 1.0, %v1387_v49  ;;  %v1389_v52 = vpop.eup %1388  ;;  %v1460_v49 = vld [vmem:[%s2105_s1 + $0x64] ss:$16 sps:$4 sm:$0xff]  }
 0x517   :  { %1392 = vrcp.f32 %v790_v50  ;;  %v1391_v42 = vpop.eup %1390  ;;  %v803_v57 = vadd.f32 1.0, %v1389_v52  ;;  %v1461_v50 = vld [vmem:[%s2105_s1 + $0x6c] ss:$16 sps:$4 sm:$0xff]   ;;  %v1463_v52 = vld [vmem:[%s2105_s1 + $0x68] ss:$16 sps:$4 sm:$0xff]  }
 0x518   :  { %1394 = vrcp.f32 %v796_v51  ;;  %v1462_v51 = vld [vmem:[%s2105_s1 + $0x60] ss:$16 sps:$4 sm:$0xff]  }
 0x519   :  { %1396 = vrcp.f32 %v803_v57  ;;  %v1468_v57 = vld [vmem:[%s2105_s1 + $0xa4] ss:$16 sps:$4 sm:$0xff]  }
 0x521   :  { %v1393_v53 = vpop.eup %1392 }
 0x522   :  { %v1395_v55 = vpop.eup %1394  ;;  %v807_v56 = vmul.f32 %v1393_v53, %v1391_v42  ;;  %v1464_v42 = vld [vmem:[%s2105_s1 + $0x84] ss:$16 sps:$4 sm:$0xff]   ;;  %v1465_v53 = vld [vmem:[%s2105_s1 + $0x8c] ss:$16 sps:$4 sm:$0xff]  }
 0x523   :  { %v806_v58 = vmul.f32 %v1395_v55, %v1884_v54  ;;  %v1397_v59 = vpop.eup %1396  ;;  %v1466_v55 = vld [vmem:[%s2105_s1 + $0x80] ss:$16 sps:$4 sm:$0xff]  }
 0x525   :  { %v1931_v48 = vadd.f32 %v807_v56, %v806_v58  ;;  %v1467_v56 = vld [vmem:[%s2105_s1 + $0x88] ss:$16 sps:$4 sm:$0xff]   ;;  %v1469_v58 = vld [vmem:[%s2105_s1 + $0xac] ss:$16 sps:$4 sm:$0xff]  }
 0x527   :  { %1398 = vtanh.f32 %v1931_v48 }
 0x531   :  { %v1399_v60 = vpop.eup %1398 }
 0x532   :  { %v810_v61 = vmul.f32 %v1399_v60, %v1397_v59  ;;  %v1471_v59 = vld [vmem:[%s2105_s1 + $0xa8] ss:$16 sps:$4 sm:$0xff]   ;;  %v1472_v60 = vld [vmem:[%s2105_s1 + $0xc4] ss:$16 sps:$4 sm:$0xff]  }
 0x534   :  { %v811_v62 = vpack.c.bf16 %v810_v61, %v810_v61  ;;  %v1473_v61 = vld [vmem:[%s2105_s1 + $0xcc] ss:$16 sps:$4 sm:$0xff]  }
 0x536   :  { %1251 = vst [vmem:[%s2107_s2 + $0x10] sm:$0xf] %v811_v62  ;;  %854 = vmatmul.mubr.bf16.vlgmr.msra.gmra.mrb[20].mxu0 %v811_v62  ;;  %895 = vmatmul.mubr.bf16.vlgmr.msra.gmra.mrb[20].mxu1 %v811_v62  ;;  %v1474_v62 = vld [vmem:[%s2105_s1 + $0xc0] ss:$16 sps:$4 sm:$0xff]  }
 0x537   :  { %942 = vmatpush1.bf16.msra.mxu0 %v1517_v2  ;;  %983 = vmatpush1.bf16.msra.mxu1 %v1545_v7  ;;  %v1448_v2 = vld [vmem:[%s2105_s1 + $0x4] ss:$16 sps:$4 sm:$0xff]  }
 0x538   :  { %943 = vmatprep.subr.bf16.mxu0 %v1523_v3  ;;  %984 = vmatprep.subr.bf16.mxu1 %v1564_v10  ;;  %v1449_v3 = vld [vmem:[%s2105_s1 + $0xc] ss:$16 sps:$4 sm:$0xff]  }
 0x539   :  { %973 = vmatprep.mubr.bf16.mxu0 %v1480_v1  ;;  %1014 = vmatprep.mubr.bf16.mxu1 %v1480_v1 }
 0x53b   :  { %944 = vmatpush1.bf16.msra.mxu0 %v1529_v4  ;;  %985 = vmatpush1.bf16.msra.mxu1 %v1569_v11  ;;  %v1252_v4 = vld [vmem:[%s2106_s0 + $0x50] sm:$0xff]  ;;  %v1253_v11 = vld [vmem:[%s2106_s0 + $0x58] sm:$0xff] }
 0x53c   :  { %945 = vmatprep.subr.bf16.mxu0 %v1535_v5  ;;  %986 = vmatprep.subr.bf16.mxu1 %v1586_v14  ;;  %v817_v5 = vunpack.c.l.bf16 %v1252_v4  ;;  %v818_v7 = vunpack.c.h.bf16 %v1252_v4  ;;  %v1477_v4 = vld [vmem:[%s2105_s1 + $0xec] ss:$16 sps:$4 sm:$0xff]  }
 0x53f   :  { %946 = vmatpush1.bf16.msra.mxu0 %v1551_v8  ;;  %987 = vmatpush1.bf16.msra.mxu1 %v1593_v15 }
 0x540   :  { %947 = vmatprep.subr.bf16.mxu0 %v1558_v9  ;;  %988 = vmatprep.subr.bf16.mxu1 %v1599_v16 }
 0x543   :  { %948 = vmatpush1.bf16.msra.mxu0 %v1576_v12  ;;  %989 = vmatpush1.bf16.msra.mxu1 %v1617_v19 }
 0x544   :  { %949 = vmatprep.subr.bf16.mxu0 %v1581_v13  ;;  %990 = vmatprep.subr.bf16.mxu1 %v1623_v20 }
 0x547   :  { %950 = vmatpush1.bf16.msra.mxu0 %v1605_v17  ;;  %991 = vmatpush1.bf16.msra.mxu1 %v1641_v23  ;;  %v819_v23 = vunpack.c.l.bf16 %v1253_v11 }
 0x548   :  { %951 = vmatprep.subr.bf16.mxu0 %v1611_v18  ;;  %992 = vmatprep.subr.bf16.mxu1 %v1647_v24 }
 0x54b   :  { %952 = vmatpush1.bf16.msra.mxu0 %v1629_v21  ;;  %993 = vmatpush1.bf16.msra.mxu1 %v1665_v27  ;;  %v820_v21 = vunpack.c.h.bf16 %v1253_v11 }
 0x54c   :  { %953 = vmatprep.subr.bf16.mxu0 %v1634_v22  ;;  %994 = vmatprep.subr.bf16.mxu1 %v1671_v28 }
 0x54f   :  { %954 = vmatpush1.bf16.msra.mxu0 %v1653_v25  ;;  %995 = vmatpush1.bf16.msra.mxu1 %v1684_v30 }
 0x550   :  { %955 = vmatprep.subr.bf16.mxu0 %v1659_v26  ;;  %996 = vmatprep.subr.bf16.mxu1 %v1690_v31 }
 0x553   :  { %956 = vmatpush1.bf16.msra.mxu0 %v1677_v29  ;;  %997 = vmatpush1.bf16.msra.mxu1 %v1697_v32 }
 0x554   :  { %1061 = vmatprep.subr.bf16.mxu0 %v1448_v2  ;;  %1102 = vmatprep.subr.bf16.mxu1 %v1449_v3  ;;  %v1475_v2 = vld [vmem:[%s2105_s1 + $0xc8] ss:$16 sps:$4 sm:$0xff]   ;;  %v1476_v3 = vld [vmem:[%s2105_s1 + $0xe4] ss:$16 sps:$4 sm:$0xff]  }
 0x609   :  { %v855_v8 = vpop.f32.mrb[20].mxu0  ;;  %v896_v9 = vpop.f32.mrb[20].mxu1 }
 0x60a   :  { %v903_v10 = vadd.f32 %v855_v8, %v817_v5  ;;  %v857_v12 = vpop.f32.mrb[21].mxu0  ;;  %v898_v13 = vpop.f32.mrb[21].mxu1  ;;  %v905_v25 = vadd.f32 %v896_v9, %v819_v23  ;;  %v1478_v5 = vld [vmem:[%s2105_s1 + $0xe0] ss:$16 sps:$4 sm:$0xff]  }
 0x60b   :  { %v904_v14 = vadd.f32 %v857_v12, %v818_v7  ;;  %v859_v15 = vpop.f32.mrb[22].mxu0  ;;  %v900_v16 = vpop.f32.mrb[22].mxu1  ;;  %v906_v22 = vadd.f32 %v898_v13, %v820_v21  ;;  %v1479_v7 = vld [vmem:[%s2105_s1 + $0xe8] ss:$16 sps:$4 sm:$0xff]   ;;  %v1258_v8 = vld [vmem:[%s2106_s0 + $0x60] sm:$0xff] }
 0x60c   :  { %v1254_v17 = vmul.f32 -1.442695, %v903_v10  ;;  %v860_v18 = vpop.f32.mrb[23].mxu0  ;;  %v901_v19 = vpop.f32.mrb[23].mxu1  ;;  %v937_v9 = vunpack.c.l.bf16 %v1258_v8  ;;  %v938_v10 = vunpack.c.h.bf16 %v1258_v8 }
 0x60d   :  { %v1255_v20 = vmul.f32 -1.442695, %v904_v14  ;;  %v1256_v24 = vmul.f32 -1.442695, %v906_v22  ;;  %v1259_v14 = vld [vmem:[%s2106_s0 + $0x68] sm:$0xff] }
 0x60e   :  { %1400 = vpow2.f32 %v1254_v17 }
 0x60f   :  { %1402 = vpow2.f32 %v1255_v20 }
 0x610   :  { %1404 = vpow2.f32 %v1256_v24  ;;  %v940_v24 = vunpack.c.h.bf16 %v1259_v14 }
 0x611   :  { %1406 = vtanh.f32 %v905_v25 }
 0x618   :  { %v1401_v26 = vpop.eup %1400 }
 0x619   :  { %v1403_v27 = vpop.eup %1402  ;;  %v910_v28 = vadd.f32 1.0, %v1401_v26  ;;  %v939_v26 = vunpack.c.l.bf16 %v1259_v14 }
 0x61a   :  { %v916_v29 = vadd.f32 1.0, %v1403_v27  ;;  %v1405_v30 = vpop.eup %1404 }
 0x61b   :  { %1408 = vrcp.f32 %v910_v28  ;;  %v1407_v31 = vpop.eup %1406  ;;  %v923_v33 = vadd.f32 1.0, %v1405_v30 }
 0x61c   :  { %1410 = vrcp.f32 %v916_v29 }
 0x61d   :  { %1412 = vrcp.f32 %v923_v33 }
 0x625   :  { %v1409_v32 = vpop.eup %1408 }
 0x626   :  { %v1411_v54 = vpop.eup %1410  ;;  %v927_v63 = vmul.f32 %v1409_v32, %v1407_v31 }
 0x627   :  { %v926_v34 = vmul.f32 %v1411_v54, %v1931_v48  ;;  %v1413_v37 = vpop.eup %1412  ;;  %v1470_v48 = vld [vmem:[%s2105_s1 + $0xa0] ss:$16 sps:$4 sm:$0xff]  }
 0x629   :  { %v1982_v36 = vadd.f32 %v927_v63, %v926_v34 }
 0x62b   :  { %1414 = vtanh.f32 %v1982_v36 }
 0x635   :  { %v1415_v38 = vpop.eup %1414 }
 0x636   :  { %v930_v0 = vmul.f32 %v1415_v38, %v1413_v37 }
 0x638   :  { %v931_v39 = vpack.c.bf16 %v930_v0, %v930_v0 }
 0x63a   :  { %1257 = vst [vmem:[%s2107_s2 + $0x14] sm:$0xf] %v931_v39  ;;  %974 = vmatmul.mubr.bf16.vlgmr.msra.gmra.mrb[24].mxu0 %v931_v39  ;;  %1015 = vmatmul.mubr.bf16.vlgmr.msra.gmra.mrb[24].mxu1 %v931_v39 }
 0x63b   :  { %1062 = vmatpush1.bf16.msra.mxu0 %v1450_v6  ;;  %1103 = vmatpush1.bf16.msra.mxu1 %v1451_v40 }
 0x63c   :  { %1063 = vmatprep.subr.bf16.mxu0 %v1452_v41  ;;  %1104 = vmatprep.subr.bf16.mxu1 %v1453_v43 }
 0x63d   :  { %1093 = vmatprep.mubr.bf16.mxu0 %v1480_v1  ;;  %1134 = vmatprep.mubr.bf16.mxu1 %v1480_v1  ;;  %v1458_v1 = vld [vmem:[%s2105_s1 + $0x40] ss:$16 sps:$4 sm:$0xff]  }
 0x63f   :  { %1064 = vmatpush1.bf16.msra.mxu0 %v1454_v44  ;;  %1105 = vmatpush1.bf16.msra.mxu1 %v1455_v45  ;;  %v1264_v44 = vld [vmem:[%s2106_s0 + $0x70] sm:$0xff] }
 0x640   :  { %1065 = vmatprep.subr.bf16.mxu0 %v1456_v46  ;;  %1106 = vmatprep.subr.bf16.mxu1 %v1457_v35  ;;  %v1057_v45 = vunpack.c.l.bf16 %v1264_v44  ;;  %v1058_v46 = vunpack.c.h.bf16 %v1264_v44 }
 0x643   :  { %1066 = vmatpush1.bf16.msra.mxu0 %v1458_v1  ;;  %1107 = vmatpush1.bf16.msra.mxu1 %v1459_v47  ;;  %v1265_v47 = vld [vmem:[%s2106_s0 + $0x78] sm:$0xff] }
 0x644   :  { %1067 = vmatprep.subr.bf16.mxu0 %v1460_v49  ;;  %1108 = vmatprep.subr.bf16.mxu1 %v1461_v50 }
 0x647   :  { %1068 = vmatpush1.bf16.msra.mxu0 %v1462_v51  ;;  %1109 = vmatpush1.bf16.msra.mxu1 %v1463_v52 }
 0x648   :  { %1069 = vmatprep.subr.bf16.mxu0 %v1464_v42  ;;  %1110 = vmatprep.subr.bf16.mxu1 %v1465_v53 }
 0x64b   :  { %1070 = vmatpush1.bf16.msra.mxu0 %v1466_v55  ;;  %1111 = vmatpush1.bf16.msra.mxu1 %v1467_v56 }
 0x64c   :  { %1071 = vmatprep.subr.bf16.mxu0 %v1468_v57  ;;  %1112 = vmatprep.subr.bf16.mxu1 %v1469_v58  ;;  %v1060_v58 = vunpack.c.h.bf16 %v1265_v47 }
 0x64f   :  { %1072 = vmatpush1.bf16.msra.mxu0 %v1470_v48  ;;  %1113 = vmatpush1.bf16.msra.mxu1 %v1471_v59  ;;  %v1059_v59 = vunpack.c.l.bf16 %v1265_v47 }
 0x650   :  { %1073 = vmatprep.subr.bf16.mxu0 %v1472_v60  ;;  %1114 = vmatprep.subr.bf16.mxu1 %v1473_v61 }
 0x653   :  { %1074 = vmatpush1.bf16.msra.mxu0 %v1474_v62  ;;  %1115 = vmatpush1.bf16.msra.mxu1 %v1475_v2 }
 0x654   :  { %1075 = vmatprep.subr.bf16.mxu0 %v1476_v3  ;;  %1116 = vmatprep.subr.bf16.mxu1 %v1477_v4 }
 0x657   :  { %1076 = vmatpush1.bf16.msra.mxu0 %v1478_v5  ;;  %1117 = vmatpush1.bf16.msra.mxu1 %v1479_v7 }
 0x70d   :  { %v975_v11 = vpop.f32.mrb[24].mxu0  ;;  %v1016_v12 = vpop.f32.mrb[24].mxu1 }
 0x70e   :  { %v1023_v13 = vadd.f32 %v975_v11, %v937_v9  ;;  %v977_v15 = vpop.f32.mrb[25].mxu0  ;;  %v1018_v16 = vpop.f32.mrb[25].mxu1  ;;  %v1025_v28 = vadd.f32 %v1016_v12, %v939_v26 }
 0x70f   :  { %v1024_v17 = vadd.f32 %v977_v15, %v938_v10  ;;  %v979_v18 = vpop.f32.mrb[26].mxu0  ;;  %v1020_v19 = vpop.f32.mrb[26].mxu1  ;;  %v1026_v25 = vadd.f32 %v1018_v16, %v940_v24 }
 0x710   :  { %v1260_v20 = vmul.f32 -1.442695, %v1023_v13  ;;  %v980_v21 = vpop.f32.mrb[27].mxu0  ;;  %v1021_v22 = vpop.f32.mrb[27].mxu1 }
 0x711   :  { %v1261_v23 = vmul.f32 -1.442695, %v1024_v17  ;;  %v1262_v27 = vmul.f32 -1.442695, %v1026_v25 }
 0x712   :  { %1416 = vpow2.f32 %v1260_v20 }
 0x713   :  { %1418 = vpow2.f32 %v1261_v23 }
 0x714   :  { %1420 = vpow2.f32 %v1262_v27 }
 0x715   :  { %1422 = vtanh.f32 %v1025_v28 }
 0x71c   :  { %v1417_v29 = vpop.eup %1416 }
 0x71d   :  { %v1419_v30 = vpop.eup %1418  ;;  %v1030_v31 = vadd.f32 1.0, %v1417_v29 }
 0x71e   :  { %v1036_v32 = vadd.f32 1.0, %v1419_v30  ;;  %v1421_v54 = vpop.eup %1420 }
 0x71f   :  { %1424 = vrcp.f32 %v1030_v31  ;;  %v1423_v63 = vpop.eup %1422  ;;  %v1043_v38 = vadd.f32 1.0, %v1421_v54 }
 0x720   :  { %1426 = vrcp.f32 %v1036_v32 }
 0x721   :  { %1428 = vrcp.f32 %v1043_v38 }
 0x729   :  { %v1425_v33 = vpop.eup %1424 }
 0x72a   :  { %v1427_v34 = vpop.eup %1426  ;;  %v1047_v37 = vmul.f32 %v1425_v33, %v1423_v63 }
 0x72b   :  { %v1046_v0 = vmul.f32 %v1427_v34, %v1982_v36  ;;  %v1429_v6 = vpop.eup %1428 }
 0x72d   :  { %v1048_v39 = vadd.f32 %v1047_v37, %v1046_v0 }
 0x72f   :  { %1430 = vtanh.f32 %v1048_v39 }
 0x739   :  { %v1431_v40 = vpop.eup %1430 }
 0x73a   :  { %v1050_v41 = vmul.f32 %v1431_v40, %v1429_v6 }
 0x73c   :  { %v1051_v43 = vpack.c.bf16 %v1050_v41, %v1050_v41 }
 0x73e   :  { %1263 = vst [vmem:[%s2107_s2 + $0x18] sm:$0xf] %v1051_v43  ;;  %1094 = vmatmul.mubr.bf16.vlgmr.msra.gmra.mrb[28].mxu0 %v1051_v43  ;;  %1135 = vmatmul.mubr.bf16.vlgmr.msra.gmra.mrb[28].mxu1 %v1051_v43 }
 0x811   :  { %v1095_v36 = vpop.f32.mrb[28].mxu0  ;;  %v1136_v35 = vpop.f32.mrb[28].mxu1 }
 0x812   :  { %v1143_v1 = vadd.f32 %v1095_v36, %v1057_v45  ;;  %v1097_v49 = vpop.f32.mrb[29].mxu0  ;;  %v1138_v50 = vpop.f32.mrb[29].mxu1  ;;  %v1145_v61 = vadd.f32 %v1136_v35, %v1059_v59 }
 0x813   :  { %v1144_v51 = vadd.f32 %v1097_v49, %v1058_v46  ;;  %v1099_v52 = vpop.f32.mrb[30].mxu0  ;;  %v1140_v42 = vpop.f32.mrb[30].mxu1  ;;  %v1146_v48 = vadd.f32 %v1138_v50, %v1060_v58 }
 0x814   :  { %v1266_v53 = vmul.f32 -1.442695, %v1143_v1  ;;  %v1100_v55 = vpop.f32.mrb[31].mxu0  ;;  %v1141_v56 = vpop.f32.mrb[31].mxu1 }
 0x815   :  { %v1267_v57 = vmul.f32 -1.442695, %v1144_v51  ;;  %v1268_v60 = vmul.f32 -1.442695, %v1146_v48 }
 0x816   :  { %1432 = vpow2.f32 %v1266_v53 }
 0x817   :  { %1434 = vpow2.f32 %v1267_v57 }
 0x818   :  { %1436 = vpow2.f32 %v1268_v60 }
 0x819   :  { %1438 = vtanh.f32 %v1145_v61 }
 0x820   :  { %v1433_v62 = vpop.eup %1432 }
 0x821   :  { %v1435_v2 = vpop.eup %1434  ;;  %v1150_v3 = vadd.f32 1.0, %v1433_v62 }
 0x822   :  { %v1156_v4 = vadd.f32 1.0, %v1435_v2  ;;  %v1437_v5 = vpop.eup %1436 }
 0x823   :  { %1440 = vrcp.f32 %v1150_v3  ;;  %v1439_v7 = vpop.eup %1438  ;;  %v1163_v11 = vadd.f32 1.0, %v1437_v5 }
 0x824   :  { %1442 = vrcp.f32 %v1156_v4 }
 0x825   :  { %1444 = vrcp.f32 %v1163_v11 }
 0x82d   :  { %v1441_v8 = vpop.eup %1440 }
 0x82e   :  { %v1443_v9 = vpop.eup %1442  ;;  %v1167_v10 = vmul.f32 %v1441_v8, %v1439_v7 }
 0x82f   :  { %v1166_v12 = vmul.f32 %v1443_v9, %v1048_v39  ;;  %v1445_v14 = vpop.eup %1444 }
 0x831   :  { %v1168_v13 = vadd.f32 %v1167_v10, %v1166_v12 }
 0x833   :  { %1446 = vtanh.f32 %v1168_v13  ;;  %1180 = vst [vmem:[%s2108_s4] sm:$0xff] %v1168_v13 }
 0x83d   :  { %v1447_v15 = vpop.eup %1446 }
 0x83e   :  { %v1170_v16 = vmul.f32 %v1447_v15, %v1445_v14 }
 0x840   :  { %v1171_v17 = vpack.c.bf16 %v1170_v16, %v1170_v16  ;;  %1179 = vst [vmem:[%s2109_s3] sm:$0xff] %v1170_v16 }
 0x842   :  { %1269 = vst [vmem:[%s2107_s2 + $0x1c] sm:$0xf] %v1171_v17 }

// kernel: encoder_forward.7
= control target key start
LH: loop header
LB: loop body
LE: loop exit
PB: predicated region body
PF: predicated region fallthrough
CT: control target
= control target key end

     0   :  { %v1513_v2 = vmov 0   ;;  %s2129_s0 = inlined_call_operand.vmem [shape: bf16[8,8,512], index: 0, kind: input, shape index: {}]   ;;  %s2130_s1 = inlined_call_operand.vmem [shape: bf16[128,512], index: 1, kind: input, shape index: {}]   ;;  %s2131_s2 = inlined_call_operand.hbm [shape: bf16[8,8,128], index: 2, kind: output, shape index: {0}]   ;;  %s2132_s3 = inlined_call_operand.vmem [shape: f32[8,128], index: 3, kind: output, shape index: {1}]   ;;  %s2133_s4 = inlined_call_operand.vmem [shape: f32[8,128], index: 4, kind: output, shape index: {2}]  }
   0x1   :  { %v1546_v0 = vld [vmem:[%s2130_s1 + $0x4] ss:$16 sps:$4 sm:$0xff]   ;;  %v1551_v1 = vld [vmem:[%s2130_s1] ss:$16 sps:$4 sm:$0xff]   ;;  %255 = vmatprep.mubr.bf16.mxu0 %v1513_v2  ;;  %296 = vmatprep.mubr.bf16.mxu1 %v1513_v2  ;;  %v1576_v6 = vld [vmem:[%s2130_s1 + $0xc] ss:$16 sps:$4 sm:$0xff]  }
   0x2   :  { %223 = vmatprep.subr.bf16.mxu0 %v1546_v0  ;;  %v1559_v3 = vld [vmem:[%s2130_s1 + $0x24] ss:$16 sps:$4 sm:$0xff]   ;;  %v1565_v4 = vld [vmem:[%s2130_s1 + $0x20] ss:$16 sps:$4 sm:$0xff]   ;;  %v1581_v7 = vld [vmem:[%s2130_s1 + $0x8] ss:$16 sps:$4 sm:$0xff]   ;;  %264 = vmatprep.subr.bf16.mxu1 %v1576_v6 }
   0x3   :  { %224 = vmatpush1.bf16.msra.mxu0 %v1551_v1  ;;  %v1571_v5 = vld [vmem:[%s2130_s1 + $0x44] ss:$16 sps:$4 sm:$0xff]   ;;  %v1587_v8 = vld [vmem:[%s2130_s1 + $0x40] ss:$16 sps:$4 sm:$0xff]   ;;  %265 = vmatpush1.bf16.msra.mxu1 %v1581_v7  ;;  %v1600_v10 = vld [vmem:[%s2130_s1 + $0x2c] ss:$16 sps:$4 sm:$0xff]  }
   0x4   :  { %225 = vmatprep.subr.bf16.mxu0 %v1559_v3  ;;  %v1594_v9 = vld [vmem:[%s2130_s1 + $0x64] ss:$16 sps:$4 sm:$0xff]   ;;  %v1605_v11 = vld [vmem:[%s2130_s1 + $0x28] ss:$16 sps:$4 sm:$0xff]   ;;  %266 = vmatprep.subr.bf16.mxu1 %v1600_v10  ;;  %v1612_v12 = vld [vmem:[%s2130_s1 + $0x60] ss:$16 sps:$4 sm:$0xff]  }
   0x5   :  { %v1617_v13 = vld [vmem:[%s2130_s1 + $0x84] ss:$16 sps:$4 sm:$0xff]   ;;  %v1622_v14 = vld [vmem:[%s2130_s1 + $0x4c] ss:$16 sps:$4 sm:$0xff]   ;;  %v1629_v15 = vld [vmem:[%s2130_s1 + $0x48] ss:$16 sps:$4 sm:$0xff]  }
   0x6   :  { %v1635_v16 = vld [vmem:[%s2130_s1 + $0x6c] ss:$16 sps:$4 sm:$0xff]   ;;  %v1641_v17 = vld [vmem:[%s2130_s1 + $0x80] ss:$16 sps:$4 sm:$0xff]   ;;  %v1647_v18 = vld [vmem:[%s2130_s1 + $0xa4] ss:$16 sps:$4 sm:$0xff]  }
   0x7   :  { %226 = vmatpush1.bf16.msra.mxu0 %v1565_v4  ;;  %267 = vmatpush1.bf16.msra.mxu1 %v1605_v11  ;;  %v1653_v19 = vld [vmem:[%s2130_s1 + $0x68] ss:$16 sps:$4 sm:$0xff]   ;;  %v1659_v20 = vld [vmem:[%s2130_s1 + $0x8c] ss:$16 sps:$4 sm:$0xff]   ;;  %v1665_v21 = vld [vmem:[%s2130_s1 + $0xa0] ss:$16 sps:$4 sm:$0xff]  }
   0x8   :  { %227 = vmatprep.subr.bf16.mxu0 %v1571_v5  ;;  %268 = vmatprep.subr.bf16.mxu1 %v1622_v14  ;;  %v1670_v22 = vld [vmem:[%s2130_s1 + $0xc4] ss:$16 sps:$4 sm:$0xff]   ;;  %v1677_v23 = vld [vmem:[%s2130_s1 + $0x88] ss:$16 sps:$4 sm:$0xff]   ;;  %v1683_v24 = vld [vmem:[%s2130_s1 + $0xac] ss:$16 sps:$4 sm:$0xff]  }
   0xb   :  { %228 = vmatpush1.bf16.msra.mxu0 %v1587_v8  ;;  %269 = vmatpush1.bf16.msra.mxu1 %v1629_v15 }
   0xc   :  { %229 = vmatprep.subr.bf16.mxu0 %v1594_v9  ;;  %270 = vmatprep.subr.bf16.mxu1 %v1635_v16 }
   0xf   :  { %230 = vmatpush1.bf16.msra.mxu0 %v1612_v12  ;;  %271 = vmatpush1.bf16.msra.mxu1 %v1653_v19 }
  0x10   :  { %231 = vmatprep.subr.bf16.mxu0 %v1617_v13  ;;  %272 = vmatprep.subr.bf16.mxu1 %v1659_v20 }
  0x13   :  { %232 = vmatpush1.bf16.msra.mxu0 %v1641_v17 }
  0x14   :  { %233 = vmatprep.subr.bf16.mxu0 %v1647_v18 }
  0x15   :  { %10 = vsyncpa [#allocation5], 0  ;;  %v1689_v25 = vld [vmem:[%s2130_s1 + $0xc0] ss:$16 sps:$4 sm:$0xff]   ;;  %v1695_v26 = vld [vmem:[%s2130_s1 + $0xe4] ss:$16 sps:$4 sm:$0xff]   ;;  %273 = vmatpush1.bf16.msra.mxu1 %v1677_v23 }
  0x16   :  { %v1701_v27 = vld [vmem:[%s2130_s1 + $0xa8] ss:$16 sps:$4 sm:$0xff]   ;;  %274 = vmatprep.subr.bf16.mxu1 %v1683_v24  ;;  %v1707_v28 = vld [vmem:[%s2130_s1 + $0xcc] ss:$16 sps:$4 sm:$0xff]   ;;  %v1713_v29 = vld [vmem:[%s2130_s1 + $0xe0] ss:$16 sps:$4 sm:$0xff]  }
  0x17   :  { %234 = vmatpush1.bf16.msra.mxu0 %v1665_v21  ;;  %v1720_v30 = vld [vmem:[%s2130_s1 + $0xc8] ss:$16 sps:$4 sm:$0xff]   ;;  %v1726_v31 = vld [vmem:[%s2130_s1 + $0xec] ss:$16 sps:$4 sm:$0xff]   ;;  %v1514_v33 = vmov 0.0|0.0   ;;  %v56_v34 = vld [vmem:[%s2129_s0] sm:$0xff] }
  0x18   :  { %235 = vmatprep.subr.bf16.mxu0 %v1670_v22  ;;  %v1733_v32 = vld [vmem:[%s2130_s1 + $0xe8] ss:$16 sps:$4 sm:$0xff]   ;;  %v58_v35 = vunpack.c.l.bf16 %v56_v34  ;;  %v59_v36 = vunpack.c.h.bf16 %v56_v34  ;;  %s1515_s19 = smov [#allocation4]  }
  0x19   :  { %275 = vmatpush1.bf16.msra.mxu1 %v1701_v27  ;;  %v57_v38 = vld [vmem:[%s2129_s0 + $0x8] sm:$0xff]  ;;  %s1187_s20 = sshll.u32 %s1515_s19, 4  ;;  %s1188_s20 = int_to_ptr.vmem [resolvable:$true] %s1187_s20 }
  0x1a   :  { %276 = vmatprep.subr.bf16.mxu1 %v1707_v28  ;;  %v61_v45 = vunpack.c.h.bf16 %v57_v38  ;;  %v60_v51 = vunpack.c.l.bf16 %v57_v38  ;;  %s1489_s23 = scalar_lea.vmem %s1188_s20, 512  ;;  %p1494_p1 = scmp.lt.s32.totalorder %s1188_s20, %s1188_s20 }
  0x1b   :  { %236 = vmatpush1.bf16.msra.mxu0 %v1689_v25  ;;  %p1490_p0 = scmp.ne.s32.totalorder %s1188_s20, %s1489_s23  ;;  %p1495_p2 = scmp.lt.s32.totalorder %s1489_s23, %s1489_s23 }
  0x1c   :  { %237 = vmatprep.subr.bf16.mxu0 %v1695_v26 }
  0x1d   :  { %277 = vmatpush1.bf16.msra.mxu1 %v1720_v30  ;;  %p1496_p3 = por %p1495_p2, %p1494_p1 }
  0x1e   :  { %278 = vmatprep.subr.bf16.mxu1 %v1726_v31 }
  0x1f   :  { %238 = vmatpush1.bf16.msra.mxu0 %v1713_v29  ;;  %p1497_p4 = pnand %p1496_p3, %p1490_p0 }
  0x20   :  { %342 = vmatprep.subr.bf16.mxu0 %v1546_v0 }
  0x21   :  { %279 = vmatpush1.bf16.msra.mxu1 %v1733_v32 }
  0x22   :  { %256 = vmatmul.mubr.bf16.vlgmr.msra.gmra.mrb[0].mxu0 %v1514_v33  ;;  %383 = vmatprep.subr.bf16.mxu1 %v1576_v6 }
  0x23   :  { %343 = vmatpush1.bf16.msra.mxu0 %v1551_v1  ;;  %374 = vmatprep.mubr.bf16.mxu0 %v1513_v2 }
  0x24   :  { %344 = vmatprep.subr.bf16.mxu0 %v1559_v3  ;;  %297 = vmatmul.mubr.bf16.vlgmr.msra.gmra.mrb[0].mxu1 %v1514_v33 }
  0x25   :  { %384 = vmatpush1.bf16.msra.mxu1 %v1581_v7  ;;  %415 = vmatprep.mubr.bf16.mxu1 %v1513_v2 }
  0x26   :  { %385 = vmatprep.subr.bf16.mxu1 %v1600_v10 }
  0x27   :  { %345 = vmatpush1.bf16.msra.mxu0 %v1565_v4 }
  0x28   :  { %346 = vmatprep.subr.bf16.mxu0 %v1571_v5 }
  0x29   :  { %386 = vmatpush1.bf16.msra.mxu1 %v1605_v11 }
  0x2a   :  { %387 = vmatprep.subr.bf16.mxu1 %v1622_v14 }
  0x2b   :  { %347 = vmatpush1.bf16.msra.mxu0 %v1587_v8 }
  0x2c   :  { %348 = vmatprep.subr.bf16.mxu0 %v1594_v9 }
  0x2d   :  { %388 = vmatpush1.bf16.msra.mxu1 %v1629_v15 }
  0x2e   :  { %389 = vmatprep.subr.bf16.mxu1 %v1635_v16 }
  0x2f   :  { %349 = vmatpush1.bf16.msra.mxu0 %v1612_v12 }
  0x30   :  { %350 = vmatprep.subr.bf16.mxu0 %v1617_v13 }
  0x31   :  { %390 = vmatpush1.bf16.msra.mxu1 %v1653_v19 }
  0x32   :  { %391 = vmatprep.subr.bf16.mxu1 %v1659_v20 }
  0x33   :  { %351 = vmatpush1.bf16.msra.mxu0 %v1641_v17 }
  0x34   :  { %352 = vmatprep.subr.bf16.mxu0 %v1647_v18 }
  0x35   :  { %392 = vmatpush1.bf16.msra.mxu1 %v1677_v23 }
  0x36   :  { %393 = vmatprep.subr.bf16.mxu1 %v1683_v24 }
  0x37   :  { %353 = vmatpush1.bf16.msra.mxu0 %v1665_v21 }
  0x38   :  { %354 = vmatprep.subr.bf16.mxu0 %v1670_v22 }
  0x39   :  { %394 = vmatpush1.bf16.msra.mxu1 %v1701_v27 }
  0x3a   :  { %395 = vmatprep.subr.bf16.mxu1 %v1707_v28 }
  0x3b   :  { %355 = vmatpush1.bf16.msra.mxu0 %v1689_v25 }
  0x3c   :  { %356 = vmatprep.subr.bf16.mxu0 %v1695_v26 }
  0x3d   :  { %396 = vmatpush1.bf16.msra.mxu1 %v1720_v30 }
  0x3e   :  { %397 = vmatprep.subr.bf16.mxu1 %v1726_v31 }
  0x3f   :  { %357 = vmatpush1.bf16.msra.mxu0 %v1713_v29 }
  0x40   :  { %462 = vmatprep.subr.bf16.mxu0 %v1546_v0 }
  0x41   :  { %398 = vmatpush1.bf16.msra.mxu1 %v1733_v32 }
  0x42   :  { %503 = vmatprep.subr.bf16.mxu1 %v1576_v6 }
  0xf5   :  { %v257_v37 = vpop.f32.mrb[0].mxu0 }
  0xf6   :  { %v305_v39 = vadd.f32 %v257_v37, %v58_v35  ;;  %v259_v40 = vpop.f32.mrb[1].mxu0 }
  0xf7   :  { %v306_v41 = vadd.f32 %v259_v40, %v59_v36  ;;  %v261_v42 = vpop.f32.mrb[2].mxu0  ;;  %v298_v47 = vpop.f32.mrb[0].mxu1  ;;  %v1241_v40 = vld [vmem:[%s2129_s0 + $0x10] sm:$0xff] }
  0xf8   :  { %v1238_v43 = vmul.f32 -1.442695, %v305_v39  ;;  %v262_v44 = vpop.f32.mrb[3].mxu0  ;;  %v300_v48 = vpop.f32.mrb[1].mxu1  ;;  %v307_v54 = vadd.f32 %v298_v47, %v60_v51  ;;  %v339_v42 = vunpack.c.h.bf16 %v1241_v40 }
  0xf9   :  { %v1239_v46 = vmul.f32 -1.442695, %v306_v41  ;;  %v308_v49 = vadd.f32 %v300_v48, %v61_v45  ;;  %v302_v50 = vpop.f32.mrb[2].mxu1  ;;  %v338_v41 = vunpack.c.l.bf16 %v1241_v40 }
  0xfa   :  { %1329 = vpow2.f32 %v1238_v43  ;;  %v303_v52 = vpop.f32.mrb[3].mxu1 }
  0xfb   :  { %1331 = vpow2.f32 %v1239_v46  ;;  %v1240_v53 = vmul.f32 -1.442695, %v308_v49  ;;  %v1242_v46 = vld [vmem:[%s2129_s0 + $0x18] sm:$0xff] }
  0xfd   :  { %1333 = vpow2.f32 %v1240_v53 }
  0xfe   :  { %1335 = vtanh.f32 %v307_v54 }
 0x104   :  { %v1330_v55 = vpop.eup %1329 }
 0x105   :  { %v1332_v56 = vpop.eup %1331  ;;  %v312_v57 = vadd.f32 1.0, %v1330_v55 }
 0x106   :  { %v318_v58 = vadd.f32 1.0, %v1332_v56  ;;  %v341_v56 = vunpack.c.h.bf16 %v1242_v46 }
 0x107   :  { %1337 = vrcp.f32 %v312_v57  ;;  %v1334_v59 = vpop.eup %1333 }
 0x108   :  { %1339 = vrcp.f32 %v318_v58  ;;  %v1336_v60 = vpop.eup %1335  ;;  %v325_v62 = vadd.f32 1.0, %v1334_v59  ;;  %v340_v58 = vunpack.c.l.bf16 %v1242_v46 }
 0x10a   :  { %1341 = vrcp.f32 %v325_v62 }
 0x111   :  { %v1338_v61 = vpop.eup %1337 }
 0x112   :  { %v1340_v63 = vpop.eup %1339  ;;  %v329_v33 = vmul.f32 %v1338_v61, %v1336_v60 }
 0x113   :  { %v328_v34 = vmul.f32 0.0, %v1340_v63 }
 0x114   :  { %v1342_v36 = vpop.eup %1341 }
 0x115   :  { %v1779_v35 = vadd.f32 %v329_v33, %v328_v34 }
 0x117   :  { %1343 = vtanh.f32 %v1779_v35 }
 0x121   :  { %v1344_v37 = vpop.eup %1343 }
 0x122   :  { %v332_v38 = vmul.f32 %v1344_v37, %v1342_v36 }
 0x124   :  { %v333_v39 = vpack.c.bf16 %v332_v38, %v332_v38 }
 0x126   :  { %334 = vst [vmem:[#allocation4] sm:$0xf] %v333_v39  ;;  %375 = vmatmul.mubr.bf16.vlgmr.msra.gmra.mrb[4].mxu0 %v333_v39  ;;  %416 = vmatmul.mubr.bf16.vlgmr.msra.gmra.mrb[4].mxu1 %v333_v39 }
 0x127   :  { %463 = vmatpush1.bf16.msra.mxu0 %v1551_v1  ;;  %504 = vmatpush1.bf16.msra.mxu1 %v1581_v7 }
 0x128   :  { %464 = vmatprep.subr.bf16.mxu0 %v1559_v3  ;;  %505 = vmatprep.subr.bf16.mxu1 %v1600_v10 }
 0x129   :  { %494 = vmatprep.mubr.bf16.mxu0 %v1513_v2  ;;  %535 = vmatprep.mubr.bf16.mxu1 %v1513_v2 }
 0x12b   :  { %465 = vmatpush1.bf16.msra.mxu0 %v1565_v4  ;;  %506 = vmatpush1.bf16.msra.mxu1 %v1605_v11 }
 0x12c   :  { %466 = vmatprep.subr.bf16.mxu0 %v1571_v5  ;;  %507 = vmatprep.subr.bf16.mxu1 %v1622_v14 }
 0x12f   :  { %467 = vmatpush1.bf16.msra.mxu0 %v1587_v8  ;;  %508 = vmatpush1.bf16.msra.mxu1 %v1629_v15 }
 0x130   :  { %468 = vmatprep.subr.bf16.mxu0 %v1594_v9  ;;  %509 = vmatprep.subr.bf16.mxu1 %v1635_v16 }
 0x133   :  { %469 = vmatpush1.bf16.msra.mxu0 %v1612_v12  ;;  %510 = vmatpush1.bf16.msra.mxu1 %v1653_v19 }
 0x134   :  { %470 = vmatprep.subr.bf16.mxu0 %v1617_v13  ;;  %511 = vmatprep.subr.bf16.mxu1 %v1659_v20 }
 0x137   :  { %471 = vmatpush1.bf16.msra.mxu0 %v1641_v17  ;;  %512 = vmatpush1.bf16.msra.mxu1 %v1677_v23 }
 0x138   :  { %472 = vmatprep.subr.bf16.mxu0 %v1647_v18  ;;  %513 = vmatprep.subr.bf16.mxu1 %v1683_v24 }
 0x13b   :  { %473 = vmatpush1.bf16.msra.mxu0 %v1665_v21  ;;  %514 = vmatpush1.bf16.msra.mxu1 %v1701_v27 }
 0x13c   :  { %474 = vmatprep.subr.bf16.mxu0 %v1670_v22  ;;  %515 = vmatprep.subr.bf16.mxu1 %v1707_v28 }
 0x13f   :  { %475 = vmatpush1.bf16.msra.mxu0 %v1689_v25  ;;  %516 = vmatpush1.bf16.msra.mxu1 %v1720_v30 }
 0x140   :  { %476 = vmatprep.subr.bf16.mxu0 %v1695_v26  ;;  %517 = vmatprep.subr.bf16.mxu1 %v1726_v31 }
 0x143   :  { %477 = vmatpush1.bf16.msra.mxu0 %v1713_v29  ;;  %518 = vmatpush1.bf16.msra.mxu1 %v1733_v32 }
 0x144   :  { %582 = vmatprep.subr.bf16.mxu0 %v1546_v0  ;;  %623 = vmatprep.subr.bf16.mxu1 %v1576_v6 }
 0x1f9   :  { %v376_v43 = vpop.f32.mrb[4].mxu0  ;;  %v417_v44 = vpop.f32.mrb[4].mxu1 }
 0x1fa   :  { %v424_v45 = vadd.f32 %v376_v43, %v338_v41  ;;  %v378_v47 = vpop.f32.mrb[5].mxu0  ;;  %v419_v48 = vpop.f32.mrb[5].mxu1  ;;  %v426_v60 = vadd.f32 %v417_v44, %v340_v58 }
 0x1fb   :  { %v425_v49 = vadd.f32 %v378_v47, %v339_v42  ;;  %v380_v50 = vpop.f32.mrb[6].mxu0  ;;  %v421_v51 = vpop.f32.mrb[6].mxu1  ;;  %v427_v57 = vadd.f32 %v419_v48, %v341_v56 }
 0x1fc   :  { %v1243_v52 = vmul.f32 -1.442695, %v424_v45  ;;  %v381_v53 = vpop.f32.mrb[7].mxu0  ;;  %v422_v54 = vpop.f32.mrb[7].mxu1 }
 0x1fd   :  { %v1244_v55 = vmul.f32 -1.442695, %v425_v49  ;;  %v1245_v59 = vmul.f32 -1.442695, %v427_v57 }
 0x1fe   :  { %1345 = vpow2.f32 %v1243_v52  ;;  %v1247_v52 = vld [vmem:[%s2129_s0 + $0x28] sm:$0xff] }
 0x1ff   :  { %1347 = vpow2.f32 %v1244_v55 }
 0x200   :  { %1349 = vpow2.f32 %v1245_v59 }
 0x201   :  { %1351 = vtanh.f32 %v426_v60 }
 0x208   :  { %v1346_v61 = vpop.eup %1345 }
 0x209   :  { %v1348_v62 = vpop.eup %1347  ;;  %v431_v63 = vadd.f32 1.0, %v1346_v61 }
 0x20a   :  { %v437_v33 = vadd.f32 1.0, %v1348_v62  ;;  %v1350_v34 = vpop.eup %1349  ;;  %v461_v62 = vunpack.c.h.bf16 %v1247_v52 }
 0x20b   :  { %1353 = vrcp.f32 %v431_v63  ;;  %v1352_v36 = vpop.eup %1351  ;;  %v444_v40 = vadd.f32 1.0, %v1350_v34 }
 0x20c   :  { %1355 = vrcp.f32 %v437_v33  ;;  %v460_v33 = vunpack.c.l.bf16 %v1247_v52 }
 0x20d   :  { %1357 = vrcp.f32 %v444_v40 }
 0x215   :  { %v1354_v37 = vpop.eup %1353 }
 0x216   :  { %v1356_v38 = vpop.eup %1355  ;;  %v448_v39 = vmul.f32 %v1354_v37, %v1352_v36 }
 0x217   :  { %v447_v41 = vmul.f32 %v1356_v38, %v1779_v35  ;;  %v1358_v43 = vpop.eup %1357  ;;  %v1246_v35 = vld [vmem:[%s2129_s0 + $0x20] sm:$0xff] }
 0x218   :  { %v458_v47 = vunpack.c.l.bf16 %v1246_v35  ;;  %v459_v48 = vunpack.c.h.bf16 %v1246_v35 }
 0x219   :  { %v1823_v42 = vadd.f32 %v448_v39, %v447_v41 }
 0x21b   :  { %1359 = vtanh.f32 %v1823_v42 }
 0x225   :  { %v1360_v44 = vpop.eup %1359 }
 0x226   :  { %v451_v45 = vmul.f32 %v1360_v44, %v1358_v43 }
 0x228   :  { %v452_v46 = vpack.c.bf16 %v451_v45, %v451_v45 }
 0x22a   :  { %454 = vst [vmem:[#allocation4 + $0x4] sm:$0xf] %v452_v46  ;;  %495 = vmatmul.mubr.bf16.vlgmr.msra.gmra.mrb[8].mxu0 %v452_v46  ;;  %536 = vmatmul.mubr.bf16.vlgmr.msra.gmra.mrb[8].mxu1 %v452_v46 }
 0x22b   :  { %583 = vmatpush1.bf16.msra.mxu0 %v1551_v1  ;;  %624 = vmatpush1.bf16.msra.mxu1 %v1581_v7 }
 0x22c   :  { %584 = vmatprep.subr.bf16.mxu0 %v1559_v3  ;;  %625 = vmatprep.subr.bf16.mxu1 %v1600_v10 }
 0x22d   :  { %614 = vmatprep.mubr.bf16.mxu0 %v1513_v2  ;;  %655 = vmatprep.mubr.bf16.mxu1 %v1513_v2 }
 0x22f   :  { %585 = vmatpush1.bf16.msra.mxu0 %v1565_v4  ;;  %626 = vmatpush1.bf16.msra.mxu1 %v1605_v11 }
 0x230   :  { %586 = vmatprep.subr.bf16.mxu0 %v1571_v5  ;;  %627 = vmatprep.subr.bf16.mxu1 %v1622_v14 }
 0x233   :  { %587 = vmatpush1.bf16.msra.mxu0 %v1587_v8  ;;  %628 = vmatpush1.bf16.msra.mxu1 %v1629_v15 }
 0x234   :  { %588 = vmatprep.subr.bf16.mxu0 %v1594_v9  ;;  %629 = vmatprep.subr.bf16.mxu1 %v1635_v16 }
 0x237   :  { %589 = vmatpush1.bf16.msra.mxu0 %v1612_v12  ;;  %630 = vmatpush1.bf16.msra.mxu1 %v1653_v19 }
 0x238   :  { %590 = vmatprep.subr.bf16.mxu0 %v1617_v13  ;;  %631 = vmatprep.subr.bf16.mxu1 %v1659_v20 }
 0x23b   :  { %591 = vmatpush1.bf16.msra.mxu0 %v1641_v17  ;;  %632 = vmatpush1.bf16.msra.mxu1 %v1677_v23 }
 0x23c   :  { %592 = vmatprep.subr.bf16.mxu0 %v1647_v18  ;;  %633 = vmatprep.subr.bf16.mxu1 %v1683_v24 }
 0x23f   :  { %593 = vmatpush1.bf16.msra.mxu0 %v1665_v21  ;;  %634 = vmatpush1.bf16.msra.mxu1 %v1701_v27 }
 0x240   :  { %594 = vmatprep.subr.bf16.mxu0 %v1670_v22  ;;  %635 = vmatprep.subr.bf16.mxu1 %v1707_v28 }
 0x243   :  { %595 = vmatpush1.bf16.msra.mxu0 %v1689_v25  ;;  %636 = vmatpush1.bf16.msra.mxu1 %v1720_v30 }
 0x244   :  { %596 = vmatprep.subr.bf16.mxu0 %v1695_v26  ;;  %637 = vmatprep.subr.bf16.mxu1 %v1726_v31 }
 0x247   :  { %597 = vmatpush1.bf16.msra.mxu0 %v1713_v29  ;;  %638 = vmatpush1.bf16.msra.mxu1 %v1733_v32 }
 0x248   :  { %702 = vmatprep.subr.bf16.mxu0 %v1546_v0  ;;  %743 = vmatprep.subr.bf16.mxu1 %v1576_v6 }
 0x2fd   :  { %v496_v49 = vpop.f32.mrb[8].mxu0  ;;  %v537_v50 = vpop.f32.mrb[8].mxu1 }
 0x2fe   :  { %v544_v51 = vadd.f32 %v496_v49, %v458_v47  ;;  %v498_v53 = vpop.f32.mrb[9].mxu0  ;;  %v539_v54 = vpop.f32.mrb[9].mxu1  ;;  %v546_v36 = vadd.f32 %v537_v50, %v460_v33 }
 0x2ff   :  { %v545_v55 = vadd.f32 %v498_v53, %v459_v48  ;;  %v500_v56 = vpop.f32.mrb[10].mxu0  ;;  %v541_v57 = vpop.f32.mrb[10].mxu1  ;;  %v547_v63 = vadd.f32 %v539_v54, %v461_v62 }
 0x300   :  { %v1248_v58 = vmul.f32 -1.442695, %v544_v51  ;;  %v501_v59 = vpop.f32.mrb[11].mxu0  ;;  %v542_v60 = vpop.f32.mrb[11].mxu1 }
 0x301   :  { %v1249_v61 = vmul.f32 -1.442695, %v545_v55  ;;  %v1250_v34 = vmul.f32 -1.442695, %v547_v63 }
 0x302   :  { %1361 = vpow2.f32 %v1248_v58  ;;  %v1252_v58 = vld [vmem:[%s2129_s0 + $0x38] sm:$0xff] }
 0x303   :  { %1363 = vpow2.f32 %v1249_v61 }
 0x304   :  { %1365 = vpow2.f32 %v1250_v34 }
 0x305   :  { %1367 = vtanh.f32 %v546_v36 }
 0x30c   :  { %v1362_v37 = vpop.eup %1361 }
 0x30d   :  { %v1364_v38 = vpop.eup %1363  ;;  %v551_v39 = vadd.f32 1.0, %v1362_v37 }
 0x30e   :  { %v557_v40 = vadd.f32 1.0, %v1364_v38  ;;  %v1366_v41 = vpop.eup %1365  ;;  %v581_v38 = vunpack.c.h.bf16 %v1252_v58 }
 0x30f   :  { %1369 = vrcp.f32 %v551_v39  ;;  %v1368_v43 = vpop.eup %1367  ;;  %v564_v35 = vadd.f32 1.0, %v1366_v41 }
 0x310   :  { %1371 = vrcp.f32 %v557_v40  ;;  %v580_v40 = vunpack.c.l.bf16 %v1252_v58 }
 0x311   :  { %1373 = vrcp.f32 %v564_v35 }
 0x319   :  { %v1370_v44 = vpop.eup %1369 }
 0x31a   :  { %v1372_v45 = vpop.eup %1371  ;;  %v568_v46 = vmul.f32 %v1370_v44, %v1368_v43 }
 0x31b   :  { %v567_v47 = vmul.f32 %v1372_v45, %v1823_v42  ;;  %v1374_v49 = vpop.eup %1373  ;;  %v1251_v42 = vld [vmem:[%s2129_s0 + $0x30] sm:$0xff] }
 0x31c   :  { %v578_v53 = vunpack.c.l.bf16 %v1251_v42  ;;  %v579_v54 = vunpack.c.h.bf16 %v1251_v42 }
 0x31d   :  { %v1867_v48 = vadd.f32 %v568_v46, %v567_v47 }
 0x31f   :  { %1375 = vtanh.f32 %v1867_v48 }
 0x329   :  { %v1376_v50 = vpop.eup %1375 }
 0x32a   :  { %v571_v51 = vmul.f32 %v1376_v50, %v1374_v49 }
 0x32c   :  { %v572_v52 = vpack.c.bf16 %v571_v51, %v571_v51 }
 0x32e   :  { %574 = vst [vmem:[#allocation4 + $0x8] sm:$0xf] %v572_v52  ;;  %615 = vmatmul.mubr.bf16.vlgmr.msra.gmra.mrb[12].mxu0 %v572_v52  ;;  %656 = vmatmul.mubr.bf16.vlgmr.msra.gmra.mrb[12].mxu1 %v572_v52 }
 0x32f   :  { %703 = vmatpush1.bf16.msra.mxu0 %v1551_v1  ;;  %744 = vmatpush1.bf16.msra.mxu1 %v1581_v7 }
 0x330   :  { %704 = vmatprep.subr.bf16.mxu0 %v1559_v3  ;;  %745 = vmatprep.subr.bf16.mxu1 %v1600_v10 }
 0x331   :  { %734 = vmatprep.mubr.bf16.mxu0 %v1513_v2  ;;  %775 = vmatprep.mubr.bf16.mxu1 %v1513_v2 }
 0x333   :  { %705 = vmatpush1.bf16.msra.mxu0 %v1565_v4  ;;  %746 = vmatpush1.bf16.msra.mxu1 %v1605_v11 }
 0x334   :  { %706 = vmatprep.subr.bf16.mxu0 %v1571_v5  ;;  %747 = vmatprep.subr.bf16.mxu1 %v1622_v14 }
 0x337   :  { %707 = vmatpush1.bf16.msra.mxu0 %v1587_v8  ;;  %748 = vmatpush1.bf16.msra.mxu1 %v1629_v15 }
 0x338   :  { %708 = vmatprep.subr.bf16.mxu0 %v1594_v9  ;;  %749 = vmatprep.subr.bf16.mxu1 %v1635_v16 }
 0x33b   :  { %709 = vmatpush1.bf16.msra.mxu0 %v1612_v12  ;;  %750 = vmatpush1.bf16.msra.mxu1 %v1653_v19 }
 0x33c   :  { %710 = vmatprep.subr.bf16.mxu0 %v1617_v13  ;;  %751 = vmatprep.subr.bf16.mxu1 %v1659_v20 }
 0x33f   :  { %711 = vmatpush1.bf16.msra.mxu0 %v1641_v17  ;;  %752 = vmatpush1.bf16.msra.mxu1 %v1677_v23 }
 0x340   :  { %712 = vmatprep.subr.bf16.mxu0 %v1647_v18  ;;  %753 = vmatprep.subr.bf16.mxu1 %v1683_v24 }
 0x343   :  { %713 = vmatpush1.bf16.msra.mxu0 %v1665_v21  ;;  %754 = vmatpush1.bf16.msra.mxu1 %v1701_v27 }
 0x344   :  { %714 = vmatprep.subr.bf16.mxu0 %v1670_v22  ;;  %755 = vmatprep.subr.bf16.mxu1 %v1707_v28 }
 0x347   :  { %715 = vmatpush1.bf16.msra.mxu0 %v1689_v25  ;;  %756 = vmatpush1.bf16.msra.mxu1 %v1720_v30 }
 0x348   :  { %716 = vmatprep.subr.bf16.mxu0 %v1695_v26  ;;  %757 = vmatprep.subr.bf16.mxu1 %v1726_v31 }
 0x34b   :  { %717 = vmatpush1.bf16.msra.mxu0 %v1713_v29  ;;  %758 = vmatpush1.bf16.msra.mxu1 %v1733_v32 }
 0x34c   :  { %822 = vmatprep.subr.bf16.mxu0 %v1546_v0  ;;  %863 = vmatprep.subr.bf16.mxu1 %v1576_v6 }
 0x401   :  { %v616_v55 = vpop.f32.mrb[12].mxu0  ;;  %v657_v56 = vpop.f32.mrb[12].mxu1 }
 0x402   :  { %v664_v57 = vadd.f32 %v616_v55, %v578_v53  ;;  %v618_v59 = vpop.f32.mrb[13].mxu0  ;;  %v659_v60 = vpop.f32.mrb[13].mxu1  ;;  %v666_v43 = vadd.f32 %v657_v56, %v580_v40 }
 0x403   :  { %v665_v61 = vadd.f32 %v618_v59, %v579_v54  ;;  %v620_v62 = vpop.f32.mrb[14].mxu0  ;;  %v661_v63 = vpop.f32.mrb[14].mxu1  ;;  %v667_v39 = vadd.f32 %v659_v60, %v581_v38 }
 0x404   :  { %v1253_v33 = vmul.f32 -1.442695, %v664_v57  ;;  %v621_v34 = vpop.f32.mrb[15].mxu0  ;;  %v662_v36 = vpop.f32.mrb[15].mxu1 }
 0x405   :  { %v1254_v37 = vmul.f32 -1.442695, %v665_v61  ;;  %v1255_v41 = vmul.f32 -1.442695, %v667_v39 }
 0x406   :  { %1377 = vpow2.f32 %v1253_v33  ;;  %v1257_v33 = vld [vmem:[%s2129_s0 + $0x48] sm:$0xff] }
 0x407   :  { %1379 = vpow2.f32 %v1254_v37 }
 0x408   :  { %1381 = vpow2.f32 %v1255_v41 }
 0x409   :  { %1383 = vtanh.f32 %v666_v43  ;;  %v701_v43 = vunpack.c.h.bf16 %v1257_v33 }
 0x410   :  { %v1378_v44 = vpop.eup %1377 }
 0x411   :  { %v1380_v45 = vpop.eup %1379  ;;  %v671_v46 = vadd.f32 1.0, %v1378_v44 }
 0x412   :  { %v677_v35 = vadd.f32 1.0, %v1380_v45  ;;  %v1382_v47 = vpop.eup %1381  ;;  %v700_v45 = vunpack.c.l.bf16 %v1257_v33 }
 0x413   :  { %1385 = vrcp.f32 %v671_v46  ;;  %v1384_v49 = vpop.eup %1383  ;;  %v684_v42 = vadd.f32 1.0, %v1382_v47 }
 0x414   :  { %1387 = vrcp.f32 %v677_v35 }
 0x415   :  { %1389 = vrcp.f32 %v684_v42 }
 0x41d   :  { %v1386_v50 = vpop.eup %1385 }
 0x41e   :  { %v1388_v51 = vpop.eup %1387  ;;  %v688_v52 = vmul.f32 %v1386_v50, %v1384_v49 }
 0x41f   :  { %v687_v53 = vmul.f32 %v1388_v51, %v1867_v48  ;;  %v1390_v55 = vpop.eup %1389  ;;  %v1256_v48 = vld [vmem:[%s2129_s0 + $0x40] sm:$0xff] }
 0x420   :  { %v698_v59 = vunpack.c.l.bf16 %v1256_v48  ;;  %v699_v60 = vunpack.c.h.bf16 %v1256_v48 }
 0x421   :  { %v1911_v54 = vadd.f32 %v688_v52, %v687_v53 }
 0x423   :  { %1391 = vtanh.f32 %v1911_v54 }
 0x42d   :  { %v1392_v56 = vpop.eup %1391 }
 0x42e   :  { %v691_v57 = vmul.f32 %v1392_v56, %v1390_v55 }
 0x430   :  { %v692_v58 = vpack.c.bf16 %v691_v57, %v691_v57 }
 0x432   :  { %694 = vst [vmem:[#allocation4 + $0xc] sm:$0xf] %v692_v58  ;;  %735 = vmatmul.mubr.bf16.vlgmr.msra.gmra.mrb[16].mxu0 %v692_v58  ;;  %776 = vmatmul.mubr.bf16.vlgmr.msra.gmra.mrb[16].mxu1 %v692_v58 }
 0x433   :  { %823 = vmatpush1.bf16.msra.mxu0 %v1551_v1  ;;  %864 = vmatpush1.bf16.msra.mxu1 %v1581_v7 }
 0x434   :  { %824 = vmatprep.subr.bf16.mxu0 %v1559_v3  ;;  %865 = vmatprep.subr.bf16.mxu1 %v1600_v10 }
 0x435   :  { %854 = vmatprep.mubr.bf16.mxu0 %v1513_v2  ;;  %895 = vmatprep.mubr.bf16.mxu1 %v1513_v2 }
 0x437   :  { %825 = vmatpush1.bf16.msra.mxu0 %v1565_v4  ;;  %866 = vmatpush1.bf16.msra.mxu1 %v1605_v11 }
 0x438   :  { %826 = vmatprep.subr.bf16.mxu0 %v1571_v5  ;;  %867 = vmatprep.subr.bf16.mxu1 %v1622_v14 }
 0x43b   :  { %827 = vmatpush1.bf16.msra.mxu0 %v1587_v8  ;;  %868 = vmatpush1.bf16.msra.mxu1 %v1629_v15 }
 0x43c   :  { %828 = vmatprep.subr.bf16.mxu0 %v1594_v9  ;;  %869 = vmatprep.subr.bf16.mxu1 %v1635_v16 }
 0x43f   :  { %829 = vmatpush1.bf16.msra.mxu0 %v1612_v12  ;;  %870 = vmatpush1.bf16.msra.mxu1 %v1653_v19 }
 0x440   :  { %830 = vmatprep.subr.bf16.mxu0 %v1617_v13  ;;  %871 = vmatprep.subr.bf16.mxu1 %v1659_v20 }
 0x443   :  { %831 = vmatpush1.bf16.msra.mxu0 %v1641_v17  ;;  %872 = vmatpush1.bf16.msra.mxu1 %v1677_v23 }
 0x444   :  { %832 = vmatprep.subr.bf16.mxu0 %v1647_v18  ;;  %873 = vmatprep.subr.bf16.mxu1 %v1683_v24 }
 0x447   :  { %833 = vmatpush1.bf16.msra.mxu0 %v1665_v21  ;;  %874 = vmatpush1.bf16.msra.mxu1 %v1701_v27 }
 0x448   :  { %834 = vmatprep.subr.bf16.mxu0 %v1670_v22  ;;  %875 = vmatprep.subr.bf16.mxu1 %v1707_v28 }
 0x44b   :  { %835 = vmatpush1.bf16.msra.mxu0 %v1689_v25  ;;  %876 = vmatpush1.bf16.msra.mxu1 %v1720_v30 }
 0x44c   :  { %836 = vmatprep.subr.bf16.mxu0 %v1695_v26  ;;  %877 = vmatprep.subr.bf16.mxu1 %v1726_v31 }
 0x44f   :  { %837 = vmatpush1.bf16.msra.mxu0 %v1713_v29  ;;  %878 = vmatpush1.bf16.msra.mxu1 %v1733_v32 }
 0x450   :  { %942 = vmatprep.subr.bf16.mxu0 %v1546_v0  ;;  %983 = vmatprep.subr.bf16.mxu1 %v1576_v6 }
 0x505   :  { %v736_v61 = vpop.f32.mrb[16].mxu0  ;;  %v777_v62 = vpop.f32.mrb[16].mxu1 }
 0x506   :  { %v784_v63 = vadd.f32 %v736_v61, %v698_v59  ;;  %v738_v34 = vpop.f32.mrb[17].mxu0  ;;  %v779_v36 = vpop.f32.mrb[17].mxu1  ;;  %v786_v35 = vadd.f32 %v777_v62, %v700_v45  ;;  %v1464_v45 = vld [vmem:[%s2130_s1 + $0x28] ss:$16 sps:$4 sm:$0xff]  }
 0x507   :  { %v785_v37 = vadd.f32 %v738_v34, %v699_v60  ;;  %v740_v38 = vpop.f32.mrb[18].mxu0  ;;  %v781_v0 = vpop.f32.mrb[18].mxu1  ;;  %v787_v44 = vadd.f32 %v779_v36, %v701_v43  ;;  %v1462_v43 = vld [vmem:[%s2130_s1 + $0x2c] ss:$16 sps:$4 sm:$0xff]  }
 0x508   :  { %v1258_v39 = vmul.f32 -1.442695, %v784_v63  ;;  %v741_v6 = vpop.f32.mrb[19].mxu0  ;;  %v782_v40 = vpop.f32.mrb[19].mxu1 }
 0x509   :  { %v1259_v41 = vmul.f32 -1.442695, %v785_v37  ;;  %v1260_v46 = vmul.f32 -1.442695, %v787_v44  ;;  %v1459_v6 = vld [vmem:[%s2130_s1] ss:$16 sps:$4 sm:$0xff]  }
 0x50a   :  { %1393 = vpow2.f32 %v1258_v39  ;;  %v1460_v40 = vld [vmem:[%s2130_s1 + $0x8] ss:$16 sps:$4 sm:$0xff]   ;;  %v1463_v44 = vld [vmem:[%s2130_s1 + $0x20] ss:$16 sps:$4 sm:$0xff]  }
 0x50b   :  { %1395 = vpow2.f32 %v1259_v41  ;;  %v1461_v41 = vld [vmem:[%s2130_s1 + $0x24] ss:$16 sps:$4 sm:$0xff]  }
 0x50c   :  { %1397 = vpow2.f32 %v1260_v46  ;;  %v1465_v46 = vld [vmem:[%s2130_s1 + $0x44] ss:$16 sps:$4 sm:$0xff]  }
 0x50d   :  { %1399 = vtanh.f32 %v786_v35  ;;  %v1466_v35 = vld [vmem:[%s2130_s1 + $0x4c] ss:$16 sps:$4 sm:$0xff]  }
 0x514   :  { %v1394_v47 = vpop.eup %1393 }
 0x515   :  { %v1396_v49 = vpop.eup %1395  ;;  %v791_v50 = vadd.f32 1.0, %v1394_v47  ;;  %v1468_v47 = vld [vmem:[%s2130_s1 + $0x48] ss:$16 sps:$4 sm:$0xff]  }
 0x516   :  { %v797_v51 = vadd.f32 1.0, %v1396_v49  ;;  %v1398_v52 = vpop.eup %1397  ;;  %v1469_v49 = vld [vmem:[%s2130_s1 + $0x64] ss:$16 sps:$4 sm:$0xff]  }
 0x517   :  { %1401 = vrcp.f32 %v791_v50  ;;  %v1400_v42 = vpop.eup %1399  ;;  %v804_v57 = vadd.f32 1.0, %v1398_v52  ;;  %v1470_v50 = vld [vmem:[%s2130_s1 + $0x6c] ss:$16 sps:$4 sm:$0xff]   ;;  %v1472_v52 = vld [vmem:[%s2130_s1 + $0x68] ss:$16 sps:$4 sm:$0xff]  }
 0x518   :  { %1403 = vrcp.f32 %v797_v51  ;;  %v1471_v51 = vld [vmem:[%s2130_s1 + $0x60] ss:$16 sps:$4 sm:$0xff]  }
 0x519   :  { %1405 = vrcp.f32 %v804_v57  ;;  %v1477_v57 = vld [vmem:[%s2130_s1 + $0xa4] ss:$16 sps:$4 sm:$0xff]  }
 0x521   :  { %v1402_v53 = vpop.eup %1401 }
 0x522   :  { %v1404_v55 = vpop.eup %1403  ;;  %v808_v56 = vmul.f32 %v1402_v53, %v1400_v42  ;;  %v1473_v42 = vld [vmem:[%s2130_s1 + $0x84] ss:$16 sps:$4 sm:$0xff]   ;;  %v1474_v53 = vld [vmem:[%s2130_s1 + $0x8c] ss:$16 sps:$4 sm:$0xff]  }
 0x523   :  { %v807_v58 = vmul.f32 %v1404_v55, %v1911_v54  ;;  %v1406_v59 = vpop.eup %1405  ;;  %v1475_v55 = vld [vmem:[%s2130_s1 + $0x80] ss:$16 sps:$4 sm:$0xff]  }
 0x525   :  { %v1955_v48 = vadd.f32 %v808_v56, %v807_v58  ;;  %v1476_v56 = vld [vmem:[%s2130_s1 + $0x88] ss:$16 sps:$4 sm:$0xff]   ;;  %v1478_v58 = vld [vmem:[%s2130_s1 + $0xac] ss:$16 sps:$4 sm:$0xff]  }
 0x527   :  { %1407 = vtanh.f32 %v1955_v48 }
 0x531   :  { %v1408_v60 = vpop.eup %1407 }
 0x532   :  { %v811_v61 = vmul.f32 %v1408_v60, %v1406_v59  ;;  %v1480_v59 = vld [vmem:[%s2130_s1 + $0xa8] ss:$16 sps:$4 sm:$0xff]   ;;  %v1481_v60 = vld [vmem:[%s2130_s1 + $0xc4] ss:$16 sps:$4 sm:$0xff]  }
 0x534   :  { %v812_v62 = vpack.c.bf16 %v811_v61, %v811_v61  ;;  %v1482_v61 = vld [vmem:[%s2130_s1 + $0xcc] ss:$16 sps:$4 sm:$0xff]  }
 0x536   :  { %814 = vst [vmem:[#allocation4 + $0x10] sm:$0xf] %v812_v62  ;;  %855 = vmatmul.mubr.bf16.vlgmr.msra.gmra.mrb[20].mxu0 %v812_v62  ;;  %896 = vmatmul.mubr.bf16.vlgmr.msra.gmra.mrb[20].mxu1 %v812_v62  ;;  %v1483_v62 = vld [vmem:[%s2130_s1 + $0xc0] ss:$16 sps:$4 sm:$0xff]  }
 0x537   :  { %943 = vmatpush1.bf16.msra.mxu0 %v1551_v1  ;;  %984 = vmatpush1.bf16.msra.mxu1 %v1581_v7  ;;  %v1457_v1 = vld [vmem:[%s2130_s1 + $0x4] ss:$16 sps:$4 sm:$0xff]  }
 0x538   :  { %944 = vmatprep.subr.bf16.mxu0 %v1559_v3  ;;  %985 = vmatprep.subr.bf16.mxu1 %v1600_v10  ;;  %v1458_v3 = vld [vmem:[%s2130_s1 + $0xc] ss:$16 sps:$4 sm:$0xff]  }
 0x539   :  { %974 = vmatprep.mubr.bf16.mxu0 %v1513_v2  ;;  %1015 = vmatprep.mubr.bf16.mxu1 %v1513_v2 }
 0x53b   :  { %945 = vmatpush1.bf16.msra.mxu0 %v1565_v4  ;;  %986 = vmatpush1.bf16.msra.mxu1 %v1605_v11  ;;  %v1261_v4 = vld [vmem:[%s2129_s0 + $0x50] sm:$0xff]  ;;  %v1262_v11 = vld [vmem:[%s2129_s0 + $0x58] sm:$0xff] }
 0x53c   :  { %946 = vmatprep.subr.bf16.mxu0 %v1571_v5  ;;  %987 = vmatprep.subr.bf16.mxu1 %v1622_v14  ;;  %v818_v5 = vunpack.c.l.bf16 %v1261_v4  ;;  %v819_v7 = vunpack.c.h.bf16 %v1261_v4  ;;  %v1486_v4 = vld [vmem:[%s2130_s1 + $0xec] ss:$16 sps:$4 sm:$0xff]  }
 0x53f   :  { %947 = vmatpush1.bf16.msra.mxu0 %v1587_v8  ;;  %988 = vmatpush1.bf16.msra.mxu1 %v1629_v15 }
 0x540   :  { %948 = vmatprep.subr.bf16.mxu0 %v1594_v9  ;;  %989 = vmatprep.subr.bf16.mxu1 %v1635_v16 }
 0x543   :  { %949 = vmatpush1.bf16.msra.mxu0 %v1612_v12  ;;  %990 = vmatpush1.bf16.msra.mxu1 %v1653_v19 }
 0x544   :  { %950 = vmatprep.subr.bf16.mxu0 %v1617_v13  ;;  %991 = vmatprep.subr.bf16.mxu1 %v1659_v20 }
 0x547   :  { %951 = vmatpush1.bf16.msra.mxu0 %v1641_v17  ;;  %992 = vmatpush1.bf16.msra.mxu1 %v1677_v23  ;;  %v820_v23 = vunpack.c.l.bf16 %v1262_v11 }
 0x548   :  { %952 = vmatprep.subr.bf16.mxu0 %v1647_v18  ;;  %993 = vmatprep.subr.bf16.mxu1 %v1683_v24 }
 0x54b   :  { %953 = vmatpush1.bf16.msra.mxu0 %v1665_v21  ;;  %994 = vmatpush1.bf16.msra.mxu1 %v1701_v27  ;;  %v821_v21 = vunpack.c.h.bf16 %v1262_v11 }
 0x54c   :  { %954 = vmatprep.subr.bf16.mxu0 %v1670_v22  ;;  %995 = vmatprep.subr.bf16.mxu1 %v1707_v28 }
 0x54f   :  { %955 = vmatpush1.bf16.msra.mxu0 %v1689_v25  ;;  %996 = vmatpush1.bf16.msra.mxu1 %v1720_v30 }
 0x550   :  { %956 = vmatprep.subr.bf16.mxu0 %v1695_v26  ;;  %997 = vmatprep.subr.bf16.mxu1 %v1726_v31 }
 0x553   :  { %957 = vmatpush1.bf16.msra.mxu0 %v1713_v29  ;;  %998 = vmatpush1.bf16.msra.mxu1 %v1733_v32 }
 0x554   :  { %1062 = vmatprep.subr.bf16.mxu0 %v1457_v1  ;;  %1103 = vmatprep.subr.bf16.mxu1 %v1458_v3  ;;  %v1484_v1 = vld [vmem:[%s2130_s1 + $0xc8] ss:$16 sps:$4 sm:$0xff]   ;;  %v1485_v3 = vld [vmem:[%s2130_s1 + $0xe4] ss:$16 sps:$4 sm:$0xff]  }
 0x609   :  { %v856_v8 = vpop.f32.mrb[20].mxu0  ;;  %v897_v9 = vpop.f32.mrb[20].mxu1 }
 0x60a   :  { %v904_v10 = vadd.f32 %v856_v8, %v818_v5  ;;  %v858_v12 = vpop.f32.mrb[21].mxu0  ;;  %v899_v13 = vpop.f32.mrb[21].mxu1  ;;  %v906_v25 = vadd.f32 %v897_v9, %v820_v23  ;;  %v1487_v5 = vld [vmem:[%s2130_s1 + $0xe0] ss:$16 sps:$4 sm:$0xff]  }
 0x60b   :  { %v905_v14 = vadd.f32 %v858_v12, %v819_v7  ;;  %v860_v15 = vpop.f32.mrb[22].mxu0  ;;  %v901_v16 = vpop.f32.mrb[22].mxu1  ;;  %v907_v22 = vadd.f32 %v899_v13, %v821_v21  ;;  %v1488_v7 = vld [vmem:[%s2130_s1 + $0xe8] ss:$16 sps:$4 sm:$0xff]   ;;  %v1266_v8 = vld [vmem:[%s2129_s0 + $0x60] sm:$0xff] }
 0x60c   :  { %v1263_v17 = vmul.f32 -1.442695, %v904_v10  ;;  %v861_v18 = vpop.f32.mrb[23].mxu0  ;;  %v902_v19 = vpop.f32.mrb[23].mxu1  ;;  %v938_v9 = vunpack.c.l.bf16 %v1266_v8  ;;  %v939_v10 = vunpack.c.h.bf16 %v1266_v8 }
 0x60d   :  { %v1264_v20 = vmul.f32 -1.442695, %v905_v14  ;;  %v1265_v24 = vmul.f32 -1.442695, %v907_v22  ;;  %v1267_v14 = vld [vmem:[%s2129_s0 + $0x68] sm:$0xff] }
 0x60e   :  { %1409 = vpow2.f32 %v1263_v17 }
 0x60f   :  { %1411 = vpow2.f32 %v1264_v20 }
 0x610   :  { %1413 = vpow2.f32 %v1265_v24  ;;  %v941_v24 = vunpack.c.h.bf16 %v1267_v14 }
 0x611   :  { %1415 = vtanh.f32 %v906_v25 }
 0x618   :  { %v1410_v26 = vpop.eup %1409 }
 0x619   :  { %v1412_v27 = vpop.eup %1411  ;;  %v911_v28 = vadd.f32 1.0, %v1410_v26  ;;  %v940_v26 = vunpack.c.l.bf16 %v1267_v14 }
 0x61a   :  { %v917_v29 = vadd.f32 1.0, %v1412_v27  ;;  %v1414_v30 = vpop.eup %1413 }
 0x61b   :  { %1417 = vrcp.f32 %v911_v28  ;;  %v1416_v31 = vpop.eup %1415  ;;  %v924_v33 = vadd.f32 1.0, %v1414_v30 }
 0x61c   :  { %1419 = vrcp.f32 %v917_v29 }
 0x61d   :  { %1421 = vrcp.f32 %v924_v33 }
 0x625   :  { %v1418_v32 = vpop.eup %1417 }
 0x626   :  { %v1420_v54 = vpop.eup %1419  ;;  %v928_v63 = vmul.f32 %v1418_v32, %v1416_v31 }
 0x627   :  { %v927_v34 = vmul.f32 %v1420_v54, %v1955_v48  ;;  %v1422_v37 = vpop.eup %1421  ;;  %v1479_v48 = vld [vmem:[%s2130_s1 + $0xa0] ss:$16 sps:$4 sm:$0xff]  }
 0x629   :  { %v2003_v36 = vadd.f32 %v928_v63, %v927_v34 }
 0x62b   :  { %1423 = vtanh.f32 %v2003_v36 }
 0x635   :  { %v1424_v38 = vpop.eup %1423 }
 0x636   :  { %v931_v0 = vmul.f32 %v1424_v38, %v1422_v37 }
 0x638   :  { %v932_v39 = vpack.c.bf16 %v931_v0, %v931_v0 }
 0x63a   :  { %934 = vst [vmem:[#allocation4 + $0x14] sm:$0xf] %v932_v39  ;;  %975 = vmatmul.mubr.bf16.vlgmr.msra.gmra.mrb[24].mxu0 %v932_v39  ;;  %1016 = vmatmul.mubr.bf16.vlgmr.msra.gmra.mrb[24].mxu1 %v932_v39 }
 0x63b   :  { %1063 = vmatpush1.bf16.msra.mxu0 %v1459_v6  ;;  %1104 = vmatpush1.bf16.msra.mxu1 %v1460_v40 }
 0x63c   :  { %1064 = vmatprep.subr.bf16.mxu0 %v1461_v41  ;;  %1105 = vmatprep.subr.bf16.mxu1 %v1462_v43 }
 0x63d   :  { %1094 = vmatprep.mubr.bf16.mxu0 %v1513_v2  ;;  %1135 = vmatprep.mubr.bf16.mxu1 %v1513_v2  ;;  %v1467_v2 = vld [vmem:[%s2130_s1 + $0x40] ss:$16 sps:$4 sm:$0xff]  }
 0x63f   :  { %1065 = vmatpush1.bf16.msra.mxu0 %v1463_v44  ;;  %1106 = vmatpush1.bf16.msra.mxu1 %v1464_v45  ;;  %v1271_v44 = vld [vmem:[%s2129_s0 + $0x70] sm:$0xff] }
 0x640   :  { %1066 = vmatprep.subr.bf16.mxu0 %v1465_v46  ;;  %1107 = vmatprep.subr.bf16.mxu1 %v1466_v35  ;;  %v1058_v45 = vunpack.c.l.bf16 %v1271_v44  ;;  %v1059_v46 = vunpack.c.h.bf16 %v1271_v44 }
 0x643   :  { %1067 = vmatpush1.bf16.msra.mxu0 %v1467_v2  ;;  %1108 = vmatpush1.bf16.msra.mxu1 %v1468_v47 }
 0x644   :  { %1068 = vmatprep.subr.bf16.mxu0 %v1469_v49  ;;  %1109 = vmatprep.subr.bf16.mxu1 %v1470_v50 }
 0x647   :  { %1069 = vmatpush1.bf16.msra.mxu0 %v1471_v51  ;;  %1110 = vmatpush1.bf16.msra.mxu1 %v1472_v52 }
 0x648   :  { %1070 = vmatprep.subr.bf16.mxu0 %v1473_v42  ;;  %1111 = vmatprep.subr.bf16.mxu1 %v1474_v53 }
 0x64b   :  { %1071 = vmatpush1.bf16.msra.mxu0 %v1475_v55  ;;  %1112 = vmatpush1.bf16.msra.mxu1 %v1476_v56 }
 0x64c   :  { %1072 = vmatprep.subr.bf16.mxu0 %v1477_v57  ;;  %1113 = vmatprep.subr.bf16.mxu1 %v1478_v58 }
 0x64f   :  { %1073 = vmatpush1.bf16.msra.mxu0 %v1479_v48  ;;  %1114 = vmatpush1.bf16.msra.mxu1 %v1480_v59 }
 0x650   :  { %1074 = vmatprep.subr.bf16.mxu0 %v1481_v60  ;;  %1115 = vmatprep.subr.bf16.mxu1 %v1482_v61 }
 0x653   :  { %1075 = vmatpush1.bf16.msra.mxu0 %v1483_v62  ;;  %1116 = vmatpush1.bf16.msra.mxu1 %v1484_v1 }
 0x654   :  { %1076 = vmatprep.subr.bf16.mxu0 %v1485_v3  ;;  %1117 = vmatprep.subr.bf16.mxu1 %v1486_v4 }
 0x657   :  { %1077 = vmatpush1.bf16.msra.mxu0 %v1487_v5  ;;  %1118 = vmatpush1.bf16.msra.mxu1 %v1488_v7 }
 0x70d   :  { %v976_v11 = vpop.f32.mrb[24].mxu0  ;;  %v1017_v12 = vpop.f32.mrb[24].mxu1 }
 0x70e   :  { %v1024_v13 = vadd.f32 %v976_v11, %v938_v9  ;;  %v978_v15 = vpop.f32.mrb[25].mxu0  ;;  %v1019_v16 = vpop.f32.mrb[25].mxu1  ;;  %v1026_v28 = vadd.f32 %v1017_v12, %v940_v26 }
 0x70f   :  { %v1025_v17 = vadd.f32 %v978_v15, %v939_v10  ;;  %v980_v18 = vpop.f32.mrb[26].mxu0  ;;  %v1021_v19 = vpop.f32.mrb[26].mxu1  ;;  %v1027_v25 = vadd.f32 %v1019_v16, %v941_v24 }
 0x710   :  { %v1268_v20 = vmul.f32 -1.442695, %v1024_v13  ;;  %v981_v21 = vpop.f32.mrb[27].mxu0  ;;  %v1022_v22 = vpop.f32.mrb[27].mxu1 }
 0x711   :  { %v1269_v23 = vmul.f32 -1.442695, %v1025_v17  ;;  %v1270_v27 = vmul.f32 -1.442695, %v1027_v25 }
 0x712   :  { %1425 = vpow2.f32 %v1268_v20 }
 0x713   :  { %1427 = vpow2.f32 %v1269_v23 }
 0x714   :  { %1429 = vpow2.f32 %v1270_v27 }
 0x715   :  { %1431 = vtanh.f32 %v1026_v28 }
 0x71c   :  { %v1426_v29 = vpop.eup %1425 }
 0x71d   :  { %v1428_v30 = vpop.eup %1427  ;;  %v1031_v31 = vadd.f32 1.0, %v1426_v29 }
 0x71e   :  { %v1037_v32 = vadd.f32 1.0, %v1428_v30  ;;  %v1430_v54 = vpop.eup %1429 }
 0x71f   :  { %1433 = vrcp.f32 %v1031_v31  ;;  %v1432_v63 = vpop.eup %1431  ;;  %v1044_v38 = vadd.f32 1.0, %v1430_v54 }
 0x720   :  { %1435 = vrcp.f32 %v1037_v32 }
 0x721   :  { %1437 = vrcp.f32 %v1044_v38 }
 0x729   :  { %v1434_v33 = vpop.eup %1433 }
 0x72a   :  { %v1436_v34 = vpop.eup %1435  ;;  %v1048_v37 = vmul.f32 %v1434_v33, %v1432_v63 }
 0x72b   :  { %v1047_v0 = vmul.f32 %v1436_v34, %v2003_v36  ;;  %v1438_v6 = vpop.eup %1437  ;;  %v1272_v36 = vld [vmem:[%s2129_s0 + $0x78] sm:$0xff] }
 0x72c   :  { %v1061_v58 = vunpack.c.h.bf16 %v1272_v36  ;;  %v1060_v59 = vunpack.c.l.bf16 %v1272_v36 }
 0x72d   :  { %v1049_v39 = vadd.f32 %v1048_v37, %v1047_v0 }
 0x72f   :  { %1439 = vtanh.f32 %v1049_v39 }
 0x739   :  { %v1440_v40 = vpop.eup %1439 }
 0x73a   :  { %v1051_v41 = vmul.f32 %v1440_v40, %v1438_v6 }
 0x73c   :  { %v1052_v43 = vpack.c.bf16 %v1051_v41, %v1051_v41 }
 0x73e   :  { %1054 = vst [vmem:[#allocation4 + $0x18] sm:$0xf] %v1052_v43  ;;  %1095 = vmatmul.mubr.bf16.vlgmr.msra.gmra.mrb[28].mxu0 %v1052_v43  ;;  %1136 = vmatmul.mubr.bf16.vlgmr.msra.gmra.mrb[28].mxu1 %v1052_v43 }
 0x811   :  { %v1096_v35 = vpop.f32.mrb[28].mxu0  ;;  %v1137_v2 = vpop.f32.mrb[28].mxu1 }
 0x812   :  { %v1144_v47 = vadd.f32 %v1096_v35, %v1058_v45  ;;  %v1098_v49 = vpop.f32.mrb[29].mxu0  ;;  %v1139_v50 = vpop.f32.mrb[29].mxu1  ;;  %v1146_v61 = vadd.f32 %v1137_v2, %v1060_v59 }
 0x813   :  { %v1145_v51 = vadd.f32 %v1098_v49, %v1059_v46  ;;  %v1100_v52 = vpop.f32.mrb[30].mxu0  ;;  %v1141_v42 = vpop.f32.mrb[30].mxu1  ;;  %v1147_v48 = vadd.f32 %v1139_v50, %v1061_v58 }
 0x814   :  { %v1273_v53 = vmul.f32 -1.442695, %v1144_v47  ;;  %v1101_v55 = vpop.f32.mrb[31].mxu0  ;;  %v1142_v56 = vpop.f32.mrb[31].mxu1 }
 0x815   :  { %v1274_v57 = vmul.f32 -1.442695, %v1145_v51  ;;  %v1275_v60 = vmul.f32 -1.442695, %v1147_v48 }
 0x816   :  { %1441 = vpow2.f32 %v1273_v53 }
 0x817   :  { %1443 = vpow2.f32 %v1274_v57 }
 0x818   :  { %1445 = vpow2.f32 %v1275_v60 }
 0x819   :  { %1447 = vtanh.f32 %v1146_v61 }
 0x820   :  { %v1442_v62 = vpop.eup %1441 }
 0x821   :  { %v1444_v1 = vpop.eup %1443  ;;  %v1151_v3 = vadd.f32 1.0, %v1442_v62 }
 0x822   :  { %v1157_v4 = vadd.f32 1.0, %v1444_v1  ;;  %v1446_v5 = vpop.eup %1445 }
 0x823   :  { %1449 = vrcp.f32 %v1151_v3  ;;  %v1448_v7 = vpop.eup %1447  ;;  %v1164_v11 = vadd.f32 1.0, %v1446_v5 }
 0x824   :  { %1451 = vrcp.f32 %v1157_v4 }
 0x825   :  { %1453 = vrcp.f32 %v1164_v11 }
 0x82d   :  { %v1450_v8 = vpop.eup %1449 }
 0x82e   :  { %v1452_v9 = vpop.eup %1451  ;;  %v1168_v10 = vmul.f32 %v1450_v8, %v1448_v7 }
 0x82f   :  { %v1167_v12 = vmul.f32 %v1452_v9, %v1049_v39  ;;  %v1454_v14 = vpop.eup %1453 }
 0x831   :  { %v1169_v13 = vadd.f32 %v1168_v10, %v1167_v12 }
 0x833   :  { %1455 = vtanh.f32 %v1169_v13  ;;  %1181 = vst [vmem:[%s2133_s4] sm:$0xff] %v1169_v13 }
 0x83d   :  { %v1456_v15 = vpop.eup %1455 }
 0x83e   :  { %v1171_v16 = vmul.f32 %v1456_v15, %v1454_v14 }
 0x840   :  { %v1172_v17 = vpack.c.bf16 %v1171_v16, %v1171_v16  ;;  %1180 = vst [vmem:[%s2132_s3] sm:$0xff] %v1171_v16 }
 0x842   :  { %1174 = vst [vmem:[#allocation4 + $0x1c] sm:$0xf] %v1172_v17 }
 0x843   :  { %1500 = shalt.err (!%p1497_p4)
}
 0x844   :  { %s1501_s25 = scalar_lea.hbm %s2131_s2, 512 }
 0x845   :  { %p1502_p5 = scmp.ne.s32.totalorder %s2131_s2, %s1501_s25  ;;  %p1505_p6 = scmp.lt.u32.totalorder %s1501_s25, %s2131_s2 }
 0x847   :  { %p1507_p7 = pnand %p1505_p6, %p1502_p5 }
 0x849   :  { %1510 = shalt.err (!%p1507_p7)
}
 0x84a   :  { %s1516_s3 = smov 64   ;;  %s1517_s30 = smov 4  }
 0x84b   :  { %1193 = dma.vmem_to_hbm [thread:$0]  %s1188_s20, 512, %s2131_s2, [#allocation5], %s1516_s3, %s1516_s3, %s1517_s30  }
 0x84c   :  { %1511 = dma.done.wait [#allocation5], 512  }
 0x84d   :  { %1512 = vsyncadd [#allocation5], 4294966784 }
 0x84e   :  { %1205 = vsyncpa [#allocation5], 1 }

</bundles_post_ra>
